<compile_context>
chip_gen: v7x
topology: tpu7x:2x2x1
jax: 0.10.0
libtpu: 0.0.40
codegen_flags: <defaults>
</compile_context>

<pallas_src>
import numpy as np
import jax
import jax.numpy as jnp
from jax import lax
from jax.experimental import pallas as pl
from jax.experimental.pallas import tpu as pltpu

# ----------------------------------------------------------------------------
# Config (deterministic, in-script -- mirrors MultiLoss.__init__ defaults)
# ----------------------------------------------------------------------------
WEIGHT_1 = 1.0          # weight for CTCLoss
WEIGHT_2 = 1.0          # weight for SARLoss
IGNORE_INDEX = 37       # SAR CrossEntropy ignore_index (padding class)
BLANK = 0               # CTC blank index
S_EXT_PAD = 128         # extended-label axis padded to one full lane vreg
NEG_INF = -1.0e30       # finite log-space "-inf" sentinel (see note in kernel)

# TODO(synk): the eval()-based loss_config_list parsing in __init__ is host
# Python with no kernel equivalent; the two supported losses are hard-wired.


# ----------------------------------------------------------------------------
# Pallas kernel (one batch block of B_BLK samples per grid step)
# ----------------------------------------------------------------------------
def _multi_loss_kernel(ctc_ref, ext_ref, len_ref, smask_ref,
                       sar_logits_ref, sar_labels_ref,
                       out_ref, lp_sm, lp_tm):
    BB, T, C = ctc_ref.shape
    P = ext_ref.shape[1]

    # ---------------- CTC masks built in-kernel (pure VPU index math) -------
    ext = ext_ref[...]                                   # (BB, P) int32
    lens = len_ref[...]                                  # (BB, 1) int32
    s_pos = lax.broadcasted_iota(jnp.int32, (BB, P), 1)
    l2 = 2 * lens + 1                                    # (BB, 1)
    valid = s_pos < l2                                   # (BB, P)
    ext_m2 = pltpu.roll(ext, shift=2, axis=1)            # ext[s-2] (wrap masked)
    allow = (((s_pos & 1) == 1) & (s_pos >= 2) & (ext != ext_m2)
             & (ext != BLANK) & valid)
    final = ((s_pos == (l2 - 1)) | (s_pos == (l2 - 2))) & valid
    ge1 = s_pos >= 1
    # NEG_INF is a *finite* -1e30 on purpose: dead lanes hit
    # exp(NEG_INF - NEG_INF) = exp(0) = 1, which stays benign in f32.
    # Do NOT replace it with -inf (inf-inf -> NaN) or switch alpha to bf16.
    neg = jnp.full((BB, P), NEG_INF, dtype=jnp.float32)  # hoisted out of loops

    # ---------------- MXU gather phase (dense, before the DP) ---------------
    # lp[b, t, p] = log_softmax(logits)[b, t, ext[b, p]]
    # log-softmax fused into the gather: matmul raw logits with the one-hot,
    # subtract the per-(b,t) LSE afterwards (no (B,T,C) log-softmax tensor).
    lg = ctc_ref[...]                                    # (BB, T, C) f32
    mx = jnp.max(lg, axis=-1, keepdims=True)             # batched LSE (hoisted)
    lse = mx + jnp.log(jnp.sum(jnp.exp(lg - mx), axis=-1, keepdims=True))

    c_iota = lax.broadcasted_iota(jnp.int32, (C, P), 0)
    for b in range(BB):
        oh_b = (ext[b:b + 1, :] == c_iota).astype(jnp.float32)       # (C, P)
        raw = jnp.dot(lg[b], oh_b, preferred_element_type=jnp.float32)
        lp_sm[pl.ds(b * T, T), :] = raw - lse[b]                     # (T, P)

    # Repack sample-major -> time-major so each DP step is ONE aligned
    # vreg-tile load.  The strided sublane assembly happens here, in the
    # gather phase (MXU/store slack), off the serial DP critical path.
    for t in range(T):
        lp_tm[t] = lp_sm[pl.ds(t, BB, stride=T), :]                  # (BB, P)

    # ---------------- CTC DP, vectorized over the batch block ---------------
    alpha0 = jnp.where((s_pos <= 1) & valid, lp_tm[0], neg)

    def step(t, alpha):
        a1 = jnp.where(ge1, pltpu.roll(alpha, shift=1, axis=1), neg)
        a2 = jnp.where(allow, pltpu.roll(alpha, shift=2, axis=1), neg)
        # 3-way log-sum-exp: 3 exp + 1 log on the EUP critical path
        m = jnp.maximum(jnp.maximum(alpha, a1), a2)
        acc = m + jnp.log(jnp.exp(alpha - m) + jnp.exp(a1 - m) + jnp.exp(a2 - m))
        return jnp.where(valid, acc + lp_tm[t], neg)

    unroll = True if T <= 32 else 4   # partial unroll for long T: avoid spills
    alpha_T = lax.fori_loop(1, T, step, alpha0, unroll=unroll)

    fin = jnp.where(final, alpha_T, neg)
    fmax = jnp.max(fin, axis=-1, keepdims=True)
    lse_f = fmax + jnp.log(jnp.sum(jnp.exp(fin - fmax), axis=-1, keepdims=True))
    ctc_blk = jnp.sum(-lse_f * smask_ref[...])           # padded rows masked

    # -------------- SAR branch on flat (BB*S, C) rows ------------------------
    # NLL = LSE(logits) - picked logit; ignored rows (label == IGNORE_INDEX,
    # which also covers the dropped last step and padded samples) contribute 0.
    sl = sar_logits_ref[...]                             # (BB*S, C)
    lab = sar_labels_ref[...]                            # (BB*S, 1) int32
    m2 = jnp.max(sl, axis=-1, keepdims=True)
    lse2 = m2 + jnp.log(jnp.sum(jnp.exp(sl - m2), axis=-1, keepdims=True))
    cls = lax.broadcasted_iota(jnp.int32, sl.shape, 1)
    picked = jnp.sum(jnp.where(lab == cls, sl, 0.0), axis=-1, keepdims=True)
    keep = (lab != IGNORE_INDEX).astype(jnp.float32)
    nll_blk = jnp.sum((lse2 - picked) * keep)
    keep_blk = jnp.sum(keep)

    # -------------- single packed partial-sum tile (reduced on host) ---------
    # Whole tile is written every grid step (no stale lanes can be read).
    sub = lax.broadcasted_iota(jnp.int32, out_ref.shape, 1)
    tile = jnp.where(sub == 0, ctc_blk,
           jnp.where(sub == 1, nll_blk,
           jnp.where(sub == 2, keep_blk, 0.0)))
    out_ref[...] = tile.astype(jnp.float32)


# ----------------------------------------------------------------------------
# Host-side glue (cheap index math; pads only for ragged batches)
# ----------------------------------------------------------------------------
def _build_ext_labels(label_ctc):
    B, Lmax = label_ctc.shape
    assert 2 * Lmax + 1 <= S_EXT_PAD, "extended CTC label exceeds 128 lanes"
    s = jnp.arange(S_EXT_PAD)
    lab_pos = jnp.clip((s - 1) // 2, 0, Lmax - 1)
    ext = jnp.where((s % 2) == 0, BLANK, label_ctc[:, lab_pos])      # (B, P)
    return ext.astype(jnp.int32)


def _pad_rows(x, n_rows, fill):
    pad = n_rows - x.shape[0]
    if pad <= 0:
        return x                       # aligned batch: no HBM copy at all
    filler = jnp.full((pad,) + x.shape[1:], fill, dtype=x.dtype)
    return jnp.concatenate([x, filler], axis=0)


def _choose_b_blk(B):
    """Widest multiple-of-8 block that still leaves >= 2 grid steps (v7x TCs)."""
    b8 = ((B + 7) // 8) * 8
    for cand in (32, 16):
        if b8 >= 2 * cand:
            return cand
    return 8


# ----------------------------------------------------------------------------
# Wrapper mirroring MultiLoss.forward(predicts, batch)
# ----------------------------------------------------------------------------
def multi_loss(predicts, batch):
    ctc_preds = predicts['ctc']                  # (B, T, C)
    sar_preds = predicts['sar']                  # (B, S1, C)
    ctc_batch = batch[:2] + batch[3:]            # [img, label_ctc, length, ...]
    sar_batch = batch[:1] + batch[2:]            # [img, label_sar, length, ...]
    label_ctc = ctc_batch[1].astype(jnp.int32)
    lengths = ctc_batch[2].astype(jnp.int32)
    label_sar = sar_batch[1].astype(jnp.int32)

    B, T, C = ctc_preds.shape
    S1 = sar_preds.shape[1]
    assert label_sar.shape[1] == S1

    # SAR "drop last prediction step / first label token": pair logits step s
    # with label_sar[:, s+1] and mark the last step IGNORE (no logits slice).
    lab_shift = jnp.concatenate(
        [label_sar[:, 1:], jnp.full((B, 1), IGNORE_INDEX, dtype=jnp.int32)],
        axis=1)                                               # (B, S1)

    B_BLK = _choose_b_blk(B)
    B_pad = ((B + B_BLK - 1) // B_BLK) * B_BLK
    G = B_pad // B_BLK

    ctc_in = _pad_rows(ctc_preds.astype(jnp.float32), B_pad, 0.0)
    ext = _pad_rows(_build_ext_labels(label_ctc), B_pad, BLANK)
    len_col = _pad_rows(lengths[:, None], B_pad, 0)
    smask = _pad_rows(jnp.ones((B, 1), jnp.float32), B_pad, 0.0)
    sar_flat = _pad_rows(sar_preds.astype(jnp.float32), B_pad, 0.0)
    sar_flat = sar_flat.reshape(B_pad * S1, C)                # free reshape
    lab_flat = _pad_rows(lab_shift, B_pad, IGNORE_INDEX).reshape(B_pad * S1, 1)

    # VMEM footprint per step is small at these shapes; for long T / large C
    # (esp. on v7x's 64 MiB VMEM) add a T grid axis or set vmem_limit_bytes.
    out_shape = jax.ShapeDtypeStruct((G, 8, 128), jnp.float32)
    kernel = pl.pallas_call(
        _multi_loss_kernel,
        out_shape=out_shape,
        grid_spec=pltpu.PrefetchScalarGridSpec(
            num_scalar_prefetch=0,
            grid=(G,),
            in_specs=[
                pl.BlockSpec((B_BLK, T, C), lambda g: (g, 0, 0)),     # ctc logits
                pl.BlockSpec((B_BLK, S_EXT_PAD), lambda g: (g, 0)),   # ext labels
                pl.BlockSpec((B_BLK, 1), lambda g: (g, 0)),           # lengths
                pl.BlockSpec((B_BLK, 1), lambda g: (g, 0)),           # sample mask
                pl.BlockSpec((B_BLK * S1, C), lambda g: (g, 0)),      # sar logits (flat)
                pl.BlockSpec((B_BLK * S1, 1), lambda g: (g, 0)),      # sar labels (flat)
            ],
            out_specs=pl.BlockSpec((1, 8, 128), lambda g: (g, 0, 0)),
            scratch_shapes=[
                pltpu.VMEM((B_BLK * T, S_EXT_PAD), jnp.float32),      # sample-major lp
                pltpu.VMEM((T, B_BLK, S_EXT_PAD), jnp.float32),       # time-major lp
            ]),
        compiler_params=pltpu.CompilerParams(
            dimension_semantics=("parallel",)),
    )
    parts = kernel(ctc_in, ext, len_col, smask, sar_flat, lab_flat)

    ctc_sum = jnp.sum(parts[:, 0, 0])
    nll_sum = jnp.sum(parts[:, 1, 0])
    keep_sum = jnp.sum(parts[:, 2, 0])       # global mean => no per-block bias

    ctc_w = WEIGHT_1 * ctc_sum / float(B)    # reduction='none' then .mean()
    # Matches PyTorch CE 'mean': NaN if every SAR token is ignored.
    sar_w = WEIGHT_2 * nll_sum / keep_sum
    return {'CTCLoss': ctc_w, 'SARLoss': sar_w, 'loss': ctc_w + sar_w}


# ----------------------------------------------------------------------------
# Pure numpy references (for validation only)
# ----------------------------------------------------------------------------
def _ctc_ref(logits, labels, lengths, blank=0):
    logits = np.asarray(logits, dtype=np.float64)
    labels = np.asarray(labels)
    lengths = np.asarray(lengths)
    B, T, _ = logits.shape
    m = logits.max(-1, keepdims=True)
    logp = logits - m - np.log(np.exp(logits - m).sum(-1, keepdims=True))
    losses = []
    for b in range(B):
        L = int(lengths[b])
        ext = [blank]
        for i in range(L):
            ext += [int(labels[b, i]), blank]
        S = len(ext)
        alpha = np.full(S, -np.inf)
        alpha[0] = logp[b, 0, blank]
        if S > 1:
            alpha[1] = logp[b, 0, ext[1]]
        for t in range(1, T):
            new = np.full(S, -np.inf)
            for s_ in range(S):
                v = alpha[s_]
                if s_ > 0:
                    v = np.logaddexp(v, alpha[s_ - 1])
                if s_ > 1 and ext[s_] != blank and ext[s_] != ext[s_ - 2]:
                    v = np.logaddexp(v, alpha[s_ - 2])
                new[s_] = v + logp[b, t, ext[s_]]
            alpha = new
        losses.append(-np.logaddexp(alpha[S - 1], alpha[S - 2]))
    return float(np.mean(losses))


def _sar_ref(logits, labels, ignore_index):
    logits = np.asarray(logits, dtype=np.float64)
    labels = np.asarray(labels)
    m = logits.max(-1, keepdims=True)
    logp = logits - m - np.log(np.exp(logits - m).sum(-1, keepdims=True))
    B, S, _ = logits.shape
    nll = -logp[np.arange(B)[:, None], np.arange(S)[None, :], labels]
    mask = (labels != ignore_index)
    return float((nll * mask).sum() / mask.sum())


# ----------------------------------------------------------------------------
if __name__ == "__main__":
    B, T, C = 2, 16, 40          # batch, CTC time steps, num classes (blank=0)
    LMAX, S_SAR = 8, 9           # max CTC label length, SAR decode length

    key = jax.random.PRNGKey(0)
    k1, k2, k3, k4 = jax.random.split(key, 4)
    ctc_logits = jax.random.normal(k1, (B, T, C), dtype=jnp.float32)
    sar_logits = jax.random.normal(k2, (B, S_SAR, C), dtype=jnp.float32)
    lengths = jnp.array([5, 8], dtype=jnp.int32)
    label_ctc = jax.random.randint(k3, (B, LMAX), 1, C, dtype=jnp.int32)
    label_ctc = jnp.where(jnp.arange(LMAX)[None, :] < lengths[:, None],
                          label_ctc, 0)
    label_sar = jax.random.randint(k4, (B, S_SAR), 0, C, dtype=jnp.int32)
    label_sar = label_sar.at[0, 6:].set(IGNORE_INDEX).at[1, 7:].set(IGNORE_INDEX)

    images = jnp.zeros((B, 3, 32, 100), jnp.float32)   # placeholder, unused
    valid_ratio = jnp.ones((B,), jnp.float32)          # placeholder, unused
    # batch convention: [image, label_ctc, label_sar, length, valid_ratio]
    batch = [images, label_ctc, label_sar, lengths, valid_ratio]
    predicts = {'ctc': ctc_logits, 'sar': sar_logits}

    out = multi_loss(predicts, batch)
    jax.block_until_ready(out['loss'])

    # validate against pure-numpy reference
    ref_total = (WEIGHT_1 * _ctc_ref(ctc_logits, label_ctc, lengths, BLANK)
                 + WEIGHT_2 * _sar_ref(np.asarray(sar_logits)[:, :-1, :],
                                       np.asarray(label_sar)[:, 1:],
                                       IGNORE_INDEX))
    np.testing.assert_allclose(float(out['loss']), ref_total,
                               rtol=2e-3, atol=2e-3)
    print("KERNEL_OK")
</pallas_src>

<mosaic_0001>
module attributes {stable_mosaic.version = 11 : i64} {
  func.func @_multi_loss_kernel(%arg0: i32, %arg1: memref<8x16x40xf32, #tpu.memory_space<vmem>>, %arg2: memref<8x128xi32, #tpu.memory_space<vmem>>, %arg3: memref<8x1xi32, #tpu.memory_space<vmem>>, %arg4: memref<8x1xf32, #tpu.memory_space<vmem>>, %arg5: memref<72x40xf32, #tpu.memory_space<vmem>>, %arg6: memref<72x1xi32, #tpu.memory_space<vmem>>, %arg7: memref<1x8x128xf32, #tpu.memory_space<vmem>>, %arg8: memref<128x128xf32, #tpu.memory_space<vmem>>, %arg9: memref<16x8x128xf32, #tpu.memory_space<vmem>>) attributes {dimension_semantics = [#tpu.dimension_semantics<parallel>], iteration_bounds = array<i64: 1>, scalar_prefetch = 0 : i64, scratch_operands = 2 : i64, tpu.core_type = #tpu.core_type<tc>, window_params = [{transform_indices = @transform_0, window_bounds = array<i64: 8, 16, 40>}, {transform_indices = @transform_1, window_bounds = array<i64: 8, 128>}, {transform_indices = @transform_2, window_bounds = array<i64: 8, 1>}, {transform_indices = @transform_3, window_bounds = array<i64: 8, 1>}, {transform_indices = @transform_4, window_bounds = array<i64: 72, 40>}, {transform_indices = @transform_5, window_bounds = array<i64: 72, 1>}, {transform_indices = @transform_6, window_bounds = array<i64: 1, 8, 128>}]} {
    %c0 = arith.constant 0 : index
    %c0_0 = arith.constant 0 : index
    %0 = vector.load %arg2[%c0, %c0_0] : memref<8x128xi32, #tpu.memory_space<vmem>>, vector<8x128xi32>
    %c0_1 = arith.constant 0 : index
    %c0_2 = arith.constant 0 : index
    %1 = vector.load %arg3[%c0_1, %c0_2] : memref<8x1xi32, #tpu.memory_space<vmem>>, vector<8x1xi32>
    %2 = tpu.iota {dimensions = array<i32: 1>} : vector<8x128xi32>
    %c2_i32 = arith.constant 2 : i32
    %3 = vector.broadcast %c2_i32 : i32 to vector<8x1xi32>
    %4 = arith.muli %3, %1 : vector<8x1xi32>
    %c1_i32 = arith.constant 1 : i32
    %5 = vector.broadcast %c1_i32 : i32 to vector<8x1xi32>
    %6 = arith.addi %4, %5 : vector<8x1xi32>
    %7 = vector.broadcast %6 : vector<8x1xi32> to vector<8x128xi32>
    %8 = arith.cmpi slt, %2, %7 : vector<8x128xi32>
    %c2_i32_3 = arith.constant 2 : i32
    %9 = tpu.dynamic_rotate %0 by %c2_i32_3 dim 1 : vector<8x128xi32>, i32 -> vector<8x128xi32>
    %c1_i32_4 = arith.constant 1 : i32
    %10 = vector.broadcast %c1_i32_4 : i32 to vector<8x128xi32>
    %11 = arith.andi %2, %10 : vector<8x128xi32>
    %c1_i32_5 = arith.constant 1 : i32
    %12 = vector.broadcast %c1_i32_5 : i32 to vector<8x128xi32>
    %13 = arith.cmpi eq, %11, %12 : vector<8x128xi32>
    %c2_i32_6 = arith.constant 2 : i32
    %14 = vector.broadcast %c2_i32_6 : i32 to vector<8x128xi32>
    %15 = arith.cmpi sge, %2, %14 : vector<8x128xi32>
    %16 = arith.andi %13, %15 : vector<8x128xi1>
    %17 = arith.cmpi ne, %0, %9 : vector<8x128xi32>
    %18 = arith.andi %16, %17 : vector<8x128xi1>
    %c0_i32 = arith.constant 0 : i32
    %19 = vector.broadcast %c0_i32 : i32 to vector<8x128xi32>
    %20 = arith.cmpi ne, %0, %19 : vector<8x128xi32>
    %21 = arith.andi %18, %20 : vector<8x128xi1>
    %22 = arith.andi %21, %8 : vector<8x128xi1>
    %c1_i32_7 = arith.constant 1 : i32
    %23 = vector.broadcast %c1_i32_7 : i32 to vector<8x1xi32>
    %24 = arith.subi %6, %23 : vector<8x1xi32>
    %25 = vector.broadcast %24 : vector<8x1xi32> to vector<8x128xi32>
    %26 = arith.cmpi eq, %2, %25 : vector<8x128xi32>
    %c2_i32_8 = arith.constant 2 : i32
    %27 = vector.broadcast %c2_i32_8 : i32 to vector<8x1xi32>
    %28 = arith.subi %6, %27 : vector<8x1xi32>
    %29 = vector.broadcast %28 : vector<8x1xi32> to vector<8x128xi32>
    %30 = arith.cmpi eq, %2, %29 : vector<8x128xi32>
    %31 = arith.ori %26, %30 : vector<8x128xi1>
    %32 = arith.andi %31, %8 : vector<8x128xi1>
    %c1_i32_9 = arith.constant 1 : i32
    %33 = vector.broadcast %c1_i32_9 : i32 to vector<8x128xi32>
    %34 = arith.cmpi sge, %2, %33 : vector<8x128xi32>
    %cst = arith.constant -1.000000e+30 : f32
    %35 = vector.broadcast %cst : f32 to vector<8x128xf32>
    %c0_10 = arith.constant 0 : index
    %c0_11 = arith.constant 0 : index
    %c0_12 = arith.constant 0 : index
    %36 = vector.load %arg1[%c0_10, %c0_11, %c0_12] : memref<8x16x40xf32, #tpu.memory_space<vmem>>, vector<8x16x40xf32>
    %cst_13 = arith.constant dense<0xFF800000> : vector<8x16xf32>
    %37 = vector.multi_reduction <maximumf>, %36, %cst_13 [2] : vector<8x16x40xf32> to vector<8x16xf32>
    %38 = vector.shape_cast %37 : vector<8x16xf32> to vector<8x16x1xf32>
    %39 = vector.broadcast %38 : vector<8x16x1xf32> to vector<8x16x40xf32>
    %40 = arith.subf %36, %39 : vector<8x16x40xf32>
    %41 = math.exp %40 : vector<8x16x40xf32>
    %cst_14 = arith.constant dense<0.000000e+00> : vector<8x16xf32>
    %42 = vector.multi_reduction <add>, %41, %cst_14 [2] : vector<8x16x40xf32> to vector<8x16xf32>
    %43 = vector.shape_cast %42 : vector<8x16xf32> to vector<8x16x1xf32>
    %44 = math.log %43 : vector<8x16x1xf32>
    %45 = arith.addf %38, %44 : vector<8x16x1xf32>
    %46 = tpu.iota {dimensions = array<i32: 0>} : vector<40x128xi32>
    %47 = vector.extract_strided_slice %0 {offsets = [0, 0], sizes = [1, 128], strides = [1, 1]} : vector<8x128xi32> to vector<1x128xi32>
    %48 = vector.broadcast %47 : vector<1x128xi32> to vector<40x128xi32>
    %49 = arith.cmpi eq, %48, %46 : vector<40x128xi32>
    %50 = arith.extui %49 : vector<40x128xi1> to vector<40x128xi32>
    %51 = arith.sitofp %50 : vector<40x128xi32> to vector<40x128xf32>
    %52 = vector.extract_strided_slice %36 {offsets = [0, 0, 0], sizes = [1, 16, 40], strides = [1, 1, 1]} : vector<8x16x40xf32> to vector<1x16x40xf32>
    %53 = vector.shape_cast %52 : vector<1x16x40xf32> to vector<16x40xf32>
    %cst_15 = arith.constant dense<0.000000e+00> : vector<16x128xf32>
    %54 = tpu.matmul %53, %51, %cst_15 {dimension_numbers = #tpu.dot_dimension_numbers<[1], [0], [0], [1], [0, 0, 1, 1], [], []>} : vector<16x40xf32>, vector<40x128xf32>, vector<16x128xf32> -> vector<16x128xf32>
    %55 = vector.extract_strided_slice %45 {offsets = [0, 0, 0], sizes = [1, 16, 1], strides = [1, 1, 1]} : vector<8x16x1xf32> to vector<1x16x1xf32>
    %56 = vector.shape_cast %55 : vector<1x16x1xf32> to vector<16x1xf32>
    %57 = vector.broadcast %56 : vector<16x1xf32> to vector<16x128xf32>
    %58 = arith.subf %54, %57 : vector<16x128xf32>
    %c0_16 = arith.constant 0 : index
    %c0_17 = arith.constant 0 : index
    %59 = vector.load %arg8[%c0_16, %c0_17] : memref<128x128xf32, #tpu.memory_space<vmem>>, vector<16x128xf32>
    tpu.vector_store %arg8[%c0_16, %c0_17], %58 {strides = array<i32>} : memref<128x128xf32, #tpu.memory_space<vmem>>, vector<16x128xf32>,
    %60 = vector.extract_strided_slice %0 {offsets = [1, 0], sizes = [1, 128], strides = [1, 1]} : vector<8x128xi32> to vector<1x128xi32>
    %61 = vector.broadcast %60 : vector<1x128xi32> to vector<40x128xi32>
    %62 = arith.cmpi eq, %61, %46 : vector<40x128xi32>
    %63 = arith.extui %62 : vector<40x128xi1> to vector<40x128xi32>
    %64 = arith.sitofp %63 : vector<40x128xi32> to vector<40x128xf32>
    %65 = vector.extract_strided_slice %36 {offsets = [1, 0, 0], sizes = [1, 16, 40], strides = [1, 1, 1]} : vector<8x16x40xf32> to vector<1x16x40xf32>
    %66 = vector.shape_cast %65 : vector<1x16x40xf32> to vector<16x40xf32>
    %cst_18 = arith.constant dense<0.000000e+00> : vector<16x128xf32>
    %67 = tpu.matmul %66, %64, %cst_18 {dimension_numbers = #tpu.dot_dimension_numbers<[1], [0], [0], [1], [0, 0, 1, 1], [], []>} : vector<16x40xf32>, vector<40x128xf32>, vector<16x128xf32> -> vector<16x128xf32>
    %68 = vector.extract_strided_slice %45 {offsets = [1, 0, 0], sizes = [1, 16, 1], strides = [1, 1, 1]} : vector<8x16x1xf32> to vector<1x16x1xf32>
    %69 = vector.shape_cast %68 : vector<1x16x1xf32> to vector<16x1xf32>
    %70 = vector.broadcast %69 : vector<16x1xf32> to vector<16x128xf32>
    %71 = arith.subf %67, %70 : vector<16x128xf32>
    %c16 = arith.constant 16 : index
    %c0_19 = arith.constant 0 : index
    %72 = vector.load %arg8[%c16, %c0_19] : memref<128x128xf32, #tpu.memory_space<vmem>>, vector<16x128xf32>
    tpu.vector_store %arg8[%c16, %c0_19], %71 {strides = array<i32>} : memref<128x128xf32, #tpu.memory_space<vmem>>, vector<16x128xf32>,
    %73 = vector.extract_strided_slice %0 {offsets = [2, 0], sizes = [1, 128], strides = [1, 1]} : vector<8x128xi32> to vector<1x128xi32>
    %74 = vector.broadcast %73 : vector<1x128xi32> to vector<40x128xi32>
    %75 = arith.cmpi eq, %74, %46 : vector<40x128xi32>
    %76 = arith.extui %75 : vector<40x128xi1> to vector<40x128xi32>
    %77 = arith.sitofp %76 : vector<40x128xi32> to vector<40x128xf32>
    %78 = vector.extract_strided_slice %36 {offsets = [2, 0, 0], sizes = [1, 16, 40], strides = [1, 1, 1]} : vector<8x16x40xf32> to vector<1x16x40xf32>
    %79 = vector.shape_cast %78 : vector<1x16x40xf32> to vector<16x40xf32>
    %cst_20 = arith.constant dense<0.000000e+00> : vector<16x128xf32>
    %80 = tpu.matmul %79, %77, %cst_20 {dimension_numbers = #tpu.dot_dimension_numbers<[1], [0], [0], [1], [0, 0, 1, 1], [], []>} : vector<16x40xf32>, vector<40x128xf32>, vector<16x128xf32> -> vector<16x128xf32>
    %81 = vector.extract_strided_slice %45 {offsets = [2, 0, 0], sizes = [1, 16, 1], strides = [1, 1, 1]} : vector<8x16x1xf32> to vector<1x16x1xf32>
    %82 = vector.shape_cast %81 : vector<1x16x1xf32> to vector<16x1xf32>
    %83 = vector.broadcast %82 : vector<16x1xf32> to vector<16x128xf32>
    %84 = arith.subf %80, %83 : vector<16x128xf32>
    %c32 = arith.constant 32 : index
    %c0_21 = arith.constant 0 : index
    %85 = vector.load %arg8[%c32, %c0_21] : memref<128x128xf32, #tpu.memory_space<vmem>>, vector<16x128xf32>
    tpu.vector_store %arg8[%c32, %c0_21], %84 {strides = array<i32>} : memref<128x128xf32, #tpu.memory_space<vmem>>, vector<16x128xf32>,
    %86 = vector.extract_strided_slice %0 {offsets = [3, 0], sizes = [1, 128], strides = [1, 1]} : vector<8x128xi32> to vector<1x128xi32>
    %87 = vector.broadcast %86 : vector<1x128xi32> to vector<40x128xi32>
    %88 = arith.cmpi eq, %87, %46 : vector<40x128xi32>
    %89 = arith.extui %88 : vector<40x128xi1> to vector<40x128xi32>
    %90 = arith.sitofp %89 : vector<40x128xi32> to vector<40x128xf32>
    %91 = vector.extract_strided_slice %36 {offsets = [3, 0, 0], sizes = [1, 16, 40], strides = [1, 1, 1]} : vector<8x16x40xf32> to vector<1x16x40xf32>
    %92 = vector.shape_cast %91 : vector<1x16x40xf32> to vector<16x40xf32>
    %cst_22 = arith.constant dense<0.000000e+00> : vector<16x128xf32>
    %93 = tpu.matmul %92, %90, %cst_22 {dimension_numbers = #tpu.dot_dimension_numbers<[1], [0], [0], [1], [0, 0, 1, 1], [], []>} : vector<16x40xf32>, vector<40x128xf32>, vector<16x128xf32> -> vector<16x128xf32>
    %94 = vector.extract_strided_slice %45 {offsets = [3, 0, 0], sizes = [1, 16, 1], strides = [1, 1, 1]} : vector<8x16x1xf32> to vector<1x16x1xf32>
    %95 = vector.shape_cast %94 : vector<1x16x1xf32> to vector<16x1xf32>
    %96 = vector.broadcast %95 : vector<16x1xf32> to vector<16x128xf32>
    %97 = arith.subf %93, %96 : vector<16x128xf32>
    %c48 = arith.constant 48 : index
    %c0_23 = arith.constant 0 : index
    %98 = vector.load %arg8[%c48, %c0_23] : memref<128x128xf32, #tpu.memory_space<vmem>>, vector<16x128xf32>
    tpu.vector_store %arg8[%c48, %c0_23], %97 {strides = array<i32>} : memref<128x128xf32, #tpu.memory_space<vmem>>, vector<16x128xf32>,
    %99 = vector.extract_strided_slice %0 {offsets = [4, 0], sizes = [1, 128], strides = [1, 1]} : vector<8x128xi32> to vector<1x128xi32>
    %100 = vector.broadcast %99 : vector<1x128xi32> to vector<40x128xi32>
    %101 = arith.cmpi eq, %100, %46 : vector<40x128xi32>
    %102 = arith.extui %101 : vector<40x128xi1> to vector<40x128xi32>
    %103 = arith.sitofp %102 : vector<40x128xi32> to vector<40x128xf32>
    %104 = vector.extract_strided_slice %36 {offsets = [4, 0, 0], sizes = [1, 16, 40], strides = [1, 1, 1]} : vector<8x16x40xf32> to vector<1x16x40xf32>
    %105 = vector.shape_cast %104 : vector<1x16x40xf32> to vector<16x40xf32>
    %cst_24 = arith.constant dense<0.000000e+00> : vector<16x128xf32>
    %106 = tpu.matmul %105, %103, %cst_24 {dimension_numbers = #tpu.dot_dimension_numbers<[1], [0], [0], [1], [0, 0, 1, 1], [], []>} : vector<16x40xf32>, vector<40x128xf32>, vector<16x128xf32> -> vector<16x128xf32>
    %107 = vector.extract_strided_slice %45 {offsets = [4, 0, 0], sizes = [1, 16, 1], strides = [1, 1, 1]} : vector<8x16x1xf32> to vector<1x16x1xf32>
    %108 = vector.shape_cast %107 : vector<1x16x1xf32> to vector<16x1xf32>
    %109 = vector.broadcast %108 : vector<16x1xf32> to vector<16x128xf32>
    %110 = arith.subf %106, %109 : vector<16x128xf32>
    %c64 = arith.constant 64 : index
    %c0_25 = arith.constant 0 : index
    %111 = vector.load %arg8[%c64, %c0_25] : memref<128x128xf32, #tpu.memory_space<vmem>>, vector<16x128xf32>
    tpu.vector_store %arg8[%c64, %c0_25], %110 {strides = array<i32>} : memref<128x128xf32, #tpu.memory_space<vmem>>, vector<16x128xf32>,
    %112 = vector.extract_strided_slice %0 {offsets = [5, 0], sizes = [1, 128], strides = [1, 1]} : vector<8x128xi32> to vector<1x128xi32>
    %113 = vector.broadcast %112 : vector<1x128xi32> to vector<40x128xi32>
    %114 = arith.cmpi eq, %113, %46 : vector<40x128xi32>
    %115 = arith.extui %114 : vector<40x128xi1> to vector<40x128xi32>
    %116 = arith.sitofp %115 : vector<40x128xi32> to vector<40x128xf32>
    %117 = vector.extract_strided_slice %36 {offsets = [5, 0, 0], sizes = [1, 16, 40], strides = [1, 1, 1]} : vector<8x16x40xf32> to vector<1x16x40xf32>
    %118 = vector.shape_cast %117 : vector<1x16x40xf32> to vector<16x40xf32>
    %cst_26 = arith.constant dense<0.000000e+00> : vector<16x128xf32>
    %119 = tpu.matmul %118, %116, %cst_26 {dimension_numbers = #tpu.dot_dimension_numbers<[1], [0], [0], [1], [0, 0, 1, 1], [], []>} : vector<16x40xf32>, vector<40x128xf32>, vector<16x128xf32> -> vector<16x128xf32>
    %120 = vector.extract_strided_slice %45 {offsets = [5, 0, 0], sizes = [1, 16, 1], strides = [1, 1, 1]} : vector<8x16x1xf32> to vector<1x16x1xf32>
    %121 = vector.shape_cast %120 : vector<1x16x1xf32> to vector<16x1xf32>
    %122 = vector.broadcast %121 : vector<16x1xf32> to vector<16x128xf32>
    %123 = arith.subf %119, %122 : vector<16x128xf32>
    %c80 = arith.constant 80 : index
    %c0_27 = arith.constant 0 : index
    %124 = vector.load %arg8[%c80, %c0_27] : memref<128x128xf32, #tpu.memory_space<vmem>>, vector<16x128xf32>
    tpu.vector_store %arg8[%c80, %c0_27], %123 {strides = array<i32>} : memref<128x128xf32, #tpu.memory_space<vmem>>, vector<16x128xf32>,
    %125 = vector.extract_strided_slice %0 {offsets = [6, 0], sizes = [1, 128], strides = [1, 1]} : vector<8x128xi32> to vector<1x128xi32>
    %126 = vector.broadcast %125 : vector<1x128xi32> to vector<40x128xi32>
    %127 = arith.cmpi eq, %126, %46 : vector<40x128xi32>
    %128 = arith.extui %127 : vector<40x128xi1> to vector<40x128xi32>
    %129 = arith.sitofp %128 : vector<40x128xi32> to vector<40x128xf32>
    %130 = vector.extract_strided_slice %36 {offsets = [6, 0, 0], sizes = [1, 16, 40], strides = [1, 1, 1]} : vector<8x16x40xf32> to vector<1x16x40xf32>
    %131 = vector.shape_cast %130 : vector<1x16x40xf32> to vector<16x40xf32>
    %cst_28 = arith.constant dense<0.000000e+00> : vector<16x128xf32>
    %132 = tpu.matmul %131, %129, %cst_28 {dimension_numbers = #tpu.dot_dimension_numbers<[1], [0], [0], [1], [0, 0, 1, 1], [], []>} : vector<16x40xf32>, vector<40x128xf32>, vector<16x128xf32> -> vector<16x128xf32>
    %133 = vector.extract_strided_slice %45 {offsets = [6, 0, 0], sizes = [1, 16, 1], strides = [1, 1, 1]} : vector<8x16x1xf32> to vector<1x16x1xf32>
    %134 = vector.shape_cast %133 : vector<1x16x1xf32> to vector<16x1xf32>
    %135 = vector.broadcast %134 : vector<16x1xf32> to vector<16x128xf32>
    %136 = arith.subf %132, %135 : vector<16x128xf32>
    %c96 = arith.constant 96 : index
    %c0_29 = arith.constant 0 : index
    %137 = vector.load %arg8[%c96, %c0_29] : memref<128x128xf32, #tpu.memory_space<vmem>>, vector<16x128xf32>
    tpu.vector_store %arg8[%c96, %c0_29], %136 {strides = array<i32>} : memref<128x128xf32, #tpu.memory_space<vmem>>, vector<16x128xf32>,
    %138 = vector.extract_strided_slice %0 {offsets = [7, 0], sizes = [1, 128], strides = [1, 1]} : vector<8x128xi32> to vector<1x128xi32>
    %139 = vector.broadcast %138 : vector<1x128xi32> to vector<40x128xi32>
    %140 = arith.cmpi eq, %139, %46 : vector<40x128xi32>
    %141 = arith.extui %140 : vector<40x128xi1> to vector<40x128xi32>
    %142 = arith.sitofp %141 : vector<40x128xi32> to vector<40x128xf32>
    %143 = vector.extract_strided_slice %36 {offsets = [7, 0, 0], sizes = [1, 16, 40], strides = [1, 1, 1]} : vector<8x16x40xf32> to vector<1x16x40xf32>
    %144 = vector.shape_cast %143 : vector<1x16x40xf32> to vector<16x40xf32>
    %cst_30 = arith.constant dense<0.000000e+00> : vector<16x128xf32>
    %145 = tpu.matmul %144, %142, %cst_30 {dimension_numbers = #tpu.dot_dimension_numbers<[1], [0], [0], [1], [0, 0, 1, 1], [], []>} : vector<16x40xf32>, vector<40x128xf32>, vector<16x128xf32> -> vector<16x128xf32>
    %146 = vector.extract_strided_slice %45 {offsets = [7, 0, 0], sizes = [1, 16, 1], strides = [1, 1, 1]} : vector<8x16x1xf32> to vector<1x16x1xf32>
    %147 = vector.shape_cast %146 : vector<1x16x1xf32> to vector<16x1xf32>
    %148 = vector.broadcast %147 : vector<16x1xf32> to vector<16x128xf32>
    %149 = arith.subf %145, %148 : vector<16x128xf32>
    %c112 = arith.constant 112 : index
    %c0_31 = arith.constant 0 : index
    %150 = vector.load %arg8[%c112, %c0_31] : memref<128x128xf32, #tpu.memory_space<vmem>>, vector<16x128xf32>
    tpu.vector_store %arg8[%c112, %c0_31], %149 {strides = array<i32>} : memref<128x128xf32, #tpu.memory_space<vmem>>, vector<16x128xf32>,
    %c0_32 = arith.constant 0 : index
    %c0_33 = arith.constant 0 : index
    %151 = tpu.strided_load %arg8[%c0_32, %c0_33] {strides = array<i32: 16, 1>} : memref<128x128xf32, #tpu.memory_space<vmem>>, vector<8x128xf32>
    %c0_34 = arith.constant 0 : index
    %c0_35 = arith.constant 0 : index
    %c0_36 = arith.constant 0 : index
    %152 = vector.load %arg9[%c0_34, %c0_35, %c0_36] : memref<16x8x128xf32, #tpu.memory_space<vmem>>, vector<1x8x128xf32>
    %153 = vector.shape_cast %152 : vector<1x8x128xf32> to vector<8x128xf32>
    %154 = vector.shape_cast %151 : vector<8x128xf32> to vector<1x8x128xf32>
    tpu.vector_store %arg9[%c0_34, %c0_35, %c0_36], %154 {strides = array<i32>} : memref<16x8x128xf32, #tpu.memory_space<vmem>>, vector<1x8x128xf32>,
    %c1 = arith.constant 1 : index
    %c0_37 = arith.constant 0 : index
    %155 = tpu.strided_load %arg8[%c1, %c0_37] {strides = array<i32: 16, 1>} : memref<128x128xf32, #tpu.memory_space<vmem>>, vector<8x128xf32>
    %c1_38 = arith.constant 1 : index
    %c0_39 = arith.constant 0 : index
    %c0_40 = arith.constant 0 : index
    %156 = vector.load %arg9[%c1_38, %c0_39, %c0_40] : memref<16x8x128xf32, #tpu.memory_space<vmem>>, vector<1x8x128xf32>
    %157 = vector.shape_cast %156 : vector<1x8x128xf32> to vector<8x128xf32>
    %158 = vector.shape_cast %155 : vector<8x128xf32> to vector<1x8x128xf32>
    tpu.vector_store %arg9[%c1_38, %c0_39, %c0_40], %158 {strides = array<i32>} : memref<16x8x128xf32, #tpu.memory_space<vmem>>, vector<1x8x128xf32>,
    %c2 = arith.constant 2 : index
    %c0_41 = arith.constant 0 : index
    %159 = tpu.strided_load %arg8[%c2, %c0_41] {strides = array<i32: 16, 1>} : memref<128x128xf32, #tpu.memory_space<vmem>>, vector<8x128xf32>
    %c2_42 = arith.constant 2 : index
    %c0_43 = arith.constant 0 : index
    %c0_44 = arith.constant 0 : index
    %160 = vector.load %arg9[%c2_42, %c0_43, %c0_44] : memref<16x8x128xf32, #tpu.memory_space<vmem>>, vector<1x8x128xf32>
    %161 = vector.shape_cast %160 : vector<1x8x128xf32> to vector<8x128xf32>
    %162 = vector.shape_cast %159 : vector<8x128xf32> to vector<1x8x128xf32>
    tpu.vector_store %arg9[%c2_42, %c0_43, %c0_44], %162 {strides = array<i32>} : memref<16x8x128xf32, #tpu.memory_space<vmem>>, vector<1x8x128xf32>,
    %c3 = arith.constant 3 : index
    %c0_45 = arith.constant 0 : index
    %163 = tpu.strided_load %arg8[%c3, %c0_45] {strides = array<i32: 16, 1>} : memref<128x128xf32, #tpu.memory_space<vmem>>, vector<8x128xf32>
    %c3_46 = arith.constant 3 : index
    %c0_47 = arith.constant 0 : index
    %c0_48 = arith.constant 0 : index
    %164 = vector.load %arg9[%c3_46, %c0_47, %c0_48] : memref<16x8x128xf32, #tpu.memory_space<vmem>>, vector<1x8x128xf32>
    %165 = vector.shape_cast %164 : vector<1x8x128xf32> to vector<8x128xf32>
    %166 = vector.shape_cast %163 : vector<8x128xf32> to vector<1x8x128xf32>
    tpu.vector_store %arg9[%c3_46, %c0_47, %c0_48], %166 {strides = array<i32>} : memref<16x8x128xf32, #tpu.memory_space<vmem>>, vector<1x8x128xf32>,
    %c4 = arith.constant 4 : index
    %c0_49 = arith.constant 0 : index
    %167 = tpu.strided_load %arg8[%c4, %c0_49] {strides = array<i32: 16, 1>} : memref<128x128xf32, #tpu.memory_space<vmem>>, vector<8x128xf32>
    %c4_50 = arith.constant 4 : index
    %c0_51 = arith.constant 0 : index
    %c0_52 = arith.constant 0 : index
    %168 = vector.load %arg9[%c4_50, %c0_51, %c0_52] : memref<16x8x128xf32, #tpu.memory_space<vmem>>, vector<1x8x128xf32>
    %169 = vector.shape_cast %168 : vector<1x8x128xf32> to vector<8x128xf32>
    %170 = vector.shape_cast %167 : vector<8x128xf32> to vector<1x8x128xf32>
    tpu.vector_store %arg9[%c4_50, %c0_51, %c0_52], %170 {strides = array<i32>} : memref<16x8x128xf32, #tpu.memory_space<vmem>>, vector<1x8x128xf32>,
    %c5 = arith.constant 5 : index
    %c0_53 = arith.constant 0 : index
    %171 = tpu.strided_load %arg8[%c5, %c0_53] {strides = array<i32: 16, 1>} : memref<128x128xf32, #tpu.memory_space<vmem>>, vector<8x128xf32>
    %c5_54 = arith.constant 5 : index
    %c0_55 = arith.constant 0 : index
    %c0_56 = arith.constant 0 : index
    %172 = vector.load %arg9[%c5_54, %c0_55, %c0_56] : memref<16x8x128xf32, #tpu.memory_space<vmem>>, vector<1x8x128xf32>
    %173 = vector.shape_cast %172 : vector<1x8x128xf32> to vector<8x128xf32>
    %174 = vector.shape_cast %171 : vector<8x128xf32> to vector<1x8x128xf32>
    tpu.vector_store %arg9[%c5_54, %c0_55, %c0_56], %174 {strides = array<i32>} : memref<16x8x128xf32, #tpu.memory_space<vmem>>, vector<1x8x128xf32>,
    %c6 = arith.constant 6 : index
    %c0_57 = arith.constant 0 : index
    %175 = tpu.strided_load %arg8[%c6, %c0_57] {strides = array<i32: 16, 1>} : memref<128x128xf32, #tpu.memory_space<vmem>>, vector<8x128xf32>
    %c6_58 = arith.constant 6 : index
    %c0_59 = arith.constant 0 : index
    %c0_60 = arith.constant 0 : index
    %176 = vector.load %arg9[%c6_58, %c0_59, %c0_60] : memref<16x8x128xf32, #tpu.memory_space<vmem>>, vector<1x8x128xf32>
    %177 = vector.shape_cast %176 : vector<1x8x128xf32> to vector<8x128xf32>
    %178 = vector.shape_cast %175 : vector<8x128xf32> to vector<1x8x128xf32>
    tpu.vector_store %arg9[%c6_58, %c0_59, %c0_60], %178 {strides = array<i32>} : memref<16x8x128xf32, #tpu.memory_space<vmem>>, vector<1x8x128xf32>,
    %c7 = arith.constant 7 : index
    %c0_61 = arith.constant 0 : index
    %179 = tpu.strided_load %arg8[%c7, %c0_61] {strides = array<i32: 16, 1>} : memref<128x128xf32, #tpu.memory_space<vmem>>, vector<8x128xf32>
    %c7_62 = arith.constant 7 : index
    %c0_63 = arith.constant 0 : index
    %c0_64 = arith.constant 0 : index
    %180 = vector.load %arg9[%c7_62, %c0_63, %c0_64] : memref<16x8x128xf32, #tpu.memory_space<vmem>>, vector<1x8x128xf32>
    %181 = vector.shape_cast %180 : vector<1x8x128xf32> to vector<8x128xf32>
    %182 = vector.shape_cast %179 : vector<8x128xf32> to vector<1x8x128xf32>
    tpu.vector_store %arg9[%c7_62, %c0_63, %c0_64], %182 {strides = array<i32>} : memref<16x8x128xf32, #tpu.memory_space<vmem>>, vector<1x8x128xf32>,
    %c8 = arith.constant 8 : index
    %c0_65 = arith.constant 0 : index
    %183 = tpu.strided_load %arg8[%c8, %c0_65] {strides = array<i32: 16, 1>} : memref<128x128xf32, #tpu.memory_space<vmem>>, vector<8x128xf32>
    %c8_66 = arith.constant 8 : index
    %c0_67 = arith.constant 0 : index
    %c0_68 = arith.constant 0 : index
    %184 = vector.load %arg9[%c8_66, %c0_67, %c0_68] : memref<16x8x128xf32, #tpu.memory_space<vmem>>, vector<1x8x128xf32>
    %185 = vector.shape_cast %184 : vector<1x8x128xf32> to vector<8x128xf32>
    %186 = vector.shape_cast %183 : vector<8x128xf32> to vector<1x8x128xf32>
    tpu.vector_store %arg9[%c8_66, %c0_67, %c0_68], %186 {strides = array<i32>} : memref<16x8x128xf32, #tpu.memory_space<vmem>>, vector<1x8x128xf32>,
    %c9 = arith.constant 9 : index
    %c0_69 = arith.constant 0 : index
    %187 = tpu.strided_load %arg8[%c9, %c0_69] {strides = array<i32: 16, 1>} : memref<128x128xf32, #tpu.memory_space<vmem>>, vector<8x128xf32>
    %c9_70 = arith.constant 9 : index
    %c0_71 = arith.constant 0 : index
    %c0_72 = arith.constant 0 : index
    %188 = vector.load %arg9[%c9_70, %c0_71, %c0_72] : memref<16x8x128xf32, #tpu.memory_space<vmem>>, vector<1x8x128xf32>
    %189 = vector.shape_cast %188 : vector<1x8x128xf32> to vector<8x128xf32>
    %190 = vector.shape_cast %187 : vector<8x128xf32> to vector<1x8x128xf32>
    tpu.vector_store %arg9[%c9_70, %c0_71, %c0_72], %190 {strides = array<i32>} : memref<16x8x128xf32, #tpu.memory_space<vmem>>, vector<1x8x128xf32>,
    %c10 = arith.constant 10 : index
    %c0_73 = arith.constant 0 : index
    %191 = tpu.strided_load %arg8[%c10, %c0_73] {strides = array<i32: 16, 1>} : memref<128x128xf32, #tpu.memory_space<vmem>>, vector<8x128xf32>
    %c10_74 = arith.constant 10 : index
    %c0_75 = arith.constant 0 : index
    %c0_76 = arith.constant 0 : index
    %192 = vector.load %arg9[%c10_74, %c0_75, %c0_76] : memref<16x8x128xf32, #tpu.memory_space<vmem>>, vector<1x8x128xf32>
    %193 = vector.shape_cast %192 : vector<1x8x128xf32> to vector<8x128xf32>
    %194 = vector.shape_cast %191 : vector<8x128xf32> to vector<1x8x128xf32>
    tpu.vector_store %arg9[%c10_74, %c0_75, %c0_76], %194 {strides = array<i32>} : memref<16x8x128xf32, #tpu.memory_space<vmem>>, vector<1x8x128xf32>,
    %c11 = arith.constant 11 : index
    %c0_77 = arith.constant 0 : index
    %195 = tpu.strided_load %arg8[%c11, %c0_77] {strides = array<i32: 16, 1>} : memref<128x128xf32, #tpu.memory_space<vmem>>, vector<8x128xf32>
    %c11_78 = arith.constant 11 : index
    %c0_79 = arith.constant 0 : index
    %c0_80 = arith.constant 0 : index
    %196 = vector.load %arg9[%c11_78, %c0_79, %c0_80] : memref<16x8x128xf32, #tpu.memory_space<vmem>>, vector<1x8x128xf32>
    %197 = vector.shape_cast %196 : vector<1x8x128xf32> to vector<8x128xf32>
    %198 = vector.shape_cast %195 : vector<8x128xf32> to vector<1x8x128xf32>
    tpu.vector_store %arg9[%c11_78, %c0_79, %c0_80], %198 {strides = array<i32>} : memref<16x8x128xf32, #tpu.memory_space<vmem>>, vector<1x8x128xf32>,
    %c12 = arith.constant 12 : index
    %c0_81 = arith.constant 0 : index
    %199 = tpu.strided_load %arg8[%c12, %c0_81] {strides = array<i32: 16, 1>} : memref<128x128xf32, #tpu.memory_space<vmem>>, vector<8x128xf32>
    %c12_82 = arith.constant 12 : index
    %c0_83 = arith.constant 0 : index
    %c0_84 = arith.constant 0 : index
    %200 = vector.load %arg9[%c12_82, %c0_83, %c0_84] : memref<16x8x128xf32, #tpu.memory_space<vmem>>, vector<1x8x128xf32>
    %201 = vector.shape_cast %200 : vector<1x8x128xf32> to vector<8x128xf32>
    %202 = vector.shape_cast %199 : vector<8x128xf32> to vector<1x8x128xf32>
    tpu.vector_store %arg9[%c12_82, %c0_83, %c0_84], %202 {strides = array<i32>} : memref<16x8x128xf32, #tpu.memory_space<vmem>>, vector<1x8x128xf32>,
    %c13 = arith.constant 13 : index
    %c0_85 = arith.constant 0 : index
    %203 = tpu.strided_load %arg8[%c13, %c0_85] {strides = array<i32: 16, 1>} : memref<128x128xf32, #tpu.memory_space<vmem>>, vector<8x128xf32>
    %c13_86 = arith.constant 13 : index
    %c0_87 = arith.constant 0 : index
    %c0_88 = arith.constant 0 : index
    %204 = vector.load %arg9[%c13_86, %c0_87, %c0_88] : memref<16x8x128xf32, #tpu.memory_space<vmem>>, vector<1x8x128xf32>
    %205 = vector.shape_cast %204 : vector<1x8x128xf32> to vector<8x128xf32>
    %206 = vector.shape_cast %203 : vector<8x128xf32> to vector<1x8x128xf32>
    tpu.vector_store %arg9[%c13_86, %c0_87, %c0_88], %206 {strides = array<i32>} : memref<16x8x128xf32, #tpu.memory_space<vmem>>, vector<1x8x128xf32>,
    %c14 = arith.constant 14 : index
    %c0_89 = arith.constant 0 : index
    %207 = tpu.strided_load %arg8[%c14, %c0_89] {strides = array<i32: 16, 1>} : memref<128x128xf32, #tpu.memory_space<vmem>>, vector<8x128xf32>
    %c14_90 = arith.constant 14 : index
    %c0_91 = arith.constant 0 : index
    %c0_92 = arith.constant 0 : index
    %208 = vector.load %arg9[%c14_90, %c0_91, %c0_92] : memref<16x8x128xf32, #tpu.memory_space<vmem>>, vector<1x8x128xf32>
    %209 = vector.shape_cast %208 : vector<1x8x128xf32> to vector<8x128xf32>
    %210 = vector.shape_cast %207 : vector<8x128xf32> to vector<1x8x128xf32>
    tpu.vector_store %arg9[%c14_90, %c0_91, %c0_92], %210 {strides = array<i32>} : memref<16x8x128xf32, #tpu.memory_space<vmem>>, vector<1x8x128xf32>,
    %c15 = arith.constant 15 : index
    %c0_93 = arith.constant 0 : index
    %211 = tpu.strided_load %arg8[%c15, %c0_93] {strides = array<i32: 16, 1>} : memref<128x128xf32, #tpu.memory_space<vmem>>, vector<8x128xf32>
    %c15_94 = arith.constant 15 : index
    %c0_95 = arith.constant 0 : index
    %c0_96 = arith.constant 0 : index
    %212 = vector.load %arg9[%c15_94, %c0_95, %c0_96] : memref<16x8x128xf32, #tpu.memory_space<vmem>>, vector<1x8x128xf32>
    %213 = vector.shape_cast %212 : vector<1x8x128xf32> to vector<8x128xf32>
    %214 = vector.shape_cast %211 : vector<8x128xf32> to vector<1x8x128xf32>
    tpu.vector_store %arg9[%c15_94, %c0_95, %c0_96], %214 {strides = array<i32>} : memref<16x8x128xf32, #tpu.memory_space<vmem>>, vector<1x8x128xf32>,
    %c1_i32_97 = arith.constant 1 : i32
    %215 = vector.broadcast %c1_i32_97 : i32 to vector<8x128xi32>
    %216 = arith.cmpi sle, %2, %215 : vector<8x128xi32>
    %217 = arith.andi %216, %8 : vector<8x128xi1>
    %c0_98 = arith.constant 0 : index
    %c0_99 = arith.constant 0 : index
    %c0_100 = arith.constant 0 : index
    %218 = vector.load %arg9[%c0_98, %c0_99, %c0_100] : memref<16x8x128xf32, #tpu.memory_space<vmem>>, vector<1x8x128xf32>
    %219 = vector.shape_cast %218 : vector<1x8x128xf32> to vector<8x128xf32>
    %220 = arith.select %217, %219, %35 : vector<8x128xi1>, vector<8x128xf32>
    %c1_i32_101 = arith.constant 1 : i32
    %c1_i32_102 = arith.constant 1 : i32
    %221 = tpu.dynamic_rotate %220 by %c1_i32_102 dim 1 : vector<8x128xf32>, i32 -> vector<8x128xf32>
    %222 = arith.select %34, %221, %35 : vector<8x128xi1>, vector<8x128xf32>
    %c2_i32_103 = arith.constant 2 : i32
    %223 = tpu.dynamic_rotate %220 by %c2_i32_103 dim 1 : vector<8x128xf32>, i32 -> vector<8x128xf32>
    %224 = arith.select %22, %223, %35 : vector<8x128xi1>, vector<8x128xf32>
    %225 = arith.maximumf %220, %222 : vector<8x128xf32>
    %226 = arith.maximumf %225, %224 : vector<8x128xf32>
    %227 = arith.subf %220, %226 : vector<8x128xf32>
    %228 = math.exp %227 : vector<8x128xf32>
    %229 = arith.subf %222, %226 : vector<8x128xf32>
    %230 = math.exp %229 : vector<8x128xf32>
    %231 = arith.addf %228, %230 : vector<8x128xf32>
    %232 = arith.subf %224, %226 : vector<8x128xf32>
    %233 = math.exp %232 : vector<8x128xf32>
    %234 = arith.addf %231, %233 : vector<8x128xf32>
    %235 = math.log %234 : vector<8x128xf32>
    %236 = arith.addf %226, %235 : vector<8x128xf32>
    %237 = arith.index_cast %c1_i32_101 : i32 to index
    %c0_104 = arith.constant 0 : index
    %c0_105 = arith.constant 0 : index
    %238 = vector.load %arg9[%237, %c0_104, %c0_105] : memref<16x8x128xf32, #tpu.memory_space<vmem>>, vector<1x8x128xf32>
    %239 = vector.shape_cast %238 : vector<1x8x128xf32> to vector<8x128xf32>
    %240 = arith.addf %236, %239 : vector<8x128xf32>
    %241 = arith.select %8, %240, %35 : vector<8x128xi1>, vector<8x128xf32>
    %c2_i32_106 = arith.constant 2 : i32
    %c1_i32_107 = arith.constant 1 : i32
    %242 = tpu.dynamic_rotate %241 by %c1_i32_107 dim 1 : vector<8x128xf32>, i32 -> vector<8x128xf32>
    %243 = arith.select %34, %242, %35 : vector<8x128xi1>, vector<8x128xf32>
    %c2_i32_108 = arith.constant 2 : i32
    %244 = tpu.dynamic_rotate %241 by %c2_i32_108 dim 1 : vector<8x128xf32>, i32 -> vector<8x128xf32>
    %245 = arith.select %22, %244, %35 : vector<8x128xi1>, vector<8x128xf32>
    %246 = arith.maximumf %241, %243 : vector<8x128xf32>
    %247 = arith.maximumf %246, %245 : vector<8x128xf32>
    %248 = arith.subf %241, %247 : vector<8x128xf32>
    %249 = math.exp %248 : vector<8x128xf32>
    %250 = arith.subf %243, %247 : vector<8x128xf32>
    %251 = math.exp %250 : vector<8x128xf32>
    %252 = arith.addf %249, %251 : vector<8x128xf32>
    %253 = arith.subf %245, %247 : vector<8x128xf32>
    %254 = math.exp %253 : vector<8x128xf32>
    %255 = arith.addf %252, %254 : vector<8x128xf32>
    %256 = math.log %255 : vector<8x128xf32>
    %257 = arith.addf %247, %256 : vector<8x128xf32>
    %258 = arith.index_cast %c2_i32_106 : i32 to index
    %c0_109 = arith.constant 0 : index
    %c0_110 = arith.constant 0 : index
    %259 = vector.load %arg9[%258, %c0_109, %c0_110] : memref<16x8x128xf32, #tpu.memory_space<vmem>>, vector<1x8x128xf32>
    %260 = vector.shape_cast %259 : vector<1x8x128xf32> to vector<8x128xf32>
    %261 = arith.addf %257, %260 : vector<8x128xf32>
    %262 = arith.select %8, %261, %35 : vector<8x128xi1>, vector<8x128xf32>
    %c3_i32 = arith.constant 3 : i32
    %c1_i32_111 = arith.constant 1 : i32
    %263 = tpu.dynamic_rotate %262 by %c1_i32_111 dim 1 : vector<8x128xf32>, i32 -> vector<8x128xf32>
    %264 = arith.select %34, %263, %35 : vector<8x128xi1>, vector<8x128xf32>
    %c2_i32_112 = arith.constant 2 : i32
    %265 = tpu.dynamic_rotate %262 by %c2_i32_112 dim 1 : vector<8x128xf32>, i32 -> vector<8x128xf32>
    %266 = arith.select %22, %265, %35 : vector<8x128xi1>, vector<8x128xf32>
    %267 = arith.maximumf %262, %264 : vector<8x128xf32>
    %268 = arith.maximumf %267, %266 : vector<8x128xf32>
    %269 = arith.subf %262, %268 : vector<8x128xf32>
    %270 = math.exp %269 : vector<8x128xf32>
    %271 = arith.subf %264, %268 : vector<8x128xf32>
    %272 = math.exp %271 : vector<8x128xf32>
    %273 = arith.addf %270, %272 : vector<8x128xf32>
    %274 = arith.subf %266, %268 : vector<8x128xf32>
    %275 = math.exp %274 : vector<8x128xf32>
    %276 = arith.addf %273, %275 : vector<8x128xf32>
    %277 = math.log %276 : vector<8x128xf32>
    %278 = arith.addf %268, %277 : vector<8x128xf32>
    %279 = arith.index_cast %c3_i32 : i32 to index
    %c0_113 = arith.constant 0 : index
    %c0_114 = arith.constant 0 : index
    %280 = vector.load %arg9[%279, %c0_113, %c0_114] : memref<16x8x128xf32, #tpu.memory_space<vmem>>, vector<1x8x128xf32>
    %281 = vector.shape_cast %280 : vector<1x8x128xf32> to vector<8x128xf32>
    %282 = arith.addf %278, %281 : vector<8x128xf32>
    %283 = arith.select %8, %282, %35 : vector<8x128xi1>, vector<8x128xf32>
    %c4_i32 = arith.constant 4 : i32
    %c1_i32_115 = arith.constant 1 : i32
    %284 = tpu.dynamic_rotate %283 by %c1_i32_115 dim 1 : vector<8x128xf32>, i32 -> vector<8x128xf32>
    %285 = arith.select %34, %284, %35 : vector<8x128xi1>, vector<8x128xf32>
    %c2_i32_116 = arith.constant 2 : i32
    %286 = tpu.dynamic_rotate %283 by %c2_i32_116 dim 1 : vector<8x128xf32>, i32 -> vector<8x128xf32>
    %287 = arith.select %22, %286, %35 : vector<8x128xi1>, vector<8x128xf32>
    %288 = arith.maximumf %283, %285 : vector<8x128xf32>
    %289 = arith.maximumf %288, %287 : vector<8x128xf32>
    %290 = arith.subf %283, %289 : vector<8x128xf32>
    %291 = math.exp %290 : vector<8x128xf32>
    %292 = arith.subf %285, %289 : vector<8x128xf32>
    %293 = math.exp %292 : vector<8x128xf32>
    %294 = arith.addf %291, %293 : vector<8x128xf32>
    %295 = arith.subf %287, %289 : vector<8x128xf32>
    %296 = math.exp %295 : vector<8x128xf32>
    %297 = arith.addf %294, %296 : vector<8x128xf32>
    %298 = math.log %297 : vector<8x128xf32>
    %299 = arith.addf %289, %298 : vector<8x128xf32>
    %300 = arith.index_cast %c4_i32 : i32 to index
    %c0_117 = arith.constant 0 : index
    %c0_118 = arith.constant 0 : index
    %301 = vector.load %arg9[%300, %c0_117, %c0_118] : memref<16x8x128xf32, #tpu.memory_space<vmem>>, vector<1x8x128xf32>
    %302 = vector.shape_cast %301 : vector<1x8x128xf32> to vector<8x128xf32>
    %303 = arith.addf %299, %302 : vector<8x128xf32>
    %304 = arith.select %8, %303, %35 : vector<8x128xi1>, vector<8x128xf32>
    %c5_i32 = arith.constant 5 : i32
    %c1_i32_119 = arith.constant 1 : i32
    %305 = tpu.dynamic_rotate %304 by %c1_i32_119 dim 1 : vector<8x128xf32>, i32 -> vector<8x128xf32>
    %306 = arith.select %34, %305, %35 : vector<8x128xi1>, vector<8x128xf32>
    %c2_i32_120 = arith.constant 2 : i32
    %307 = tpu.dynamic_rotate %304 by %c2_i32_120 dim 1 : vector<8x128xf32>, i32 -> vector<8x128xf32>
    %308 = arith.select %22, %307, %35 : vector<8x128xi1>, vector<8x128xf32>
    %309 = arith.maximumf %304, %306 : vector<8x128xf32>
    %310 = arith.maximumf %309, %308 : vector<8x128xf32>
    %311 = arith.subf %304, %310 : vector<8x128xf32>
    %312 = math.exp %311 : vector<8x128xf32>
    %313 = arith.subf %306, %310 : vector<8x128xf32>
    %314 = math.exp %313 : vector<8x128xf32>
    %315 = arith.addf %312, %314 : vector<8x128xf32>
    %316 = arith.subf %308, %310 : vector<8x128xf32>
    %317 = math.exp %316 : vector<8x128xf32>
    %318 = arith.addf %315, %317 : vector<8x128xf32>
    %319 = math.log %318 : vector<8x128xf32>
    %320 = arith.addf %310, %319 : vector<8x128xf32>
    %321 = arith.index_cast %c5_i32 : i32 to index
    %c0_121 = arith.constant 0 : index
    %c0_122 = arith.constant 0 : index
    %322 = vector.load %arg9[%321, %c0_121, %c0_122] : memref<16x8x128xf32, #tpu.memory_space<vmem>>, vector<1x8x128xf32>
    %323 = vector.shape_cast %322 : vector<1x8x128xf32> to vector<8x128xf32>
    %324 = arith.addf %320, %323 : vector<8x128xf32>
    %325 = arith.select %8, %324, %35 : vector<8x128xi1>, vector<8x128xf32>
    %c6_i32 = arith.constant 6 : i32
    %c1_i32_123 = arith.constant 1 : i32
    %326 = tpu.dynamic_rotate %325 by %c1_i32_123 dim 1 : vector<8x128xf32>, i32 -> vector<8x128xf32>
    %327 = arith.select %34, %326, %35 : vector<8x128xi1>, vector<8x128xf32>
    %c2_i32_124 = arith.constant 2 : i32
    %328 = tpu.dynamic_rotate %325 by %c2_i32_124 dim 1 : vector<8x128xf32>, i32 -> vector<8x128xf32>
    %329 = arith.select %22, %328, %35 : vector<8x128xi1>, vector<8x128xf32>
    %330 = arith.maximumf %325, %327 : vector<8x128xf32>
    %331 = arith.maximumf %330, %329 : vector<8x128xf32>
    %332 = arith.subf %325, %331 : vector<8x128xf32>
    %333 = math.exp %332 : vector<8x128xf32>
    %334 = arith.subf %327, %331 : vector<8x128xf32>
    %335 = math.exp %334 : vector<8x128xf32>
    %336 = arith.addf %333, %335 : vector<8x128xf32>
    %337 = arith.subf %329, %331 : vector<8x128xf32>
    %338 = math.exp %337 : vector<8x128xf32>
    %339 = arith.addf %336, %338 : vector<8x128xf32>
    %340 = math.log %339 : vector<8x128xf32>
    %341 = arith.addf %331, %340 : vector<8x128xf32>
    %342 = arith.index_cast %c6_i32 : i32 to index
    %c0_125 = arith.constant 0 : index
    %c0_126 = arith.constant 0 : index
    %343 = vector.load %arg9[%342, %c0_125, %c0_126] : memref<16x8x128xf32, #tpu.memory_space<vmem>>, vector<1x8x128xf32>
    %344 = vector.shape_cast %343 : vector<1x8x128xf32> to vector<8x128xf32>
    %345 = arith.addf %341, %344 : vector<8x128xf32>
    %346 = arith.select %8, %345, %35 : vector<8x128xi1>, vector<8x128xf32>
    %c7_i32 = arith.constant 7 : i32
    %c1_i32_127 = arith.constant 1 : i32
    %347 = tpu.dynamic_rotate %346 by %c1_i32_127 dim 1 : vector<8x128xf32>, i32 -> vector<8x128xf32>
    %348 = arith.select %34, %347, %35 : vector<8x128xi1>, vector<8x128xf32>
    %c2_i32_128 = arith.constant 2 : i32
    %349 = tpu.dynamic_rotate %346 by %c2_i32_128 dim 1 : vector<8x128xf32>, i32 -> vector<8x128xf32>
    %350 = arith.select %22, %349, %35 : vector<8x128xi1>, vector<8x128xf32>
    %351 = arith.maximumf %346, %348 : vector<8x128xf32>
    %352 = arith.maximumf %351, %350 : vector<8x128xf32>
    %353 = arith.subf %346, %352 : vector<8x128xf32>
    %354 = math.exp %353 : vector<8x128xf32>
    %355 = arith.subf %348, %352 : vector<8x128xf32>
    %356 = math.exp %355 : vector<8x128xf32>
    %357 = arith.addf %354, %356 : vector<8x128xf32>
    %358 = arith.subf %350, %352 : vector<8x128xf32>
    %359 = math.exp %358 : vector<8x128xf32>
    %360 = arith.addf %357, %359 : vector<8x128xf32>
    %361 = math.log %360 : vector<8x128xf32>
    %362 = arith.addf %352, %361 : vector<8x128xf32>
    %363 = arith.index_cast %c7_i32 : i32 to index
    %c0_129 = arith.constant 0 : index
    %c0_130 = arith.constant 0 : index
    %364 = vector.load %arg9[%363, %c0_129, %c0_130] : memref<16x8x128xf32, #tpu.memory_space<vmem>>, vector<1x8x128xf32>
    %365 = vector.shape_cast %364 : vector<1x8x128xf32> to vector<8x128xf32>
    %366 = arith.addf %362, %365 : vector<8x128xf32>
    %367 = arith.select %8, %366, %35 : vector<8x128xi1>, vector<8x128xf32>
    %c8_i32 = arith.constant 8 : i32
    %c1_i32_131 = arith.constant 1 : i32
    %368 = tpu.dynamic_rotate %367 by %c1_i32_131 dim 1 : vector<8x128xf32>, i32 -> vector<8x128xf32>
    %369 = arith.select %34, %368, %35 : vector<8x128xi1>, vector<8x128xf32>
    %c2_i32_132 = arith.constant 2 : i32
    %370 = tpu.dynamic_rotate %367 by %c2_i32_132 dim 1 : vector<8x128xf32>, i32 -> vector<8x128xf32>
    %371 = arith.select %22, %370, %35 : vector<8x128xi1>, vector<8x128xf32>
    %372 = arith.maximumf %367, %369 : vector<8x128xf32>
    %373 = arith.maximumf %372, %371 : vector<8x128xf32>
    %374 = arith.subf %367, %373 : vector<8x128xf32>
    %375 = math.exp %374 : vector<8x128xf32>
    %376 = arith.subf %369, %373 : vector<8x128xf32>
    %377 = math.exp %376 : vector<8x128xf32>
    %378 = arith.addf %375, %377 : vector<8x128xf32>
    %379 = arith.subf %371, %373 : vector<8x128xf32>
    %380 = math.exp %379 : vector<8x128xf32>
    %381 = arith.addf %378, %380 : vector<8x128xf32>
    %382 = math.log %381 : vector<8x128xf32>
    %383 = arith.addf %373, %382 : vector<8x128xf32>
    %384 = arith.index_cast %c8_i32 : i32 to index
    %c0_133 = arith.constant 0 : index
    %c0_134 = arith.constant 0 : index
    %385 = vector.load %arg9[%384, %c0_133, %c0_134] : memref<16x8x128xf32, #tpu.memory_space<vmem>>, vector<1x8x128xf32>
    %386 = vector.shape_cast %385 : vector<1x8x128xf32> to vector<8x128xf32>
    %387 = arith.addf %383, %386 : vector<8x128xf32>
    %388 = arith.select %8, %387, %35 : vector<8x128xi1>, vector<8x128xf32>
    %c9_i32 = arith.constant 9 : i32
    %c1_i32_135 = arith.constant 1 : i32
    %389 = tpu.dynamic_rotate %388 by %c1_i32_135 dim 1 : vector<8x128xf32>, i32 -> vector<8x128xf32>
    %390 = arith.select %34, %389, %35 : vector<8x128xi1>, vector<8x128xf32>
    %c2_i32_136 = arith.constant 2 : i32
    %391 = tpu.dynamic_rotate %388 by %c2_i32_136 dim 1 : vector<8x128xf32>, i32 -> vector<8x128xf32>
    %392 = arith.select %22, %391, %35 : vector<8x128xi1>, vector<8x128xf32>
    %393 = arith.maximumf %388, %390 : vector<8x128xf32>
    %394 = arith.maximumf %393, %392 : vector<8x128xf32>
    %395 = arith.subf %388, %394 : vector<8x128xf32>
    %396 = math.exp %395 : vector<8x128xf32>
    %397 = arith.subf %390, %394 : vector<8x128xf32>
    %398 = math.exp %397 : vector<8x128xf32>
    %399 = arith.addf %396, %398 : vector<8x128xf32>
    %400 = arith.subf %392, %394 : vector<8x128xf32>
    %401 = math.exp %400 : vector<8x128xf32>
    %402 = arith.addf %399, %401 : vector<8x128xf32>
    %403 = math.log %402 : vector<8x128xf32>
    %404 = arith.addf %394, %403 : vector<8x128xf32>
    %405 = arith.index_cast %c9_i32 : i32 to index
    %c0_137 = arith.constant 0 : index
    %c0_138 = arith.constant 0 : index
    %406 = vector.load %arg9[%405, %c0_137, %c0_138] : memref<16x8x128xf32, #tpu.memory_space<vmem>>, vector<1x8x128xf32>
    %407 = vector.shape_cast %406 : vector<1x8x128xf32> to vector<8x128xf32>
    %408 = arith.addf %404, %407 : vector<8x128xf32>
    %409 = arith.select %8, %408, %35 : vector<8x128xi1>, vector<8x128xf32>
    %c10_i32 = arith.constant 10 : i32
    %c1_i32_139 = arith.constant 1 : i32
    %410 = tpu.dynamic_rotate %409 by %c1_i32_139 dim 1 : vector<8x128xf32>, i32 -> vector<8x128xf32>
    %411 = arith.select %34, %410, %35 : vector<8x128xi1>, vector<8x128xf32>
    %c2_i32_140 = arith.constant 2 : i32
    %412 = tpu.dynamic_rotate %409 by %c2_i32_140 dim 1 : vector<8x128xf32>, i32 -> vector<8x128xf32>
    %413 = arith.select %22, %412, %35 : vector<8x128xi1>, vector<8x128xf32>
    %414 = arith.maximumf %409, %411 : vector<8x128xf32>
    %415 = arith.maximumf %414, %413 : vector<8x128xf32>
    %416 = arith.subf %409, %415 : vector<8x128xf32>
    %417 = math.exp %416 : vector<8x128xf32>
    %418 = arith.subf %411, %415 : vector<8x128xf32>
    %419 = math.exp %418 : vector<8x128xf32>
    %420 = arith.addf %417, %419 : vector<8x128xf32>
    %421 = arith.subf %413, %415 : vector<8x128xf32>
    %422 = math.exp %421 : vector<8x128xf32>
    %423 = arith.addf %420, %422 : vector<8x128xf32>
    %424 = math.log %423 : vector<8x128xf32>
    %425 = arith.addf %415, %424 : vector<8x128xf32>
    %426 = arith.index_cast %c10_i32 : i32 to index
    %c0_141 = arith.constant 0 : index
    %c0_142 = arith.constant 0 : index
    %427 = vector.load %arg9[%426, %c0_141, %c0_142] : memref<16x8x128xf32, #tpu.memory_space<vmem>>, vector<1x8x128xf32>
    %428 = vector.shape_cast %427 : vector<1x8x128xf32> to vector<8x128xf32>
    %429 = arith.addf %425, %428 : vector<8x128xf32>
    %430 = arith.select %8, %429, %35 : vector<8x128xi1>, vector<8x128xf32>
    %c11_i32 = arith.constant 11 : i32
    %c1_i32_143 = arith.constant 1 : i32
    %431 = tpu.dynamic_rotate %430 by %c1_i32_143 dim 1 : vector<8x128xf32>, i32 -> vector<8x128xf32>
    %432 = arith.select %34, %431, %35 : vector<8x128xi1>, vector<8x128xf32>
    %c2_i32_144 = arith.constant 2 : i32
    %433 = tpu.dynamic_rotate %430 by %c2_i32_144 dim 1 : vector<8x128xf32>, i32 -> vector<8x128xf32>
    %434 = arith.select %22, %433, %35 : vector<8x128xi1>, vector<8x128xf32>
    %435 = arith.maximumf %430, %432 : vector<8x128xf32>
    %436 = arith.maximumf %435, %434 : vector<8x128xf32>
    %437 = arith.subf %430, %436 : vector<8x128xf32>
    %438 = math.exp %437 : vector<8x128xf32>
    %439 = arith.subf %432, %436 : vector<8x128xf32>
    %440 = math.exp %439 : vector<8x128xf32>
    %441 = arith.addf %438, %440 : vector<8x128xf32>
    %442 = arith.subf %434, %436 : vector<8x128xf32>
    %443 = math.exp %442 : vector<8x128xf32>
    %444 = arith.addf %441, %443 : vector<8x128xf32>
    %445 = math.log %444 : vector<8x128xf32>
    %446 = arith.addf %436, %445 : vector<8x128xf32>
    %447 = arith.index_cast %c11_i32 : i32 to index
    %c0_145 = arith.constant 0 : index
    %c0_146 = arith.constant 0 : index
    %448 = vector.load %arg9[%447, %c0_145, %c0_146] : memref<16x8x128xf32, #tpu.memory_space<vmem>>, vector<1x8x128xf32>
    %449 = vector.shape_cast %448 : vector<1x8x128xf32> to vector<8x128xf32>
    %450 = arith.addf %446, %449 : vector<8x128xf32>
    %451 = arith.select %8, %450, %35 : vector<8x128xi1>, vector<8x128xf32>
    %c12_i32 = arith.constant 12 : i32
    %c1_i32_147 = arith.constant 1 : i32
    %452 = tpu.dynamic_rotate %451 by %c1_i32_147 dim 1 : vector<8x128xf32>, i32 -> vector<8x128xf32>
    %453 = arith.select %34, %452, %35 : vector<8x128xi1>, vector<8x128xf32>
    %c2_i32_148 = arith.constant 2 : i32
    %454 = tpu.dynamic_rotate %451 by %c2_i32_148 dim 1 : vector<8x128xf32>, i32 -> vector<8x128xf32>
    %455 = arith.select %22, %454, %35 : vector<8x128xi1>, vector<8x128xf32>
    %456 = arith.maximumf %451, %453 : vector<8x128xf32>
    %457 = arith.maximumf %456, %455 : vector<8x128xf32>
    %458 = arith.subf %451, %457 : vector<8x128xf32>
    %459 = math.exp %458 : vector<8x128xf32>
    %460 = arith.subf %453, %457 : vector<8x128xf32>
    %461 = math.exp %460 : vector<8x128xf32>
    %462 = arith.addf %459, %461 : vector<8x128xf32>
    %463 = arith.subf %455, %457 : vector<8x128xf32>
    %464 = math.exp %463 : vector<8x128xf32>
    %465 = arith.addf %462, %464 : vector<8x128xf32>
    %466 = math.log %465 : vector<8x128xf32>
    %467 = arith.addf %457, %466 : vector<8x128xf32>
    %468 = arith.index_cast %c12_i32 : i32 to index
    %c0_149 = arith.constant 0 : index
    %c0_150 = arith.constant 0 : index
    %469 = vector.load %arg9[%468, %c0_149, %c0_150] : memref<16x8x128xf32, #tpu.memory_space<vmem>>, vector<1x8x128xf32>
    %470 = vector.shape_cast %469 : vector<1x8x128xf32> to vector<8x128xf32>
    %471 = arith.addf %467, %470 : vector<8x128xf32>
    %472 = arith.select %8, %471, %35 : vector<8x128xi1>, vector<8x128xf32>
    %c13_i32 = arith.constant 13 : i32
    %c1_i32_151 = arith.constant 1 : i32
    %473 = tpu.dynamic_rotate %472 by %c1_i32_151 dim 1 : vector<8x128xf32>, i32 -> vector<8x128xf32>
    %474 = arith.select %34, %473, %35 : vector<8x128xi1>, vector<8x128xf32>
    %c2_i32_152 = arith.constant 2 : i32
    %475 = tpu.dynamic_rotate %472 by %c2_i32_152 dim 1 : vector<8x128xf32>, i32 -> vector<8x128xf32>
    %476 = arith.select %22, %475, %35 : vector<8x128xi1>, vector<8x128xf32>
    %477 = arith.maximumf %472, %474 : vector<8x128xf32>
    %478 = arith.maximumf %477, %476 : vector<8x128xf32>
    %479 = arith.subf %472, %478 : vector<8x128xf32>
    %480 = math.exp %479 : vector<8x128xf32>
    %481 = arith.subf %474, %478 : vector<8x128xf32>
    %482 = math.exp %481 : vector<8x128xf32>
    %483 = arith.addf %480, %482 : vector<8x128xf32>
    %484 = arith.subf %476, %478 : vector<8x128xf32>
    %485 = math.exp %484 : vector<8x128xf32>
    %486 = arith.addf %483, %485 : vector<8x128xf32>
    %487 = math.log %486 : vector<8x128xf32>
    %488 = arith.addf %478, %487 : vector<8x128xf32>
    %489 = arith.index_cast %c13_i32 : i32 to index
    %c0_153 = arith.constant 0 : index
    %c0_154 = arith.constant 0 : index
    %490 = vector.load %arg9[%489, %c0_153, %c0_154] : memref<16x8x128xf32, #tpu.memory_space<vmem>>, vector<1x8x128xf32>
    %491 = vector.shape_cast %490 : vector<1x8x128xf32> to vector<8x128xf32>
    %492 = arith.addf %488, %491 : vector<8x128xf32>
    %493 = arith.select %8, %492, %35 : vector<8x128xi1>, vector<8x128xf32>
    %c14_i32 = arith.constant 14 : i32
    %c1_i32_155 = arith.constant 1 : i32
    %494 = tpu.dynamic_rotate %493 by %c1_i32_155 dim 1 : vector<8x128xf32>, i32 -> vector<8x128xf32>
    %495 = arith.select %34, %494, %35 : vector<8x128xi1>, vector<8x128xf32>
    %c2_i32_156 = arith.constant 2 : i32
    %496 = tpu.dynamic_rotate %493 by %c2_i32_156 dim 1 : vector<8x128xf32>, i32 -> vector<8x128xf32>
    %497 = arith.select %22, %496, %35 : vector<8x128xi1>, vector<8x128xf32>
    %498 = arith.maximumf %493, %495 : vector<8x128xf32>
    %499 = arith.maximumf %498, %497 : vector<8x128xf32>
    %500 = arith.subf %493, %499 : vector<8x128xf32>
    %501 = math.exp %500 : vector<8x128xf32>
    %502 = arith.subf %495, %499 : vector<8x128xf32>
    %503 = math.exp %502 : vector<8x128xf32>
    %504 = arith.addf %501, %503 : vector<8x128xf32>
    %505 = arith.subf %497, %499 : vector<8x128xf32>
    %506 = math.exp %505 : vector<8x128xf32>
    %507 = arith.addf %504, %506 : vector<8x128xf32>
    %508 = math.log %507 : vector<8x128xf32>
    %509 = arith.addf %499, %508 : vector<8x128xf32>
    %510 = arith.index_cast %c14_i32 : i32 to index
    %c0_157 = arith.constant 0 : index
    %c0_158 = arith.constant 0 : index
    %511 = vector.load %arg9[%510, %c0_157, %c0_158] : memref<16x8x128xf32, #tpu.memory_space<vmem>>, vector<1x8x128xf32>
    %512 = vector.shape_cast %511 : vector<1x8x128xf32> to vector<8x128xf32>
    %513 = arith.addf %509, %512 : vector<8x128xf32>
    %514 = arith.select %8, %513, %35 : vector<8x128xi1>, vector<8x128xf32>
    %c15_i32 = arith.constant 15 : i32
    %c1_i32_159 = arith.constant 1 : i32
    %515 = tpu.dynamic_rotate %514 by %c1_i32_159 dim 1 : vector<8x128xf32>, i32 -> vector<8x128xf32>
    %516 = arith.select %34, %515, %35 : vector<8x128xi1>, vector<8x128xf32>
    %c2_i32_160 = arith.constant 2 : i32
    %517 = tpu.dynamic_rotate %514 by %c2_i32_160 dim 1 : vector<8x128xf32>, i32 -> vector<8x128xf32>
    %518 = arith.select %22, %517, %35 : vector<8x128xi1>, vector<8x128xf32>
    %519 = arith.maximumf %514, %516 : vector<8x128xf32>
    %520 = arith.maximumf %519, %518 : vector<8x128xf32>
    %521 = arith.subf %514, %520 : vector<8x128xf32>
    %522 = math.exp %521 : vector<8x128xf32>
    %523 = arith.subf %516, %520 : vector<8x128xf32>
    %524 = math.exp %523 : vector<8x128xf32>
    %525 = arith.addf %522, %524 : vector<8x128xf32>
    %526 = arith.subf %518, %520 : vector<8x128xf32>
    %527 = math.exp %526 : vector<8x128xf32>
    %528 = arith.addf %525, %527 : vector<8x128xf32>
    %529 = math.log %528 : vector<8x128xf32>
    %530 = arith.addf %520, %529 : vector<8x128xf32>
    %531 = arith.index_cast %c15_i32 : i32 to index
    %c0_161 = arith.constant 0 : index
    %c0_162 = arith.constant 0 : index
    %532 = vector.load %arg9[%531, %c0_161, %c0_162] : memref<16x8x128xf32, #tpu.memory_space<vmem>>, vector<1x8x128xf32>
    %533 = vector.shape_cast %532 : vector<1x8x128xf32> to vector<8x128xf32>
    %534 = arith.addf %530, %533 : vector<8x128xf32>
    %535 = arith.select %8, %534, %35 : vector<8x128xi1>, vector<8x128xf32>
    %c15_i32_163 = arith.constant 15 : i32
    %536 = arith.select %32, %535, %35 : vector<8x128xi1>, vector<8x128xf32>
    %cst_164 = arith.constant dense<0xFF800000> : vector<8xf32>
    %537 = vector.multi_reduction <maximumf>, %536, %cst_164 [1] : vector<8x128xf32> to vector<8xf32>
    %538 = vector.shape_cast %537 : vector<8xf32> to vector<8x1xf32>
    %539 = vector.broadcast %538 : vector<8x1xf32> to vector<8x128xf32>
    %540 = arith.subf %536, %539 : vector<8x128xf32>
    %541 = math.exp %540 : vector<8x128xf32>
    %cst_165 = arith.constant dense<0.000000e+00> : vector<8xf32>
    %542 = vector.multi_reduction <add>, %541, %cst_165 [1] : vector<8x128xf32> to vector<8xf32>
    %543 = vector.shape_cast %542 : vector<8xf32> to vector<8x1xf32>
    %544 = math.log %543 : vector<8x1xf32>
    %545 = arith.addf %538, %544 : vector<8x1xf32>
    %cst_166 = arith.constant 0.000000e+00 : f32
    %546 = vector.broadcast %cst_166 : f32 to vector<8x1xf32>
    %547 = arith.subf %546, %545 : vector<8x1xf32>
    %c0_167 = arith.constant 0 : index
    %c0_168 = arith.constant 0 : index
    %548 = vector.load %arg4[%c0_167, %c0_168] : memref<8x1xf32, #tpu.memory_space<vmem>>, vector<8x1xf32>
    %549 = arith.mulf %547, %548 : vector<8x1xf32>
    %550 = vector.shape_cast %549 : vector<8x1xf32> to vector<1x8x1xf32>
    %cst_169 = arith.constant dense<0.000000e+00> : vector<1xf32>
    %551 = vector.multi_reduction <add>, %550, %cst_169 [1, 2] : vector<1x8x1xf32> to vector<1xf32>
    %552 = vector.shape_cast %551 : vector<1xf32> to vector<1x1x1xf32>
    %553 = vector.extract %552[0, 0, 0] : f32 from vector<1x1x1xf32>
    %c0_170 = arith.constant 0 : index
    %c0_171 = arith.constant 0 : index
    %554 = vector.load %arg5[%c0_170, %c0_171] : memref<72x40xf32, #tpu.memory_space<vmem>>, vector<72x40xf32>
    %c0_172 = arith.constant 0 : index
    %c0_173 = arith.constant 0 : index
    %555 = vector.load %arg6[%c0_172, %c0_173] : memref<72x1xi32, #tpu.memory_space<vmem>>, vector<72x1xi32>
    %cst_174 = arith.constant dense<0xFF800000> : vector<72xf32>
    %556 = vector.multi_reduction <maximumf>, %554, %cst_174 [1] : vector<72x40xf32> to vector<72xf32>
    %557 = vector.shape_cast %556 : vector<72xf32> to vector<72x1xf32>
    %558 = vector.broadcast %557 : vector<72x1xf32> to vector<72x40xf32>
    %559 = arith.subf %554, %558 : vector<72x40xf32>
    %560 = math.exp %559 : vector<72x40xf32>
    %cst_175 = arith.constant dense<0.000000e+00> : vector<72xf32>
    %561 = vector.multi_reduction <add>, %560, %cst_175 [1] : vector<72x40xf32> to vector<72xf32>
    %562 = vector.shape_cast %561 : vector<72xf32> to vector<72x1xf32>
    %563 = math.log %562 : vector<72x1xf32>
    %564 = arith.addf %557, %563 : vector<72x1xf32>
    %565 = tpu.iota {dimensions = array<i32: 1>} : vector<72x40xi32>
    %566 = vector.broadcast %555 : vector<72x1xi32> to vector<72x40xi32>
    %567 = arith.cmpi eq, %566, %565 : vector<72x40xi32>
    %cst_176 = arith.constant 0.000000e+00 : f32
    %568 = vector.broadcast %cst_176 : f32 to vector<72x40xf32>
    %569 = arith.select %567, %554, %568 : vector<72x40xi1>, vector<72x40xf32>
    %cst_177 = arith.constant dense<0.000000e+00> : vector<72xf32>
    %570 = vector.multi_reduction <add>, %569, %cst_177 [1] : vector<72x40xf32> to vector<72xf32>
    %571 = vector.shape_cast %570 : vector<72xf32> to vector<72x1xf32>
    %c37_i32 = arith.constant 37 : i32
    %572 = vector.broadcast %c37_i32 : i32 to vector<72x1xi32>
    %573 = arith.cmpi ne, %555, %572 : vector<72x1xi32>
    %574 = arith.extui %573 : vector<72x1xi1> to vector<72x1xi32>
    %575 = arith.sitofp %574 : vector<72x1xi32> to vector<72x1xf32>
    %576 = arith.subf %564, %571 : vector<72x1xf32>
    %577 = arith.mulf %576, %575 : vector<72x1xf32>
    %578 = vector.shape_cast %577 : vector<72x1xf32> to vector<1x72x1xf32>
    %cst_178 = arith.constant dense<0.000000e+00> : vector<1xf32>
    %579 = vector.multi_reduction <add>, %578, %cst_178 [1, 2] : vector<1x72x1xf32> to vector<1xf32>
    %580 = vector.shape_cast %579 : vector<1xf32> to vector<1x1x1xf32>
    %581 = vector.extract %580[0, 0, 0] : f32 from vector<1x1x1xf32>
    %582 = vector.shape_cast %575 : vector<72x1xf32> to vector<1x72x1xf32>
    %cst_179 = arith.constant dense<0.000000e+00> : vector<1xf32>
    %583 = vector.multi_reduction <add>, %582, %cst_179 [1, 2] : vector<1x72x1xf32> to vector<1xf32>
    %584 = vector.shape_cast %583 : vector<1xf32> to vector<1x1x1xf32>
    %585 = vector.extract %584[0, 0, 0] : f32 from vector<1x1x1xf32>
    %586 = tpu.iota {dimensions = array<i32: 1>} : vector<1x8x128xi32>
    %c0_i32_180 = arith.constant 0 : i32
    %587 = vector.broadcast %c0_i32_180 : i32 to vector<1x8x128xi32>
    %588 = arith.cmpi eq, %586, %587 : vector<1x8x128xi32>
    %c1_i32_181 = arith.constant 1 : i32
    %589 = vector.broadcast %c1_i32_181 : i32 to vector<1x8x128xi32>
    %590 = arith.cmpi eq, %586, %589 : vector<1x8x128xi32>
    %c2_i32_182 = arith.constant 2 : i32
    %591 = vector.broadcast %c2_i32_182 : i32 to vector<1x8x128xi32>
    %592 = arith.cmpi eq, %586, %591 : vector<1x8x128xi32>
    %cst_183 = arith.constant 0.000000e+00 : f32
    %593 = vector.broadcast %585 : f32 to vector<1x8x128xf32>
    %594 = vector.broadcast %cst_183 : f32 to vector<1x8x128xf32>
    %595 = arith.select %592, %593, %594 : vector<1x8x128xi1>, vector<1x8x128xf32>
    %596 = vector.broadcast %581 : f32 to vector<1x8x128xf32>
    %597 = arith.select %590, %596, %595 : vector<1x8x128xi1>, vector<1x8x128xf32>
    %598 = vector.broadcast %553 : f32 to vector<1x8x128xf32>
    %599 = arith.select %588, %598, %597 : vector<1x8x128xi1>, vector<1x8x128xf32>
    %c0_184 = arith.constant 0 : index
    %c0_185 = arith.constant 0 : index
    %c0_186 = arith.constant 0 : index
    %600 = vector.load %arg7[%c0_184, %c0_185, %c0_186] : memref<1x8x128xf32, #tpu.memory_space<vmem>>, vector<1x8x128xf32>
    tpu.vector_store %arg7[%c0_184, %c0_185, %c0_186], %599 {strides = array<i32>} : memref<1x8x128xf32, #tpu.memory_space<vmem>>, vector<1x8x128xf32>,
    return
  }
  func.func @transform_0(%arg0: i32) -> (i32, i32, i32) {
    %c0_i32 = arith.constant 0 : i32
    %c0_i32_0 = arith.constant 0 : i32
    %c0_i32_1 = arith.constant 0 : i32
    return %arg0, %c0_i32, %c0_i32_0 : i32, i32, i32
  }
  func.func @transform_1(%arg0: i32) -> (i32, i32) {
    %c0_i32 = arith.constant 0 : i32
    %c0_i32_0 = arith.constant 0 : i32
    return %arg0, %c0_i32 : i32, i32
  }
  func.func @transform_2(%arg0: i32) -> (i32, i32) {
    %c0_i32 = arith.constant 0 : i32
    %c0_i32_0 = arith.constant 0 : i32
    return %arg0, %c0_i32 : i32, i32
  }
  func.func @transform_3(%arg0: i32) -> (i32, i32) {
    %c0_i32 = arith.constant 0 : i32
    %c0_i32_0 = arith.constant 0 : i32
    return %arg0, %c0_i32 : i32, i32
  }
  func.func @transform_4(%arg0: i32) -> (i32, i32) {
    %c0_i32 = arith.constant 0 : i32
    %c0_i32_0 = arith.constant 0 : i32
    return %arg0, %c0_i32 : i32, i32
  }
  func.func @transform_5(%arg0: i32) -> (i32, i32) {
    %c0_i32 = arith.constant 0 : i32
    %c0_i32_0 = arith.constant 0 : i32
    return %arg0, %c0_i32 : i32, i32
  }
  func.func @transform_6(%arg0: i32) -> (i32, i32, i32) {
    %c0_i32 = arith.constant 0 : i32
    %c0_i32_0 = arith.constant 0 : i32
    %c0_i32_1 = arith.constant 0 : i32
    return %arg0, %c0_i32, %c0_i32_0 : i32, i32, i32
  }
}

</mosaic_0001>

<bundles_post_ra>
// kernel: tpu_custom_call.1
= control target key start
LH: loop header
LB: loop body
LE: loop exit
PB: predicated region body
PF: predicated region fallthrough
CT: control target
= control target key end

     0   :  { %vm73_vm0 = vcmask 326656   ;;  %v26_v3 = vlaneseq  ;;  %s3521_s0 = inlined_call_operand.vmem [shape: f32[8,16,40], index: 0, kind: input, shape index: {}]   ;;  %s3522_s1 = inlined_call_operand.vmem [shape: s32[8,128], index: 1, kind: input, shape index: {}]   ;;  %s3523_s2 = inlined_call_operand.vmem [shape: s32[8,1], index: 2, kind: input, shape index: {}]   ;;  %s3524_s3 = inlined_call_operand.vmem [shape: f32[8,1], index: 3, kind: input, shape index: {}]   ;;  %s3525_s4 = inlined_call_operand.vmem [shape: f32[72,40], index: 4, kind: input, shape index: {}]   ;;  %s3526_s5 = inlined_call_operand.vmem [shape: s32[72,1], index: 5, kind: input, shape index: {}]   ;;  %s3527_s6 = inlined_call_operand.hbm [shape: f32[1,8,128], index: 6, kind: output, shape index: {}]  }
   0x1   :  { %v2623_v0 = vld [vmem:[%s3521_s0] sm:$0xff]  ;;  %v2633_v2 = vld [vmem:[%s3521_s0 + $0x10] sm:$0xff] }
   0x2   :  { %v2628_v1 = vld [vmem:[%s3521_s0 + $0x20] sm:$0xff]  ;;  %v74_v4 = vsel %vm73_vm0, %v2623_v0, -inf  ;;  %v2642_v6 = vld [vmem:[%s3521_s0 + $0x30] sm:$0xff]  ;;  %2157 = vmatprep.mubr.msk.f32.mxu0 %vm73_vm0, %v2623_v0  ;;  %2170 = vmatprep.mubr.msk.f32.mxu1 %vm73_vm0, %v2633_v2  ;;  %v80_v7 = vsel %vm73_vm0, %v2633_v2, -inf  ;;  %v2658_v10 = vshrl.u32 %v26_v3, 7 }
   0x3   :  { %v86_v5 = vsel %vm73_vm0, %v2628_v1, -inf  ;;  %75 = vmax.xlane.f32.xlu0 %v74_v4  ;;  %v92_v8 = vsel %vm73_vm0, %v2642_v6, -inf  ;;  %v2655_v9 = vld [vmem:[%s3521_s0 + $0x40] sm:$0xff]  ;;  %v2663_v11 = vld [vmem:[%s3521_s0 + $0x50] sm:$0xff] }
   0x4   :  { %87 = vmax.xlane.f32.xlu1 %v86_v5  ;;  %v2668_v12 = vld [vmem:[%s3522_s1] sm:$0xff]  ;;  %v2671_v13 = vadd.s32 8, %v2658_v10  ;;  %v274_v14 = vsub.s32 0, %v2658_v10  ;;  %v378_v15 = vsub.s32 1, %v2658_v10  ;;  %v98_v16 = vsel %vm73_vm0, %v2655_v9, -inf }
   0x5   :  { %v2678_v17 = vadd.s32 16, %v2658_v10  ;;  %v2681_v18 = vadd.s32 24, %v2658_v10  ;;  %v104_v19 = vsel %vm73_vm0, %v2663_v11, -inf  ;;  %v482_v22 = vsub.s32 2, %v2658_v10 }
   0x6   :  { %v275_v20 = vrot.slane %v2668_v12, %v274_v14  ;;  %v379_v21 = vrot.slane %v2668_v12, %v378_v15 }
   0x7   :  { %81 = vmax.xlane.f32.xlu0 %v80_v7 }
   0x8   :  { %93 = vmax.xlane.f32.xlu1 %v92_v8 }
   0x9   :  { %11 = vsyncpa [#allocation5], 0  ;;  %v2691_v23 = vld [vmem:[%s3521_s0 + $0x60] sm:$0xff]  ;;  %v2696_v24 = vld [vmem:[%s3521_s0 + $0x70] sm:$0xff]  ;;  %v586_v25 = vsub.s32 3, %v2658_v10  ;;  %vm276_vm1 = vcmp.eq.s32.totalorder %v275_v20, %v2658_v10  ;;  %vm277_vm2 = vcmp.eq.s32.totalorder %v275_v20, %v2671_v13  ;;  %vm380_vm3 = vcmp.eq.s32.totalorder %v379_v21, %v2658_v10  ;;  %s2581_s7 = smov 2  }
   0xa   :  { %vm381_vm4 = vcmp.eq.s32.totalorder %v379_v21, %v2671_v13  ;;  %vm2251_vm5 = vmpackc.low %vm277_vm2, %vm276_vm1  ;;  %vm278_vm6 = vcmp.eq.s32.totalorder %v275_v20, %v2678_v17  ;;  %vm279_vm7 = vcmp.eq.s32.totalorder %v275_v20, %v2681_v18  ;;  %vm382_vm8 = vcmp.eq.s32.totalorder %v379_v21, %v2678_v17  ;;  %v2745_v34 = vld [vmem:[%s3521_s0 + $0x8] sm:$0xff]  ;;  %v2765_v36 = vld [vmem:[%s3521_s0 + $0x18] sm:$0xff]  ;;  %s2584_s18 = smov [#allocation4]  }
   0xb   :  { %99 = vmax.xlane.f32.xlu0 %v98_v16  ;;  %v2707_v26 = vadd.s32 32, %v2658_v10  ;;  %v110_v27 = vsel %vm73_vm0, %v2691_v23, -inf  ;;  %v116_v28 = vsel %vm73_vm0, %v2696_v24, -inf  ;;  %v2578_v29 = vmov 1.0|1.0   ;;  %vm2259_vm9 = vmpackc.low %vm381_vm4, %vm380_vm3  ;;  %v2820_v41 = vld [vmem:[%s3521_s0 + $0x28] sm:$0xff] }
   0xc   :  { %105 = vmax.xlane.f32.xlu1 %v104_v19  ;;  %2252 = vmatprep.subr.msk.bf16.mxu0 %vm2251_vm5, %v2578_v29  ;;  %vm383_vm10 = vcmp.eq.s32.totalorder %v379_v21, %v2681_v18  ;;  %v2716_v30 = vrot.slane %v2668_v12, %v482_v22  ;;  %vm2255_vm11 = vmpackc.low %vm279_vm7, %vm278_vm6  ;;  %v2723_v31 = vrot.slane %v2668_v12, %v586_v25  ;;  %v2579_v32 = vmov 1.0   ;;  %v2842_v43 = vld [vmem:[%s3521_s0 + $0x38] sm:$0xff]  ;;  %v2889_v47 = vld [vmem:[%s3521_s0 + $0x48] sm:$0xff]  ;;  %s1977_s19 = sshll.u32 %s2584_s18, 4  ;;  %s1978_s19 = int_to_ptr.vmem [resolvable:$true] %s1977_s19 }
   0xd   :  { %2254 = vmatpush3.bf16.msk.msra.mxu0 %vm2251_vm5, %v2578_v29  ;;  %2260 = vmatprep.subr.msk.bf16.mxu1 %vm2259_vm9, %v2578_v29  ;;  %vm2263_vm12 = vmpackc.low %vm383_vm10, %vm382_vm8  ;;  %vm280_vm13 = vcmp.eq.s32.totalorder %v275_v20, %v2707_v26  ;;  %vm384_vm1 = vcmp.eq.s32.totalorder %v379_v21, %v2707_v26  ;;  %v690_v33 = vsub.s32 4, %v2658_v10  ;;  %v794_v35 = vsub.s32 5, %v2658_v10  ;;  %v2906_v48 = vld [vmem:[%s3521_s0 + $0x58] sm:$0xff]  ;;  %v2934_v49 = vld [vmem:[%s3521_s0 + $0x68] sm:$0xff]  ;;  %s2554_s20 = scalar_lea.vmem %s1978_s19, 128  ;;  %p2559_p1 = scmp.lt.s32.totalorder %s1978_s19, %s1978_s19 }
   0xe   :  { %2256 = vmatprep.subr.msk.bf16.mxu0 %vm2255_vm11, %v2578_v29  ;;  %2262 = vmatpush3.bf16.msk.msra.mxu1 %vm2259_vm9, %v2578_v29  ;;  %vm484_vm14 = vcmp.eq.s32.totalorder %v2716_v30, %v2658_v10  ;;  %vm485_vm15 = vcmp.eq.s32.totalorder %v2716_v30, %v2671_v13  ;;  %vm588_vm2 = vcmp.eq.s32.totalorder %v2723_v31, %v2658_v10  ;;  %v898_v40 = vsub.s32 6, %v2658_v10  ;;  %v2941_v51 = vld [vmem:[%s3521_s0 + $0x78] sm:$0xff]  ;;  %p2555_p0 = scmp.ne.s32.totalorder %s1978_s19, %s2554_s20  ;;  %p2560_p2 = scmp.lt.s32.totalorder %s2554_s20, %s2554_s20 }
   0xf   :  { %111 = vmax.xlane.f32.xlu0 %v110_v27  ;;  %2264 = vmatprep.subr.msk.bf16.mxu1 %vm2263_vm12, %v2578_v29  ;;  %vm589_vm3 = vcmp.eq.s32.totalorder %v2723_v31, %v2671_v13  ;;  %vm2267_vm4 = vmpackc.low %vm485_vm15, %vm484_vm14  ;;  %vm486_vm5 = vcmp.eq.s32.totalorder %v2716_v30, %v2678_v17  ;;  %vm487_vm6 = vcmp.eq.s32.totalorder %v2716_v30, %v2681_v18  ;;  %v1002_v42 = vsub.s32 7, %v2658_v10 }
  0x10   :  { %117 = vmax.xlane.f32.xlu1 %v116_v28  ;;  %vm590_vm7 = vcmp.eq.s32.totalorder %v2723_v31, %v2678_v17  ;;  %vm591_vm8 = vcmp.eq.s32.totalorder %v2723_v31, %v2681_v18  ;;  %vm2275_vm9 = vmpackc.low %vm589_vm3, %vm588_vm2  ;;  %v2771_v37 = vrot.slane %v2668_v12, %v690_v33  ;;  %v2785_v39 = vrot.slane %v2668_v12, %v794_v35  ;;  %p2561_p3 = por %p2560_p2, %p2559_p1 }
  0x11   :  { %2258 = vmatpush3.bf16.msk.msra.mxu0 %vm2255_vm11, %v2578_v29  ;;  %vm2271_vm10 = vmpackc.low %vm487_vm6, %vm486_vm5  ;;  %vm592_vm15 = vcmp.eq.s32.totalorder %v2723_v31, %v2707_v26  ;;  %v899_v44 = vrot.slane %v2668_v12, %v898_v40  ;;  %v1003_v46 = vrot.slane %v2668_v12, %v1002_v42  ;;  %v2580_v50 = vmov 0   ;;  %v2991_v31 = vld [vmem:[%s3523_s2] sm:$0xff]  ;;  %s2582_s2 = smov 1  }
  0x12   :  { %2155 = vmatprep.subr.msk.mxu0 %vm280_vm13, %v2579_v32  ;;  %2266 = vmatpush3.bf16.msk.msra.mxu1 %vm2263_vm12, %v2578_v29  ;;  %vm2777_vm11 = vmpackc.low %vm591_vm8, %vm590_vm7  ;;  %vm488_vm12 = vcmp.eq.s32.totalorder %v2716_v30, %v2707_v26  ;;  %vm693_vm14 = vcmp.eq.s32.totalorder %v2771_v37, %v2671_v13  ;;  %vm797_vm2 = vcmp.eq.s32.totalorder %v2785_v39, %v2671_v13  ;;  %p2562_p4 = pnand %p2561_p3, %p2555_p0 }
  0x13   :  { %2168 = vmatprep.subr.msk.mxu1 %vm384_vm1, %v2579_v32  ;;  %vm695_vm5 = vcmp.eq.s32.totalorder %v2771_v37, %v2681_v18  ;;  %vm798_vm6 = vcmp.eq.s32.totalorder %v2785_v39, %v2678_v17  ;;  %vm799_vm7 = vcmp.eq.s32.totalorder %v2785_v39, %v2681_v18  ;;  %2328 = vset.pattern.permute.xlu0 %v2580_v50 }
  0x14   :  { %2329 = vset.pattern.permute.xlu1 %v2580_v50 }
  0x15   :  { %2156 = vmatpush3.msk.msra.mxu0 %vm280_vm13, %v2579_v32  ;;  %vm692_vm13 = vcmp.eq.s32.totalorder %v2771_v37, %v2658_v10 }
  0x16   :  { %2268 = vmatprep.subr.msk.bf16.mxu0 %vm2267_vm4, %v2578_v29  ;;  %2158 = vmatmul.mubr.msk.f32.vlgmr.msra.gmra.mrb[0].mxu0 %vm73_vm0, %v2745_v34  ;;  %vm2283_vm3 = vmpackc.low %vm693_vm14, %vm692_vm13  ;;  %vm901_vm13 = vcmp.eq.s32.totalorder %v899_v44, %v2671_v13  ;;  %vm800_vm14 = vcmp.eq.s32.totalorder %v2785_v39, %v2707_v26 }
  0x17   :  { %2270 = vmatpush3.bf16.msk.msra.mxu0 %vm2267_vm4, %v2578_v29  ;;  %2169 = vmatpush3.msk.msra.mxu1 %vm384_vm1, %v2579_v32  ;;  %vm796_vm1 = vcmp.eq.s32.totalorder %v2785_v39, %v2658_v10  ;;  %vm694_vm4 = vcmp.eq.s32.totalorder %v2771_v37, %v2678_v17 }
  0x18   :  { %2276 = vmatprep.subr.msk.bf16.mxu1 %vm2275_vm9, %v2578_v29  ;;  %2171 = vmatmul.mubr.msk.f32.vlgmr.msra.gmra.mrb[0].mxu1 %vm73_vm0, %v2765_v36  ;;  %vm2291_vm8 = vmpackc.low %vm797_vm2, %vm796_vm1  ;;  %vm1005_vm1 = vcmp.eq.s32.totalorder %v1003_v46, %v2671_v13 }
  0x19   :  { %2272 = vmatprep.subr.msk.bf16.mxu0 %vm2271_vm10, %v2578_v29  ;;  %2278 = vmatpush3.bf16.msk.msra.mxu1 %vm2275_vm9, %v2578_v29  ;;  %vm2287_vm9 = vmpackc.low %vm695_vm5, %vm694_vm4  ;;  %vm903_vm4 = vcmp.eq.s32.totalorder %v899_v44, %v2681_v18  ;;  %vm1006_vm5 = vcmp.eq.s32.totalorder %v1003_v46, %v2678_v17 }
  0x1a   :  { %2280 = vmatprep.subr.msk.bf16.mxu1 %vm2777_vm11, %v2578_v29  ;;  %2183 = vmatprep.mubr.msk.f32.mxu0 %vm73_vm0, %v2628_v1 }
  0x1b   :  { %2274 = vmatpush3.bf16.msk.msra.mxu0 %vm2271_vm10, %v2578_v29  ;;  %2196 = vmatprep.mubr.msk.f32.mxu1 %vm73_vm0, %v2642_v6  ;;  %vm2853_vm10 = vmpackc.low %vm799_vm7, %vm798_vm6  ;;  %vm1007_vm6 = vcmp.eq.s32.totalorder %v1003_v46, %v2681_v18 }
  0x1c   :  { %2181 = vmatprep.subr.msk.mxu0 %vm488_vm12, %v2579_v32 }
  0x1d   :  { %2282 = vmatpush3.bf16.msk.msra.mxu1 %vm2777_vm11, %v2578_v29  ;;  %vm696_vm11 = vcmp.eq.s32.totalorder %v2771_v37, %v2707_v26 }
  0x1e   :  { %2194 = vmatprep.subr.msk.mxu1 %vm592_vm15, %v2579_v32 }
  0x1f   :  { %2182 = vmatpush3.msk.msra.mxu0 %vm488_vm12, %v2579_v32  ;;  %vm900_vm12 = vcmp.eq.s32.totalorder %v899_v44, %v2658_v10 }
  0x20   :  { %2284 = vmatprep.subr.msk.bf16.mxu0 %vm2283_vm3, %v2578_v29  ;;  %2184 = vmatmul.mubr.msk.f32.vlgmr.msra.gmra.mrb[2].mxu0 %vm73_vm0, %v2820_v41  ;;  %vm2299_vm2 = vmpackc.low %vm901_vm13, %vm900_vm12 }
  0x21   :  { %2286 = vmatpush3.bf16.msk.msra.mxu0 %vm2283_vm3, %v2578_v29  ;;  %2195 = vmatpush3.msk.msra.mxu1 %vm592_vm15, %v2579_v32  ;;  %vm1004_vm15 = vcmp.eq.s32.totalorder %v1003_v46, %v2658_v10  ;;  %vm902_vm3 = vcmp.eq.s32.totalorder %v899_v44, %v2678_v17 }
  0x22   :  { %2292 = vmatprep.subr.msk.bf16.mxu1 %vm2291_vm8, %v2578_v29  ;;  %2197 = vmatmul.mubr.msk.f32.vlgmr.msra.gmra.mrb[2].mxu1 %vm73_vm0, %v2842_v43  ;;  %vm2307_vm7 = vmpackc.low %vm1005_vm1, %vm1004_vm15 }
  0x23   :  { %2288 = vmatprep.subr.msk.bf16.mxu0 %vm2287_vm9, %v2578_v29  ;;  %2294 = vmatpush3.bf16.msk.msra.mxu1 %vm2291_vm8, %v2578_v29  ;;  %vm2303_vm8 = vmpackc.low %vm903_vm4, %vm902_vm3 }
  0x24   :  { %2296 = vmatprep.subr.msk.bf16.mxu1 %vm2853_vm10, %v2578_v29  ;;  %2209 = vmatprep.mubr.msk.f32.mxu0 %vm73_vm0, %v2655_v9 }
  0x25   :  { %2290 = vmatpush3.bf16.msk.msra.mxu0 %vm2287_vm9, %v2578_v29  ;;  %2222 = vmatprep.mubr.msk.f32.mxu1 %vm73_vm0, %v2663_v11  ;;  %vm2311_vm9 = vmpackc.low %vm1007_vm6, %vm1006_vm5  ;;  %vm42_vm5 = vcmp.ne.s32.totalorder %v2668_v12, 0 }
  0x26   :  { %2207 = vmatprep.subr.msk.mxu0 %vm696_vm11, %v2579_v32 }
  0x27   :  { %2298 = vmatpush3.bf16.msk.msra.mxu1 %vm2853_vm10, %v2578_v29  ;;  %vm904_vm10 = vcmp.eq.s32.totalorder %v899_v44, %v2707_v26 }
  0x28   :  { %2220 = vmatprep.subr.msk.mxu1 %vm800_vm14, %v2579_v32 }
  0x29   :  { %2208 = vmatpush3.msk.msra.mxu0 %vm696_vm11, %v2579_v32  ;;  %vm1008_vm11 = vcmp.eq.s32.totalorder %v1003_v46, %v2707_v26 }
  0x2a   :  { %2300 = vmatprep.subr.msk.bf16.mxu0 %vm2299_vm2, %v2578_v29  ;;  %2210 = vmatmul.mubr.msk.f32.vlgmr.msra.gmra.mrb[4].mxu0 %vm73_vm0, %v2889_v47 }
  0x2b   :  { %2302 = vmatpush3.bf16.msk.msra.mxu0 %vm2299_vm2, %v2578_v29  ;;  %2221 = vmatpush3.msk.msra.mxu1 %vm800_vm14, %v2579_v32 }
  0x2c   :  { %2308 = vmatprep.subr.msk.bf16.mxu1 %vm2307_vm7, %v2578_v29  ;;  %2223 = vmatmul.mubr.msk.f32.vlgmr.msra.gmra.mrb[4].mxu1 %vm73_vm0, %v2906_v48 }
  0x2d   :  { %2304 = vmatprep.subr.msk.bf16.mxu0 %vm2303_vm8, %v2578_v29  ;;  %2310 = vmatpush3.bf16.msk.msra.mxu1 %vm2307_vm7, %v2578_v29 }
  0x2e   :  { %2312 = vmatprep.subr.msk.bf16.mxu1 %vm2311_vm9, %v2578_v29  ;;  %2235 = vmatprep.mubr.msk.f32.mxu0 %vm73_vm0, %v2691_v23 }
  0x2f   :  { %2306 = vmatpush3.bf16.msk.msra.mxu0 %vm2303_vm8, %v2578_v29  ;;  %2248 = vmatprep.mubr.msk.f32.mxu1 %vm73_vm0, %v2696_v24 }
  0x30   :  { %2233 = vmatprep.subr.msk.mxu0 %vm904_vm10, %v2579_v32 }
  0x31   :  { %2314 = vmatpush3.bf16.msk.msra.mxu1 %vm2311_vm9, %v2578_v29 }
  0x32   :  { %2246 = vmatprep.subr.msk.mxu1 %vm1008_vm11, %v2579_v32 }
  0x33   :  { %2234 = vmatpush3.msk.msra.mxu0 %vm904_vm10, %v2579_v32 }
  0x34   :  { %2236 = vmatmul.mubr.msk.f32.vlgmr.msra.gmra.mrb[6].mxu0 %vm73_vm0, %v2934_v49 }
  0x35   :  { %2247 = vmatpush3.msk.msra.mxu1 %vm1008_vm11, %v2579_v32  ;;  %v28_v32 = vmul.u32 2, %v2991_v31 }
  0x36   :  { %2249 = vmatmul.mubr.msk.f32.vlgmr.msra.gmra.mrb[6].mxu1 %vm73_vm0, %v2941_v51 }
  0x37   :  { %v2996_v33 = vadd.s32 1, %v28_v32 }
  0x90   :  { %v2948_v52 = vpop.xlane.xlu0 %75 }
  0x91   :  { %v2950_v53 = vpop.xlane.xlu1 %87  ;;  %v122_v54 = vsub.f32 %v2623_v0, %v2948_v52 }
  0x92   :  { %v126_v55 = vsub.f32 %v2628_v1, %v2950_v53 }
  0x93   :  { %v138_v56 = vmul.f32 1.442695, %v122_v54 }
  0x94   :  { %v146_v57 = vmul.f32 1.442695, %v126_v55  ;;  %v2956_v58 = vpop.xlane.xlu0 %81 }
  0x95   :  { %v2958_v59 = vpop.xlane.xlu1 %93  ;;  %2330 = vpow2.f32 %v138_v56  ;;  %v124_v60 = vsub.f32 %v2633_v2, %v2956_v58 }
  0x96   :  { %v128_v61 = vsub.f32 %v2642_v6, %v2958_v59  ;;  %2332 = vpow2.f32 %v146_v57 }
  0x97   :  { %v142_v62 = vmul.f32 1.442695, %v124_v60 }
  0x98   :  { %v150_v63 = vmul.f32 1.442695, %v128_v61  ;;  %v2964_v0 = vpop.xlane.xlu0 %99 }
  0x99   :  { %v2966_v4 = vpop.xlane.xlu1 %105  ;;  %2334 = vpow2.f32 %v142_v62  ;;  %v130_v1 = vsub.f32 %v2655_v9, %v2964_v0 }
  0x9a   :  { %v132_v5 = vsub.f32 %v2663_v11, %v2966_v4  ;;  %2336 = vpow2.f32 %v150_v63 }
  0x9b   :  { %v154_v7 = vmul.f32 1.442695, %v130_v1 }
  0x9c   :  { %v158_v2 = vmul.f32 1.442695, %v132_v5  ;;  %v2972_v8 = vpop.xlane.xlu0 %111 }
  0x9d   :  { %v2974_v6 = vpop.xlane.xlu1 %117  ;;  %2338 = vpow2.f32 %v154_v7  ;;  %v134_v13 = vsub.f32 %v2691_v23, %v2972_v8 }
  0x9e   :  { %v136_v14 = vsub.f32 %v2696_v24, %v2974_v6  ;;  %2340 = vpow2.f32 %v158_v2 }
  0x9f   :  { %v2331_v15 = vpop.eup %2330  ;;  %v162_v9 = vmul.f32 1.442695, %v134_v13 }
  0xa0   :  { %v166_v16 = vmul.f32 1.442695, %v136_v14  ;;  %v2333_v17 = vpop.eup %2332  ;;  %v170_v11 = vsel %vm73_vm0, %v2331_v15, 0.0 }
  0xa1   :  { %2342 = vpow2.f32 %v162_v9  ;;  %171 = vadd.xlane.f32.xlu0 %v170_v11  ;;  %v182_v18 = vsel %vm73_vm0, %v2333_v17, 0.0 }
  0xa2   :  { %2344 = vpow2.f32 %v166_v16 }
  0xa3   :  { %v2335_v19 = vpop.eup %2334 }
  0xa4   :  { %v2337_v20 = vpop.eup %2336  ;;  %v176_v21 = vsel %vm73_vm0, %v2335_v19, 0.0 }
  0xa5   :  { %183 = vadd.xlane.f32.xlu0 %v182_v18  ;;  %177 = vadd.xlane.f32.xlu1 %v176_v21  ;;  %v188_v22 = vsel %vm73_vm0, %v2337_v20, 0.0 }
  0xa7   :  { %v2339_v23 = vpop.eup %2338 }
  0xa8   :  { %v2341_v24 = vpop.eup %2340  ;;  %v194_v25 = vsel %vm73_vm0, %v2339_v23, 0.0 }
  0xa9   :  { %189 = vadd.xlane.f32.xlu1 %v188_v22  ;;  %195 = vadd.xlane.f32.xlu0 %v194_v25  ;;  %v200_v26 = vsel %vm73_vm0, %v2341_v24, 0.0 }
  0xab   :  { %v2343_v27 = vpop.eup %2342 }
  0xac   :  { %v2345_v28 = vpop.eup %2344  ;;  %v206_v29 = vsel %vm73_vm0, %v2343_v27, 0.0 }
  0xad   :  { %201 = vadd.xlane.f32.xlu1 %v200_v26  ;;  %207 = vadd.xlane.f32.xlu0 %v206_v29  ;;  %v212_v30 = vsel %vm73_vm0, %v2345_v28, 0.0 }
  0xb1   :  { %213 = vadd.xlane.f32.xlu1 %v212_v30 }
  0xc2   :  { %34 = vrot.lane.b32.xlu1 %v2668_v12, %s2581_s7 }
  0xc3   :  { %31 = vperm.xlu0 %2328, %v2996_v33  }
  0xe9   :  { %v3001_v35 = vpop.f32.mrb[0].mxu0 }
  0xea   :  { %v363_v37 = vpop.f32.mrb[1].mxu0 }
  0xeb   :  { %v3003_v38 = vpop.f32.mrb[0].mxu1 }
  0xec   :  { %v467_v39 = vpop.f32.mrb[1].mxu1 }
  0xf3   :  { %v3005_v40 = vpop.f32.mrb[2].mxu0 }
  0xf4   :  { %v571_v42 = vpop.f32.mrb[3].mxu0 }
  0xf5   :  { %v3007_v44 = vpop.f32.mrb[2].mxu1 }
  0xf6   :  { %v675_v45 = vpop.f32.mrb[3].mxu1 }
  0xfd   :  { %v3009_v46 = vpop.f32.mrb[4].mxu0 }
  0xfe   :  { %v779_v50 = vpop.f32.mrb[5].mxu0 }
  0xff   :  { %v3011_v54 = vpop.f32.mrb[4].mxu1 }
 0x100   :  { %v883_v55 = vpop.f32.mrb[5].mxu1 }
 0x107   :  { %v3013_v56 = vpop.f32.mrb[6].mxu0 }
 0x108   :  { %v987_v57 = vpop.f32.mrb[7].mxu0 }
 0x109   :  { %v3015_v60 = vpop.f32.mrb[6].mxu1 }
 0x10a   :  { %v1091_v61 = vpop.f32.mrb[7].mxu1 }
 0x12e   :  { %v172_v62 = vpop.xlane.xlu0 %171 }
 0x12f   :  { %2346 = vlog2.f32 %v172_v62 }
 0x132   :  { %v178_v63 = vpop.xlane.xlu1 %177  ;;  %v184_v1 = vpop.xlane.xlu0 %183 }
 0x133   :  { %2348 = vlog2.f32 %v178_v63 }
 0x134   :  { %2350 = vlog2.f32 %v184_v1 }
 0x136   :  { %v190_v5 = vpop.xlane.xlu1 %189  ;;  %v196_v7 = vpop.xlane.xlu0 %195 }
 0x137   :  { %2352 = vlog2.f32 %v190_v5 }
 0x138   :  { %2354 = vlog2.f32 %v196_v7 }
 0x139   :  { %v2347_v2 = vpop.eup %2346 }
 0x13a   :  { %v219_v13 = vmul.f32 0.6931472, %v2347_v2  ;;  %v202_v14 = vpop.xlane.xlu1 %201  ;;  %v208_v15 = vpop.xlane.xlu0 %207 }
 0x13b   :  { %2356 = vlog2.f32 %v202_v14 }
 0x13c   :  { %v250_v9 = vadd.f32 %v219_v13, %v2948_v52  ;;  %2358 = vlog2.f32 %v208_v15 }
 0x13d   :  { %v2349_v16 = vpop.eup %2348 }
 0x13e   :  { %v2351_v17 = vpop.eup %2350  ;;  %v372_v11 = vsub.f32 %v363_v37, %v250_v9  ;;  %v223_v18 = vmul.f32 0.6931472, %v2349_v16  ;;  %v214_v19 = vpop.xlane.xlu1 %213 }
 0x13f   :  { %v227_v20 = vmul.f32 0.6931472, %v2351_v17  ;;  %2360 = vlog2.f32 %v214_v19 }
 0x140   :  { %374 = vst [vmem:[#allocation2] sm:$0xff] %v372_v11  ;;  %v252_v21 = vadd.f32 %v223_v18, %v2956_v58 }
 0x141   :  { %v2353_v22 = vpop.eup %2352  ;;  %v254_v23 = vadd.f32 %v227_v20, %v2950_v53 }
 0x142   :  { %v2355_v24 = vpop.eup %2354  ;;  %v476_v25 = vsub.f32 %v467_v39, %v252_v21  ;;  %v231_v26 = vmul.f32 0.6931472, %v2353_v22  ;;  %v35_v9 = vpop.permute.xlu1 %34 }
 0x143   :  { %v235_v27 = vmul.f32 0.6931472, %v2355_v24  ;;  %v580_v28 = vsub.f32 %v571_v42, %v254_v23  ;;  %vm40_vm3 = vcmp.ne.s32.totalorder %v2668_v12, %v35_v9 }
 0x144   :  { %478 = vst [vmem:[#allocation2 + $0x10] sm:$0xff] %v476_v25  ;;  %v256_v52 = vadd.f32 %v231_v26, %v2958_v59 }
 0x145   :  { %v2357_v29 = vpop.eup %2356  ;;  %582 = vst [vmem:[#allocation2 + $0x20] sm:$0xff] %v580_v28  ;;  %v258_v30 = vadd.f32 %v235_v27, %v2964_v0 }
 0x146   :  { %v2359_v37 = vpop.eup %2358  ;;  %v684_v62 = vsub.f32 %v675_v45, %v256_v52  ;;  %v239_v63 = vmul.f32 0.6931472, %v2357_v29  ;;  %v32_v45 = vpop.permute.xlu0 %31 }
 0x147   :  { %v243_v1 = vmul.f32 0.6931472, %v2359_v37  ;;  %v788_v58 = vsub.f32 %v779_v50, %v258_v30  ;;  %v3026_v50 = vand.u32 127, %v26_v3 }
 0x148   :  { %686 = vst [vmem:[#allocation2 + $0x30] sm:$0xff] %v684_v62  ;;  %v260_v53 = vadd.f32 %v239_v63, %v2966_v4 }
 0x149   :  { %v2361_v5 = vpop.eup %2360  ;;  %790 = vst [vmem:[#allocation2 + $0x40] sm:$0xff] %v788_v58  ;;  %v262_v39 = vadd.f32 %v243_v1, %v2972_v8  ;;  %vm3029_vm12 = vcmp.lt.s32.totalorder %v3026_v50, %v32_v45  ;;  %vm1262_vm13 = vcmp.le.s32.totalorder %v3026_v50, 1  ;;  %v36_v3 = vand.u32 1, %v3026_v50 }
 0x14a   :  { %v247_v42 = vmul.f32 0.6931472, %v2361_v5  ;;  %v892_v7 = vsub.f32 %v883_v55, %v260_v53  ;;  %vm1263_vm14 = vmand %vm1262_vm13, %vm3029_vm12  ;;  %vm38_vm1 = vcmp.ge.s32.totalorder %v3026_v50, 2  ;;  %vm56_vm6 = vcmp.ge.s32.totalorder %v3026_v50, 1 }
 0x14b   :  { %v996_v2 = vsub.f32 %v987_v57, %v262_v39  ;;  %v1104_v14 = vld [vmem:[#allocation2] ss:$16 sm:$0x3]  ;;  %vm37_vm15 = vcmp.eq.s32.totalorder %v36_v3, 1 }
 0x14c   :  { %894 = vst [vmem:[#allocation2 + $0x50] sm:$0xff] %v892_v7  ;;  %v264_v59 = vadd.f32 %v247_v42, %v2974_v6  ;;  %vm39_vm2 = vmand %vm37_vm15, %vm38_vm1  ;;  %v1113_v62 = vld [vmem:[#allocation2 + $0x1] ss:$16 sm:$0x3] }
 0x14d   :  { %998 = vst [vmem:[#allocation2 + $0x60] sm:$0xff] %v996_v2  ;;  %vm41_vm4 = vmand %vm39_vm2, %vm40_vm3 }
 0x14e   :  { %v1100_v0 = vsub.f32 %v1091_v61, %v264_v59  ;;  %vm43_vm7 = vmand %vm41_vm4, %vm42_vm5 }
 0x14f   :  { %v1105_v13 = vld [vmem:[#allocation2] ss:$16 sm:$0xc]  ;;  %vm3047_vm8 = vmand %vm43_vm7, %vm3029_vm12  ;;  %v1114_v37 = vld [vmem:[#allocation2 + $0x1] ss:$16 sm:$0xc] }
 0x150   :  { %1102 = vst [vmem:[#allocation2 + $0x70] sm:$0xff] %v1100_v0  ;;  %v1106_v8 = vor.u32 %v1105_v13, %v1104_v14  ;;  %v1115_v1 = vor.u32 %v1114_v37, %v1113_v62 }
 0x153   :  { %v1107_v4 = vld [vmem:[#allocation2] ss:$16 sm:$0x30]  ;;  %v1116_v63 = vld [vmem:[#allocation2 + $0x1] ss:$16 sm:$0x30] }
 0x154   :  { %v1108_v55 = vor.u32 %v1107_v4, %v1106_v8  ;;  %v1117_v5 = vor.u32 %v1116_v63, %v1115_v1 }
 0x157   :  { %v1109_v6 = vld [vmem:[#allocation2] ss:$16 sm:$0xc0]  ;;  %v1118_v53 = vld [vmem:[#allocation2 + $0x1] ss:$16 sm:$0xc0] }
 0x158   :  { %v1110_v57 = vor.u32 %v1109_v6, %v1108_v55  ;;  %v1119_v42 = vor.u32 %v1118_v53, %v1117_v5 }
 0x15a   :  { %v1265_v61 = vsel %vm1263_vm14, %v1110_v57, -1e+30 }
 0x15b   :  { %1266 = vrot.lane.b32.xlu1 %v1265_v61, %s2582_s2 }
 0x15f   :  { %1269 = vrot.lane.b32.xlu1 %v1265_v61, %s2581_s7 }
 0x1cd   :  { %v1267_v16 = vpop.permute.xlu1 %1266 }
 0x1ce   :  { %v1268_v17 = vsel %vm56_vm6, %v1267_v16, -1e+30 }
 0x1cf   :  { %v1272_v11 = vmax.f32 %v1265_v61, %v1268_v17 }
 0x1d1   :  { %v1270_v18 = vpop.permute.xlu1 %1269 }
 0x1d2   :  { %v1271_v20 = vsel %vm3047_vm8, %v1270_v18, -1e+30 }
 0x1d3   :  { %v1273_v21 = vmax.f32 %v1272_v11, %v1271_v20 }
 0x1d5   :  { %v1274_v12 = vsub.f32 %v1265_v61, %v1273_v21  ;;  %v1277_v22 = vsub.f32 %v1268_v17, %v1273_v21  ;;  %v1281_v23 = vsub.f32 %v1271_v20, %v1273_v21 }
 0x1d7   :  { %v1275_v24 = vmul.f32 1.442695, %v1274_v12  ;;  %v1278_v25 = vmul.f32 1.442695, %v1277_v22  ;;  %v1282_v26 = vmul.f32 1.442695, %v1281_v23 }
 0x1d8   :  { %v1123_v12 = vld [vmem:[#allocation2 + $0x2] ss:$16 sm:$0x3] }
 0x1d9   :  { %2362 = vpow2.f32 %v1275_v24  ;;  %v1126_v22 = vld [vmem:[#allocation2 + $0x2] ss:$16 sm:$0x30] }
 0x1da   :  { %2364 = vpow2.f32 %v1278_v25  ;;  %v1128_v25 = vld [vmem:[#allocation2 + $0x2] ss:$16 sm:$0xc0] }
 0x1db   :  { %2366 = vpow2.f32 %v1282_v26 }
 0x1e3   :  { %v2363_v27 = vpop.eup %2362 }
 0x1e4   :  { %v2365_v28 = vpop.eup %2364 }
 0x1e5   :  { %v1280_v52 = vadd.f32 %v2365_v28, %v2363_v27  ;;  %v2367_v29 = vpop.eup %2366 }
 0x1e7   :  { %v1284_v30 = vadd.f32 %v2367_v29, %v1280_v52 }
 0x1e9   :  { %2368 = vlog2.f32 %v1284_v30 }
 0x1f3   :  { %v2369_v58 = vpop.eup %2368 }
 0x1f4   :  { %v1286_v39 = vmul.f32 0.6931472, %v2369_v58 }
 0x1f6   :  { %v1287_v7 = vadd.f32 %v1286_v39, %v1273_v21  ;;  %v1124_v21 = vld [vmem:[#allocation2 + $0x2] ss:$16 sm:$0xc] }
 0x1f7   :  { %v1125_v23 = vor.u32 %v1124_v21, %v1123_v12 }
 0x1f8   :  { %v1289_v2 = vadd.f32 %v1287_v7, %v1119_v42 }
 0x1f9   :  { %v1127_v26 = vor.u32 %v1126_v22, %v1125_v23 }
 0x1fa   :  { %v1290_v59 = vsel %vm3029_vm12, %v1289_v2, -1e+30 }
 0x1fb   :  { %1291 = vrot.lane.b32.xlu1 %v1290_v59, %s2582_s2  ;;  %v1129_v28 = vor.u32 %v1128_v25, %v1127_v26 }
 0x1ff   :  { %1294 = vrot.lane.b32.xlu1 %v1290_v59, %s2581_s7 }
 0x26d   :  { %v1292_v0 = vpop.permute.xlu1 %1291 }
 0x26e   :  { %v1293_v45 = vsel %vm56_vm6, %v1292_v0, -1e+30 }
 0x26f   :  { %v1297_v13 = vmax.f32 %v1290_v59, %v1293_v45 }
 0x271   :  { %v1295_v14 = vpop.permute.xlu1 %1294 }
 0x272   :  { %v1296_v4 = vsel %vm3047_vm8, %v1295_v14, -1e+30 }
 0x273   :  { %v1298_v8 = vmax.f32 %v1297_v13, %v1296_v4 }
 0x275   :  { %v1299_v55 = vsub.f32 %v1290_v59, %v1298_v8  ;;  %v1302_v6 = vsub.f32 %v1293_v45, %v1298_v8  ;;  %v1306_v57 = vsub.f32 %v1296_v4, %v1298_v8 }
 0x277   :  { %v1300_v61 = vmul.f32 1.442695, %v1299_v55  ;;  %v1303_v3 = vmul.f32 1.442695, %v1302_v6  ;;  %v1307_v9 = vmul.f32 1.442695, %v1306_v57 }
 0x278   :  { %v1133_v55 = vld [vmem:[#allocation2 + $0x3] ss:$16 sm:$0x3] }
 0x279   :  { %2370 = vpow2.f32 %v1300_v61  ;;  %v1136_v6 = vld [vmem:[#allocation2 + $0x3] ss:$16 sm:$0x30] }
 0x27a   :  { %2372 = vpow2.f32 %v1303_v3  ;;  %v1138_v3 = vld [vmem:[#allocation2 + $0x3] ss:$16 sm:$0xc0] }
 0x27b   :  { %2374 = vpow2.f32 %v1307_v9 }
 0x283   :  { %v2371_v16 = vpop.eup %2370 }
 0x284   :  { %v2373_v17 = vpop.eup %2372 }
 0x285   :  { %v1305_v11 = vadd.f32 %v2373_v17, %v2371_v16  ;;  %v2375_v18 = vpop.eup %2374 }
 0x287   :  { %v1309_v20 = vadd.f32 %v2375_v18, %v1305_v11 }
 0x289   :  { %2376 = vlog2.f32 %v1309_v20 }
 0x293   :  { %v2377_v24 = vpop.eup %2376 }
 0x294   :  { %v1311_v27 = vmul.f32 0.6931472, %v2377_v24 }
 0x296   :  { %v1312_v52 = vadd.f32 %v1311_v27, %v1298_v8  ;;  %v1134_v8 = vld [vmem:[#allocation2 + $0x3] ss:$16 sm:$0xc] }
 0x297   :  { %v1135_v57 = vor.u32 %v1134_v8, %v1133_v55 }
 0x298   :  { %v1314_v29 = vadd.f32 %v1312_v52, %v1129_v28 }
 0x299   :  { %v1137_v9 = vor.u32 %v1136_v6, %v1135_v57 }
 0x29a   :  { %v1315_v30 = vsel %vm3029_vm12, %v1314_v29, -1e+30 }
 0x29b   :  { %1316 = vrot.lane.b32.xlu1 %v1315_v30, %s2582_s2  ;;  %v1139_v17 = vor.u32 %v1138_v3, %v1137_v9 }
 0x29f   :  { %1319 = vrot.lane.b32.xlu1 %v1315_v30, %s2581_s7 }
 0x30d   :  { %v1317_v37 = vpop.permute.xlu1 %1316 }
 0x30e   :  { %v1318_v62 = vsel %vm56_vm6, %v1317_v37, -1e+30 }
 0x30f   :  { %v1322_v63 = vmax.f32 %v1315_v30, %v1318_v62 }
 0x311   :  { %v1320_v1 = vpop.permute.xlu1 %1319 }
 0x312   :  { %v1321_v58 = vsel %vm3047_vm8, %v1320_v1, -1e+30 }
 0x313   :  { %v1323_v53 = vmax.f32 %v1322_v63, %v1321_v58 }
 0x315   :  { %v1324_v5 = vsub.f32 %v1315_v30, %v1323_v53  ;;  %v1327_v39 = vsub.f32 %v1318_v62, %v1323_v53  ;;  %v1331_v42 = vsub.f32 %v1321_v58, %v1323_v53 }
 0x317   :  { %v1325_v7 = vmul.f32 1.442695, %v1324_v5  ;;  %v1328_v2 = vmul.f32 1.442695, %v1327_v39  ;;  %v1332_v59 = vmul.f32 1.442695, %v1331_v42 }
 0x318   :  { %v1143_v5 = vld [vmem:[#allocation2 + $0x4] ss:$16 sm:$0x3] }
 0x319   :  { %2378 = vpow2.f32 %v1325_v7  ;;  %v1146_v39 = vld [vmem:[#allocation2 + $0x4] ss:$16 sm:$0x30] }
 0x31a   :  { %2380 = vpow2.f32 %v1328_v2  ;;  %v1148_v2 = vld [vmem:[#allocation2 + $0x4] ss:$16 sm:$0xc0] }
 0x31b   :  { %2382 = vpow2.f32 %v1332_v59 }
 0x323   :  { %v2379_v0 = vpop.eup %2378 }
 0x324   :  { %v2381_v45 = vpop.eup %2380 }
 0x325   :  { %v1330_v13 = vadd.f32 %v2381_v45, %v2379_v0  ;;  %v2383_v14 = vpop.eup %2382 }
 0x327   :  { %v1334_v4 = vadd.f32 %v2383_v14, %v1330_v13 }
 0x329   :  { %2384 = vlog2.f32 %v1334_v4 }
 0x333   :  { %v2385_v61 = vpop.eup %2384 }
 0x334   :  { %v1336_v16 = vmul.f32 0.6931472, %v2385_v61 }
 0x336   :  { %v1337_v11 = vadd.f32 %v1336_v16, %v1323_v53  ;;  %v1144_v53 = vld [vmem:[#allocation2 + $0x4] ss:$16 sm:$0xc] }
 0x337   :  { %v1145_v42 = vor.u32 %v1144_v53, %v1143_v5  ;;  %v83_v53 = vsel %vm73_vm0, %v2765_v36, -inf  ;;  %v89_v5 = vsel %vm73_vm0, %v2820_v41, -inf }
 0x338   :  { %v1339_v18 = vadd.f32 %v1337_v11, %v1139_v17 }
 0x339   :  { %v1147_v59 = vor.u32 %v1146_v39, %v1145_v42  ;;  %v77_v39 = vsel %vm73_vm0, %v2745_v34, -inf  ;;  %v101_v42 = vsel %vm73_vm0, %v2889_v47, -inf }
 0x33a   :  { %v1340_v20 = vsel %vm3029_vm12, %v1339_v18, -1e+30 }
 0x33b   :  { %1344 = vrot.lane.b32.xlu0 %v1340_v20, %s2581_s7  ;;  %1341 = vrot.lane.b32.xlu1 %v1340_v20, %s2582_s2  ;;  %v1149_v45 = vor.u32 %v1148_v2, %v1147_v59  ;;  %v107_v2 = vsel %vm73_vm0, %v2906_v48, -inf }
 0x3ad   :  { %v1345_v21 = vpop.permute.xlu0 %1344  ;;  %v1342_v12 = vpop.permute.xlu1 %1341 }
 0x3ae   :  { %v1343_v22 = vsel %vm56_vm6, %v1342_v12, -1e+30  ;;  %v1346_v24 = vsel %vm3047_vm8, %v1345_v21, -1e+30 }
 0x3af   :  { %v1347_v23 = vmax.f32 %v1340_v20, %v1343_v22 }
 0x3b1   :  { %v1348_v25 = vmax.f32 %v1347_v23, %v1346_v24 }
 0x3b3   :  { %v1349_v26 = vsub.f32 %v1340_v20, %v1348_v25  ;;  %v1352_v27 = vsub.f32 %v1343_v22, %v1348_v25  ;;  %v1356_v28 = vsub.f32 %v1346_v24, %v1348_v25 }
 0x3b5   :  { %v1350_v52 = vmul.f32 1.442695, %v1349_v26  ;;  %v1353_v29 = vmul.f32 1.442695, %v1352_v27  ;;  %v1357_v30 = vmul.f32 1.442695, %v1356_v28 }
 0x3b6   :  { %v1153_v26 = vld [vmem:[#allocation2 + $0x5] ss:$16 sm:$0x3] }
 0x3b7   :  { %2386 = vpow2.f32 %v1350_v52  ;;  %v1156_v27 = vld [vmem:[#allocation2 + $0x5] ss:$16 sm:$0x30] }
 0x3b8   :  { %2388 = vpow2.f32 %v1353_v29  ;;  %v1158_v29 = vld [vmem:[#allocation2 + $0x5] ss:$16 sm:$0xc0] }
 0x3b9   :  { %2390 = vpow2.f32 %v1357_v30 }
 0x3c1   :  { %v2387_v37 = vpop.eup %2386 }
 0x3c2   :  { %v2389_v62 = vpop.eup %2388 }
 0x3c3   :  { %v1355_v63 = vadd.f32 %v2389_v62, %v2387_v37  ;;  %v2391_v1 = vpop.eup %2390 }
 0x3c5   :  { %v1359_v58 = vadd.f32 %v2391_v1, %v1355_v63 }
 0x3c7   :  { %2392 = vlog2.f32 %v1359_v58 }
 0x3d1   :  { %v2393_v7 = vpop.eup %2392 }
 0x3d2   :  { %v1361_v0 = vmul.f32 0.6931472, %v2393_v7  ;;  %v95_v7 = vsel %vm73_vm0, %v2842_v43, -inf }
 0x3d4   :  { %v1362_v13 = vadd.f32 %v1361_v0, %v1348_v25  ;;  %v1154_v25 = vld [vmem:[#allocation2 + $0x5] ss:$16 sm:$0xc] }
 0x3d5   :  { %v1155_v28 = vor.u32 %v1154_v25, %v1153_v26 }
 0x3d6   :  { %v1364_v14 = vadd.f32 %v1362_v13, %v1149_v45 }
 0x3d7   :  { %v1157_v30 = vor.u32 %v1156_v27, %v1155_v28 }
 0x3d8   :  { %v1365_v4 = vsel %vm3029_vm12, %v1364_v14, -1e+30 }
 0x3d9   :  { %1369 = vrot.lane.b32.xlu0 %v1365_v4, %s2581_s7  ;;  %1366 = vrot.lane.b32.xlu1 %v1365_v4, %s2582_s2  ;;  %v1159_v62 = vor.u32 %v1158_v29, %v1157_v30 }
 0x44b   :  { %v1370_v8 = vpop.permute.xlu0 %1369  ;;  %v1367_v55 = vpop.permute.xlu1 %1366 }
 0x44c   :  { %v1368_v6 = vsel %vm56_vm6, %v1367_v55, -1e+30  ;;  %v1371_v61 = vsel %vm3047_vm8, %v1370_v8, -1e+30 }
 0x44d   :  { %v1372_v57 = vmax.f32 %v1365_v4, %v1368_v6 }
 0x44f   :  { %v1373_v3 = vmax.f32 %v1372_v57, %v1371_v61 }
 0x451   :  { %v1374_v9 = vsub.f32 %v1365_v4, %v1373_v3  ;;  %v1377_v16 = vsub.f32 %v1368_v6, %v1373_v3  ;;  %v1381_v17 = vsub.f32 %v1371_v61, %v1373_v3 }
 0x453   :  { %v1375_v11 = vmul.f32 1.442695, %v1374_v9  ;;  %v1378_v18 = vmul.f32 1.442695, %v1377_v16  ;;  %v1382_v20 = vmul.f32 1.442695, %v1381_v17 }
 0x455   :  { %2394 = vpow2.f32 %v1375_v11 }
 0x456   :  { %2396 = vpow2.f32 %v1378_v18 }
 0x457   :  { %2398 = vpow2.f32 %v1382_v20  ;;  %v1164_v20 = vld [vmem:[#allocation2 + $0x6] ss:$16 sm:$0xc] }
 0x45f   :  { %v2395_v21 = vpop.eup %2394 }
 0x460   :  { %v2397_v12 = vpop.eup %2396 }
 0x461   :  { %v1380_v22 = vadd.f32 %v2397_v12, %v2395_v21  ;;  %v2399_v23 = vpop.eup %2398  ;;  %v1163_v21 = vld [vmem:[#allocation2 + $0x6] ss:$16 sm:$0x3] }
 0x462   :  { %v1166_v12 = vld [vmem:[#allocation2 + $0x6] ss:$16 sm:$0x30] }
 0x463   :  { %v1384_v24 = vadd.f32 %v2399_v23, %v1380_v22  ;;  %v1165_v22 = vor.u32 %v1164_v20, %v1163_v21 }
 0x465   :  { %2400 = vlog2.f32 %v1384_v24  ;;  %v1168_v24 = vld [vmem:[#allocation2 + $0x6] ss:$16 sm:$0xc0]  ;;  %v1167_v25 = vor.u32 %v1166_v12, %v1165_v22 }
 0x467   :  { %v1169_v27 = vor.u32 %v1168_v24, %v1167_v25 }
 0x46f   :  { %v2401_v52 = vpop.eup %2400 }
 0x470   :  { %v1386_v37 = vmul.f32 0.6931472, %v2401_v52 }
 0x472   :  { %v1387_v63 = vadd.f32 %v1386_v37, %v1373_v3 }
 0x474   :  { %v1389_v1 = vadd.f32 %v1387_v63, %v1159_v62 }
 0x476   :  { %v1390_v58 = vsel %vm3029_vm12, %v1389_v1, -1e+30 }
 0x477   :  { %1394 = vrot.lane.b32.xlu0 %v1390_v58, %s2581_s7  ;;  %1391 = vrot.lane.b32.xlu1 %v1390_v58, %s2582_s2 }
 0x496   :  { %84 = vmax.xlane.f32.xlu0 %v83_v53 }
 0x49a   :  { %90 = vmax.xlane.f32.xlu0 %v89_v5 }
 0x49b   :  { %78 = vmax.xlane.f32.xlu1 %v77_v39 }
 0x49e   :  { %102 = vmax.xlane.f32.xlu0 %v101_v42 }
 0x49f   :  { %96 = vmax.xlane.f32.xlu1 %v95_v7 }
 0x4a3   :  { %108 = vmax.xlane.f32.xlu1 %v107_v2 }
 0x4e9   :  { %v1395_v59 = vpop.permute.xlu0 %1394  ;;  %v1392_v0 = vpop.permute.xlu1 %1391 }
 0x4ea   :  { %v1393_v45 = vsel %vm56_vm6, %v1392_v0, -1e+30  ;;  %v1396_v14 = vsel %vm3047_vm8, %v1395_v59, -1e+30 }
 0x4eb   :  { %v1397_v13 = vmax.f32 %v1390_v58, %v1393_v45 }
 0x4ed   :  { %v1398_v4 = vmax.f32 %v1397_v13, %v1396_v14 }
 0x4ef   :  { %v1399_v8 = vsub.f32 %v1390_v58, %v1398_v4  ;;  %v1402_v55 = vsub.f32 %v1393_v45, %v1398_v4  ;;  %v1406_v6 = vsub.f32 %v1396_v14, %v1398_v4 }
 0x4f1   :  { %v1400_v57 = vmul.f32 1.442695, %v1399_v8  ;;  %v1403_v61 = vmul.f32 1.442695, %v1402_v55  ;;  %v1407_v3 = vmul.f32 1.442695, %v1406_v6 }
 0x4f3   :  { %2402 = vpow2.f32 %v1400_v57 }
 0x4f4   :  { %2404 = vpow2.f32 %v1403_v61 }
 0x4f5   :  { %2406 = vpow2.f32 %v1407_v3 }
 0x4fd   :  { %v2403_v9 = vpop.eup %2402 }
 0x4fe   :  { %v2405_v16 = vpop.eup %2404 }
 0x4ff   :  { %v1405_v17 = vadd.f32 %v2405_v16, %v2403_v9  ;;  %v2407_v11 = vpop.eup %2406 }
 0x501   :  { %v1409_v18 = vadd.f32 %v2407_v11, %v1405_v17 }
 0x503   :  { %2408 = vlog2.f32 %v1409_v18 }
 0x50d   :  { %v2409_v23 = vpop.eup %2408 }
 0x50e   :  { %v1411_v26 = vmul.f32 0.6931472, %v2409_v23 }
 0x510   :  { %v1412_v28 = vadd.f32 %v1411_v26, %v1398_v4 }
 0x512   :  { %v1414_v52 = vadd.f32 %v1412_v28, %v1169_v27 }
 0x514   :  { %v1415_v29 = vsel %vm3029_vm12, %v1414_v52, -1e+30 }
 0x515   :  { %1419 = vrot.lane.b32.xlu0 %v1415_v29, %s2581_s7  ;;  %1416 = vrot.lane.b32.xlu1 %v1415_v29, %s2582_s2 }
 0x523   :  { %v3109_v30 = vpop.xlane.xlu0 %84 }
 0x524   :  { %v125_v37 = vsub.f32 %v2765_v36, %v3109_v30 }
 0x526   :  { %v144_v62 = vmul.f32 1.442695, %v125_v37 }
 0x527   :  { %v3113_v63 = vpop.xlane.xlu0 %90 }
 0x528   :  { %v3115_v1 = vpop.xlane.xlu1 %78  ;;  %v127_v58 = vsub.f32 %v2820_v41, %v3113_v63  ;;  %2410 = vpow2.f32 %v144_v62 }
 0x529   :  { %v123_v53 = vsub.f32 %v2745_v34, %v3115_v1  ;;  %v113_v34 = vsel %vm73_vm0, %v2934_v49, -inf }
 0x52a   :  { %v148_v5 = vmul.f32 1.442695, %v127_v58 }
 0x52b   :  { %v140_v39 = vmul.f32 1.442695, %v123_v53  ;;  %v3121_v42 = vpop.xlane.xlu0 %102 }
 0x52c   :  { %2412 = vpow2.f32 %v148_v5  ;;  %v3123_v7 = vpop.xlane.xlu1 %96  ;;  %v131_v36 = vsub.f32 %v2889_v47, %v3121_v42 }
 0x52d   :  { %2414 = vpow2.f32 %v140_v39  ;;  %v129_v2 = vsub.f32 %v2842_v43, %v3123_v7  ;;  %v119_v43 = vsel %vm73_vm0, %v2941_v51, -inf }
 0x52e   :  { %v156_v59 = vmul.f32 1.442695, %v131_v36 }
 0x52f   :  { %v152_v41 = vmul.f32 1.442695, %v129_v2 }
 0x530   :  { %2416 = vpow2.f32 %v156_v59  ;;  %v3129_v0 = vpop.xlane.xlu1 %108 }
 0x531   :  { %2418 = vpow2.f32 %v152_v41  ;;  %v133_v45 = vsub.f32 %v2906_v48, %v3129_v0 }
 0x532   :  { %v2411_v14 = vpop.eup %2410 }
 0x533   :  { %v160_v13 = vmul.f32 1.442695, %v133_v45  ;;  %v179_v6 = vsel %vm73_vm0, %v2411_v14, 0.0 }
 0x534   :  { %114 = vmax.xlane.f32.xlu0 %v113_v34 }
 0x535   :  { %2420 = vpow2.f32 %v160_v13 }
 0x536   :  { %v2413_v47 = vpop.eup %2412 }
 0x537   :  { %v2415_v4 = vpop.eup %2414  ;;  %v185_v57 = vsel %vm73_vm0, %v2413_v47, 0.0 }
 0x538   :  { %v173_v8 = vsel %vm73_vm0, %v2415_v4, 0.0 }
 0x539   :  { %120 = vmax.xlane.f32.xlu1 %v119_v43  ;;  %174 = vadd.xlane.f32.xlu0 %v173_v8 }
 0x53a   :  { %v2417_v55 = vpop.eup %2416 }
 0x53b   :  { %v2419_v61 = vpop.eup %2418  ;;  %v197_v3 = vsel %vm73_vm0, %v2417_v55, 0.0 }
 0x53c   :  { %v191_v48 = vsel %vm73_vm0, %v2419_v61, 0.0 }
 0x53d   :  { %180 = vadd.xlane.f32.xlu1 %v179_v6  ;;  %186 = vadd.xlane.f32.xlu0 %v185_v57 }
 0x53f   :  { %v2421_v9 = vpop.eup %2420 }
 0x540   :  { %v203_v16 = vsel %vm73_vm0, %v2421_v9, 0.0 }
 0x541   :  { %192 = vadd.xlane.f32.xlu1 %v191_v48  ;;  %198 = vadd.xlane.f32.xlu0 %v197_v3 }
 0x545   :  { %204 = vadd.xlane.f32.xlu1 %v203_v16 }
 0x587   :  { %v1417_v17 = vpop.permute.xlu1 %1416  ;;  %v1420_v18 = vpop.permute.xlu0 %1419 }
 0x588   :  { %v1418_v11 = vsel %vm56_vm6, %v1417_v17, -1e+30  ;;  %v1421_v21 = vsel %vm3047_vm8, %v1420_v18, -1e+30 }
 0x589   :  { %v1422_v20 = vmax.f32 %v1415_v29, %v1418_v11 }
 0x58b   :  { %v3147_v12 = vmax.f32 %v1422_v20, %v1421_v21 }
 0x58d   :  { %v1424_v22 = vsub.f32 %v1415_v29, %v3147_v12  ;;  %v1427_v23 = vsub.f32 %v1418_v11, %v3147_v12  ;;  %v1431_v26 = vsub.f32 %v1421_v21, %v3147_v12 }
 0x58f   :  { %v1425_v24 = vmul.f32 1.442695, %v1424_v22  ;;  %v1428_v25 = vmul.f32 1.442695, %v1427_v23  ;;  %v1432_v27 = vmul.f32 1.442695, %v1431_v26 }
 0x590   :  { %v1176_v26 = vld [vmem:[#allocation2 + $0x7] ss:$16 sm:$0x30] }
 0x591   :  { %2422 = vpow2.f32 %v1425_v24 }
 0x592   :  { %2424 = vpow2.f32 %v1428_v25  ;;  %v1173_v25 = vld [vmem:[#allocation2 + $0x7] ss:$16 sm:$0x3] }
 0x593   :  { %2426 = vpow2.f32 %v1432_v27 }
 0x59b   :  { %v2423_v52 = vpop.eup %2422 }
 0x59c   :  { %v2425_v62 = vpop.eup %2424 }
 0x59d   :  { %v1430_v53 = vadd.f32 %v2425_v62, %v2423_v52  ;;  %v2427_v36 = vpop.eup %2426  ;;  %v1178_v62 = vld [vmem:[#allocation2 + $0x7] ss:$16 sm:$0xc0] }
 0x59f   :  { %v1434_v34 = vadd.f32 %v2427_v36, %v1430_v53 }
 0x5c1   :  { %v3152_v28 = vpop.xlane.xlu0 %114 }
 0x5c2   :  { %v135_v37 = vsub.f32 %v2934_v49, %v3152_v28 }
 0x5c4   :  { %v164_v58 = vmul.f32 1.442695, %v135_v37 }
 0x5c6   :  { %2428 = vpow2.f32 %v164_v58  ;;  %v3156_v29 = vpop.xlane.xlu1 %120  ;;  %v175_v5 = vpop.xlane.xlu0 %174 }
 0x5c7   :  { %v137_v39 = vsub.f32 %v2941_v51, %v3156_v29  ;;  %2430 = vlog2.f32 %v175_v5 }
 0x5c9   :  { %v168_v2 = vmul.f32 1.442695, %v137_v39 }
 0x5ca   :  { %v181_v59 = vpop.xlane.xlu1 %180  ;;  %v187_v41 = vpop.xlane.xlu0 %186 }
 0x5cb   :  { %2432 = vpow2.f32 %v168_v2 }
 0x5cc   :  { %2434 = vlog2.f32 %v181_v59 }
 0x5cd   :  { %2436 = vlog2.f32 %v187_v41 }
 0x5ce   :  { %v193_v49 = vpop.xlane.xlu1 %192  ;;  %v199_v45 = vpop.xlane.xlu0 %198  ;;  %2438 = vlog2.f32 %v1434_v34 }
 0x5cf   :  { %2440 = vlog2.f32 %v193_v49 }
 0x5d0   :  { %v2429_v13 = vpop.eup %2428  ;;  %2442 = vlog2.f32 %v199_v45 }
 0x5d1   :  { %v2431_v14 = vpop.eup %2430  ;;  %v209_v47 = vsel %vm73_vm0, %v2429_v13, 0.0 }
 0x5d2   :  { %v221_v43 = vmul.f32 0.6931472, %v2431_v14  ;;  %210 = vadd.xlane.f32.xlu0 %v209_v47  ;;  %v205_v51 = vpop.xlane.xlu1 %204 }
 0x5d3   :  { %2444 = vlog2.f32 %v205_v51 }
 0x5d4   :  { %v251_v4 = vadd.f32 %v221_v43, %v3115_v1  ;;  %v1174_v1 = vld [vmem:[#allocation2 + $0x7] ss:$16 sm:$0xc] }
 0x5d5   :  { %v2433_v8 = vpop.eup %2432 }
 0x5d6   :  { %v2435_v55 = vpop.eup %2434  ;;  %v373_v6 = vsub.f32 %v3001_v35, %v251_v4  ;;  %v215_v57 = vsel %vm73_vm0, %v2433_v8, 0.0 }
 0x5d7   :  { %v2437_v61 = vpop.eup %2436  ;;  %v225_v48 = vmul.f32 0.6931472, %v2435_v55  ;;  %216 = vadd.xlane.f32.xlu1 %v215_v57 }
 0x5d8   :  { %v2439_v3 = vpop.eup %2438  ;;  %375 = vst [vmem:[#allocation2 + $0x8] sm:$0xff] %v373_v6  ;;  %v229_v9 = vmul.f32 0.6931472, %v2437_v61 }
 0x5d9   :  { %v2441_v16 = vpop.eup %2440  ;;  %v253_v17 = vadd.f32 %v225_v48, %v3109_v30  ;;  %v1436_v35 = vmul.f32 0.6931472, %v2439_v3  ;;  %v1175_v30 = vor.u32 %v1174_v1, %v1173_v25 }
 0x5da   :  { %v2443_v11 = vpop.eup %2442  ;;  %v255_v18 = vadd.f32 %v229_v9, %v3113_v63  ;;  %v233_v20 = vmul.f32 0.6931472, %v2441_v16 }
 0x5db   :  { %v477_v21 = vsub.f32 %v3003_v38, %v253_v17  ;;  %v237_v22 = vmul.f32 0.6931472, %v2443_v11  ;;  %v1177_v58 = vor.u32 %v1176_v26, %v1175_v30  ;;  %v1437_v53 = vadd.f32 %v1436_v35, %v3147_v12 }
 0x5dc   :  { %v581_v23 = vsub.f32 %v3005_v40, %v255_v18  ;;  %v257_v24 = vadd.f32 %v233_v20, %v3123_v7 }
 0x5dd   :  { %v2445_v27 = vpop.eup %2444  ;;  %479 = vst [vmem:[#allocation2 + $0x18] sm:$0xff] %v477_v21  ;;  %v259_v52 = vadd.f32 %v237_v22, %v3121_v42  ;;  %v1179_v7 = vor.u32 %v1178_v62, %v1177_v58 }
 0x5de   :  { %583 = vst [vmem:[#allocation2 + $0x28] sm:$0xff] %v581_v23  ;;  %v685_v63 = vsub.f32 %v3007_v44, %v257_v24  ;;  %v241_v37 = vmul.f32 0.6931472, %v2445_v27 }
 0x5df   :  { %v789_v38 = vsub.f32 %v3009_v46, %v259_v52  ;;  %v1439_v39 = vadd.f32 %v1437_v53, %v1179_v7 }
 0x5e0   :  { %687 = vst [vmem:[#allocation2 + $0x38] sm:$0xff] %v685_v63  ;;  %v261_v40 = vadd.f32 %v241_v37, %v3129_v0 }
 0x5e1   :  { %791 = vst [vmem:[#allocation2 + $0x48] sm:$0xff] %v789_v38  ;;  %v1440_v42 = vsel %vm3029_vm12, %v1439_v39, -1e+30 }
 0x5e2   :  { %v893_v5 = vsub.f32 %v3011_v54, %v261_v40 }
 0x5e4   :  { %895 = vst [vmem:[#allocation2 + $0x58] sm:$0xff] %v893_v5  ;;  %v1183_v17 = vld [vmem:[#allocation2 + $0x8] ss:$16 sm:$0x3] }
 0x5e7   :  { %v1184_v16 = vld [vmem:[#allocation2 + $0x8] ss:$16 sm:$0xc] }
 0x5e8   :  { %1441 = vrot.lane.b32.xlu0 %v1440_v42, %s2582_s2  ;;  %1444 = vrot.lane.b32.xlu1 %v1440_v42, %s2581_s7  ;;  %v1185_v11 = vor.u32 %v1184_v16, %v1183_v17  ;;  %v1204_v17 = vld [vmem:[#allocation2 + $0xa] ss:$16 sm:$0xc] }
 0x65f   :  { %v211_v44 = vpop.xlane.xlu0 %210 }
 0x660   :  { %2446 = vlog2.f32 %v211_v44  ;;  %v1193_v44 = vld [vmem:[#allocation2 + $0x9] ss:$16 sm:$0x3] }
 0x663   :  { %v1442_v46 = vpop.permute.xlu0 %1441 }
 0x664   :  { %v217_v12 = vpop.xlane.xlu1 %216  ;;  %v1443_v0 = vsel %vm56_vm6, %v1442_v46, -1e+30  ;;  %v1196_v46 = vld [vmem:[#allocation2 + $0x9] ss:$16 sm:$0x30] }
 0x665   :  { %2448 = vlog2.f32 %v217_v12  ;;  %v1447_v36 = vmax.f32 %v1440_v42, %v1443_v0 }
 0x668   :  { %v1445_v2 = vpop.permute.xlu1 %1444 }
 0x669   :  { %v1446_v54 = vsel %vm3047_vm8, %v1445_v2, -1e+30 }
 0x66a   :  { %v2447_v59 = vpop.eup %2446  ;;  %v1448_v41 = vmax.f32 %v1447_v36, %v1446_v54 }
 0x66b   :  { %v245_v34 = vmul.f32 0.6931472, %v2447_v59 }
 0x66c   :  { %v1449_v49 = vsub.f32 %v1440_v42, %v1448_v41  ;;  %v1452_v45 = vsub.f32 %v1443_v0, %v1448_v41  ;;  %v1456_v13 = vsub.f32 %v1446_v54, %v1448_v41  ;;  %v1194_v42 = vld [vmem:[#allocation2 + $0x9] ss:$16 sm:$0xc] }
 0x66d   :  { %v263_v14 = vadd.f32 %v245_v34, %v3152_v28  ;;  %v1195_v12 = vor.u32 %v1194_v42, %v1193_v44  ;;  %v1214_v44 = vld [vmem:[#allocation2 + $0xb] ss:$16 sm:$0xc] }
 0x66e   :  { %v1450_v47 = vmul.f32 1.442695, %v1449_v49  ;;  %v1453_v43 = vmul.f32 1.442695, %v1452_v45  ;;  %v1457_v8 = vmul.f32 1.442695, %v1456_v13 }
 0x66f   :  { %v2449_v51 = vpop.eup %2448  ;;  %v997_v4 = vsub.f32 %v3013_v56, %v263_v14  ;;  %v1186_v56 = vld [vmem:[#allocation2 + $0x8] ss:$16 sm:$0x30]  ;;  %v1197_v2 = vor.u32 %v1196_v46, %v1195_v12  ;;  %v1213_v46 = vld [vmem:[#allocation2 + $0xb] ss:$16 sm:$0x3] }
 0x670   :  { %v249_v55 = vmul.f32 0.6931472, %v2449_v51  ;;  %2450 = vpow2.f32 %v1450_v47  ;;  %v1187_v1 = vor.u32 %v1186_v56, %v1185_v11  ;;  %v1203_v56 = vld [vmem:[#allocation2 + $0xa] ss:$16 sm:$0x3] }
 0x671   :  { %999 = vst [vmem:[#allocation2 + $0x68] sm:$0xff] %v997_v4  ;;  %2452 = vpow2.f32 %v1453_v43  ;;  %v1206_v11 = vld [vmem:[#allocation2 + $0xa] ss:$16 sm:$0x30] }
 0x672   :  { %v265_v6 = vadd.f32 %v249_v55, %v3156_v29  ;;  %2454 = vpow2.f32 %v1457_v8  ;;  %v1216_v12 = vld [vmem:[#allocation2 + $0xb] ss:$16 sm:$0x30] }
 0x674   :  { %v1101_v57 = vsub.f32 %v3015_v60, %v265_v6 }
 0x676   :  { %1103 = vst [vmem:[#allocation2 + $0x78] sm:$0xff] %v1101_v57 }
 0x67a   :  { %v2451_v61 = vpop.eup %2450 }
 0x67b   :  { %v2453_v48 = vpop.eup %2452 }
 0x67c   :  { %v1455_v3 = vadd.f32 %v2453_v48, %v2451_v61  ;;  %v2455_v28 = vpop.eup %2454 }
 0x67d   :  { %v1188_v20 = vld [vmem:[#allocation2 + $0x8] ss:$16 sm:$0xc0]  ;;  %v1198_v36 = vld [vmem:[#allocation2 + $0x9] ss:$16 sm:$0xc0] }
 0x67e   :  { %v1459_v9 = vadd.f32 %v2455_v28, %v1455_v3  ;;  %v1189_v22 = vor.u32 %v1188_v20, %v1187_v1  ;;  %v1199_v59 = vor.u32 %v1198_v36, %v1197_v2  ;;  %v1208_v1 = vld [vmem:[#allocation2 + $0xa] ss:$16 sm:$0xc0]  ;;  %v1218_v2 = vld [vmem:[#allocation2 + $0xb] ss:$16 sm:$0xc0] }
 0x680   :  { %2456 = vlog2.f32 %v1459_v9 }
 0x68a   :  { %v2457_v18 = vpop.eup %2456 }
 0x68b   :  { %v1461_v21 = vmul.f32 0.6931472, %v2457_v18  ;;  %v1205_v18 = vor.u32 %v1204_v17, %v1203_v56  ;;  %v1224_v56 = vld [vmem:[#allocation2 + $0xc] ss:$16 sm:$0xc] }
 0x68d   :  { %v1462_v29 = vadd.f32 %v1461_v21, %v1448_v41  ;;  %v1207_v21 = vor.u32 %v1206_v11, %v1205_v18  ;;  %v1223_v11 = vld [vmem:[#allocation2 + $0xc] ss:$16 sm:$0x3] }
 0x68e   :  { %v1226_v18 = vld [vmem:[#allocation2 + $0xc] ss:$16 sm:$0x30] }
 0x68f   :  { %v1464_v35 = vadd.f32 %v1462_v29, %v1189_v22  ;;  %v1209_v29 = vor.u32 %v1208_v1, %v1207_v21  ;;  %v1228_v21 = vld [vmem:[#allocation2 + $0xc] ss:$16 sm:$0xc0] }
 0x691   :  { %v1465_v60 = vsel %vm3029_vm12, %v1464_v35, -1e+30 }
 0x692   :  { %1469 = vrot.lane.b32.xlu0 %v1465_v60, %s2581_s7  ;;  %1466 = vrot.lane.b32.xlu1 %v1465_v60, %s2582_s2 }
 0x704   :  { %v1470_v23 = vpop.permute.xlu0 %1469  ;;  %v1467_v24 = vpop.permute.xlu1 %1466 }
 0x705   :  { %v1468_v25 = vsel %vm56_vm6, %v1467_v24, -1e+30  ;;  %v1471_v27 = vsel %vm3047_vm8, %v1470_v23, -1e+30 }
 0x706   :  { %v1472_v26 = vmax.f32 %v1465_v60, %v1468_v25 }
 0x708   :  { %v1473_v52 = vmax.f32 %v1472_v26, %v1471_v27 }
 0x70a   :  { %v1474_v30 = vsub.f32 %v1465_v60, %v1473_v52  ;;  %v1477_v63 = vsub.f32 %v1468_v25, %v1473_v52  ;;  %v1481_v37 = vsub.f32 %v1471_v27, %v1473_v52 }
 0x70c   :  { %v1475_v62 = vmul.f32 1.442695, %v1474_v30  ;;  %v1478_v38 = vmul.f32 1.442695, %v1477_v63  ;;  %v1482_v58 = vmul.f32 1.442695, %v1481_v37 }
 0x70e   :  { %2458 = vpow2.f32 %v1475_v62 }
 0x70f   :  { %2460 = vpow2.f32 %v1478_v38 }
 0x710   :  { %2462 = vpow2.f32 %v1482_v58 }
 0x718   :  { %v2459_v53 = vpop.eup %2458 }
 0x719   :  { %v2461_v40 = vpop.eup %2460 }
 0x71a   :  { %v1480_v7 = vadd.f32 %v2461_v40, %v2459_v53  ;;  %v2463_v5 = vpop.eup %2462 }
 0x71c   :  { %v1484_v39 = vadd.f32 %v2463_v5, %v1480_v7 }
 0x71e   :  { %2464 = vlog2.f32 %v1484_v39 }
 0x728   :  { %v2465_v0 = vpop.eup %2464 }
 0x729   :  { %v1486_v54 = vmul.f32 0.6931472, %v2465_v0  ;;  %v1215_v0 = vor.u32 %v1214_v44, %v1213_v46  ;;  %v1234_v46 = vld [vmem:[#allocation2 + $0xd] ss:$16 sm:$0xc] }
 0x72b   :  { %v1487_v41 = vadd.f32 %v1486_v54, %v1473_v52  ;;  %v1217_v54 = vor.u32 %v1216_v12, %v1215_v0  ;;  %v1233_v12 = vld [vmem:[#allocation2 + $0xd] ss:$16 sm:$0x3] }
 0x72c   :  { %v1236_v0 = vld [vmem:[#allocation2 + $0xd] ss:$16 sm:$0x30] }
 0x72d   :  { %v1489_v34 = vadd.f32 %v1487_v41, %v1199_v59  ;;  %v1219_v41 = vor.u32 %v1218_v2, %v1217_v54  ;;  %v1238_v54 = vld [vmem:[#allocation2 + $0xd] ss:$16 sm:$0xc0] }
 0x72f   :  { %v1490_v49 = vsel %vm3029_vm12, %v1489_v34, -1e+30 }
 0x730   :  { %1494 = vrot.lane.b32.xlu0 %v1490_v49, %s2581_s7  ;;  %1491 = vrot.lane.b32.xlu1 %v1490_v49, %s2582_s2 }
 0x7a2   :  { %v1495_v45 = vpop.permute.xlu0 %1494  ;;  %v1492_v13 = vpop.permute.xlu1 %1491 }
 0x7a3   :  { %v1493_v14 = vsel %vm56_vm6, %v1492_v13, -1e+30  ;;  %v1496_v43 = vsel %vm3047_vm8, %v1495_v45, -1e+30 }
 0x7a4   :  { %v1497_v47 = vmax.f32 %v1490_v49, %v1493_v14 }
 0x7a6   :  { %v1498_v51 = vmax.f32 %v1497_v47, %v1496_v43 }
 0x7a8   :  { %v1499_v4 = vsub.f32 %v1490_v49, %v1498_v51  ;;  %v1502_v8 = vsub.f32 %v1493_v14, %v1498_v51  ;;  %v1506_v55 = vsub.f32 %v1496_v43, %v1498_v51 }
 0x7aa   :  { %v1500_v6 = vmul.f32 1.442695, %v1499_v4  ;;  %v1503_v57 = vmul.f32 1.442695, %v1502_v8  ;;  %v1507_v61 = vmul.f32 1.442695, %v1506_v55 }
 0x7ac   :  { %2466 = vpow2.f32 %v1500_v6 }
 0x7ad   :  { %2468 = vpow2.f32 %v1503_v57 }
 0x7ae   :  { %2470 = vpow2.f32 %v1507_v61 }
 0x7b6   :  { %v2467_v48 = vpop.eup %2466 }
 0x7b7   :  { %v2469_v3 = vpop.eup %2468 }
 0x7b8   :  { %v1505_v28 = vadd.f32 %v2469_v3, %v2467_v48  ;;  %v2471_v9 = vpop.eup %2470 }
 0x7ba   :  { %v1509_v16 = vadd.f32 %v2471_v9, %v1505_v28 }
 0x7bc   :  { %2472 = vlog2.f32 %v1509_v16 }
 0x7c6   :  { %v2473_v20 = vpop.eup %2472 }
 0x7c7   :  { %v1511_v22 = vmul.f32 0.6931472, %v2473_v20  ;;  %v1225_v20 = vor.u32 %v1224_v56, %v1223_v11  ;;  %v1244_v11 = vld [vmem:[#allocation2 + $0xe] ss:$16 sm:$0xc] }
 0x7c9   :  { %v1512_v35 = vadd.f32 %v1511_v22, %v1498_v51  ;;  %v1227_v22 = vor.u32 %v1226_v18, %v1225_v20  ;;  %v1243_v18 = vld [vmem:[#allocation2 + $0xe] ss:$16 sm:$0x3] }
 0x7ca   :  { %v1246_v20 = vld [vmem:[#allocation2 + $0xe] ss:$16 sm:$0x30] }
 0x7cb   :  { %v1514_v60 = vadd.f32 %v1512_v35, %v1209_v29  ;;  %v1229_v35 = vor.u32 %v1228_v21, %v1227_v22  ;;  %v1248_v22 = vld [vmem:[#allocation2 + $0xe] ss:$16 sm:$0xc0] }
 0x7cd   :  { %v1515_v23 = vsel %vm3029_vm12, %v1514_v60, -1e+30 }
 0x7ce   :  { %1519 = vrot.lane.b32.xlu0 %v1515_v23, %s2581_s7  ;;  %1516 = vrot.lane.b32.xlu1 %v1515_v23, %s2582_s2 }
 0x840   :  { %v1520_v24 = vpop.permute.xlu0 %1519  ;;  %v1517_v25 = vpop.permute.xlu1 %1516 }
 0x841   :  { %v1518_v26 = vsel %vm56_vm6, %v1517_v25, -1e+30  ;;  %v1521_v52 = vsel %vm3047_vm8, %v1520_v24, -1e+30 }
 0x842   :  { %v1522_v27 = vmax.f32 %v1515_v23, %v1518_v26 }
 0x844   :  { %v1523_v30 = vmax.f32 %v1522_v27, %v1521_v52 }
 0x846   :  { %v1524_v63 = vsub.f32 %v1515_v23, %v1523_v30  ;;  %v1527_v37 = vsub.f32 %v1518_v26, %v1523_v30  ;;  %v1531_v62 = vsub.f32 %v1521_v52, %v1523_v30 }
 0x848   :  { %v1525_v38 = vmul.f32 1.442695, %v1524_v63  ;;  %v1528_v58 = vmul.f32 1.442695, %v1527_v37  ;;  %v1532_v53 = vmul.f32 1.442695, %v1531_v62 }
 0x84a   :  { %2474 = vpow2.f32 %v1525_v38 }
 0x84b   :  { %2476 = vpow2.f32 %v1528_v58 }
 0x84c   :  { %2478 = vpow2.f32 %v1532_v53 }
 0x854   :  { %v2475_v40 = vpop.eup %2474 }
 0x855   :  { %v2477_v7 = vpop.eup %2476 }
 0x856   :  { %v1530_v5 = vadd.f32 %v2477_v7, %v2475_v40  ;;  %v2479_v39 = vpop.eup %2478 }
 0x858   :  { %v1534_v42 = vadd.f32 %v2479_v39, %v1530_v5 }
 0x85a   :  { %2480 = vlog2.f32 %v1534_v42 }
 0x864   :  { %v2481_v36 = vpop.eup %2480 }
 0x865   :  { %v1536_v59 = vmul.f32 0.6931472, %v2481_v36  ;;  %v1235_v36 = vor.u32 %v1234_v46, %v1233_v12  ;;  %v3308_v46 = vld [vmem:[%s3526_s5 + $0x8] sm:$0xff]  ;;  %v3314_v12 = vld [vmem:[%s3526_s5] sm:$0xff] }
 0x866   :  { %vm1865_vm7 = vcmp.ne.s32.totalorder %v3308_v46, 37 }
 0x867   :  { %v1537_v34 = vadd.f32 %v1536_v59, %v1523_v30  ;;  %v1237_v59 = vor.u32 %v1236_v0, %v1235_v36  ;;  %v3319_v0 = vld [vmem:[%s3526_s5 + $0x10] sm:$0xff]  ;;  %v3326_v36 = vld [vmem:[%s3526_s5 + $0x18] sm:$0xff] }
 0x869   :  { %v1539_v49 = vadd.f32 %v1537_v34, %v1219_v41  ;;  %v1239_v34 = vor.u32 %v1238_v54, %v1237_v59  ;;  %v3338_v54 = vld [vmem:[%s3526_s5 + $0x28] sm:$0xff]  ;;  %v3343_v59 = vld [vmem:[%s3526_s5 + $0x30] sm:$0xff] }
 0x86b   :  { %v1540_v45 = vsel %vm3029_vm12, %v1539_v49, -1e+30 }
 0x86c   :  { %1544 = vrot.lane.b32.xlu0 %v1540_v45, %s2581_s7  ;;  %1541 = vrot.lane.b32.xlu1 %v1540_v45, %s2582_s2 }
 0x8de   :  { %v1545_v13 = vpop.permute.xlu0 %1544  ;;  %v1542_v14 = vpop.permute.xlu1 %1541 }
 0x8df   :  { %v1543_v47 = vsel %vm56_vm6, %v1542_v14, -1e+30  ;;  %v1546_v51 = vsel %vm3047_vm8, %v1545_v13, -1e+30 }
 0x8e0   :  { %v1547_v43 = vmax.f32 %v1540_v45, %v1543_v47 }
 0x8e2   :  { %v1548_v4 = vmax.f32 %v1547_v43, %v1546_v51 }
 0x8e4   :  { %v1549_v8 = vsub.f32 %v1540_v45, %v1548_v4  ;;  %v1552_v55 = vsub.f32 %v1543_v47, %v1548_v4  ;;  %v1556_v6 = vsub.f32 %v1546_v51, %v1548_v4 }
 0x8e6   :  { %v1550_v57 = vmul.f32 1.442695, %v1549_v8  ;;  %v1553_v61 = vmul.f32 1.442695, %v1552_v55  ;;  %v1557_v48 = vmul.f32 1.442695, %v1556_v6 }
 0x8e8   :  { %2482 = vpow2.f32 %v1550_v57 }
 0x8e9   :  { %2484 = vpow2.f32 %v1553_v61 }
 0x8ea   :  { %2486 = vpow2.f32 %v1557_v48 }
 0x8f2   :  { %v2483_v3 = vpop.eup %2482 }
 0x8f3   :  { %v2485_v28 = vpop.eup %2484 }
 0x8f4   :  { %v1555_v9 = vadd.f32 %v2485_v28, %v2483_v3  ;;  %v2487_v16 = vpop.eup %2486 }
 0x8f6   :  { %v1559_v17 = vadd.f32 %v2487_v16, %v1555_v9 }
 0x8f8   :  { %2488 = vlog2.f32 %v1559_v17 }
 0x902   :  { %v2489_v1 = vpop.eup %2488 }
 0x903   :  { %v1561_v29 = vmul.f32 0.6931472, %v2489_v1  ;;  %v1245_v1 = vor.u32 %v1244_v11, %v1243_v18 }
 0x905   :  { %v1562_v60 = vadd.f32 %v1561_v29, %v1548_v4  ;;  %v1247_v29 = vor.u32 %v1246_v20, %v1245_v1  ;;  %v1258_v20 = vld [vmem:[#allocation2 + $0xf] ss:$16 sm:$0xc0] }
 0x907   :  { %v1564_v23 = vadd.f32 %v1562_v60, %v1229_v35  ;;  %v1249_v60 = vor.u32 %v1248_v22, %v1247_v29 }
 0x909   :  { %v1565_v24 = vsel %vm3029_vm12, %v1564_v23, -1e+30 }
 0x90a   :  { %1569 = vrot.lane.b32.xlu0 %v1565_v24, %s2581_s7  ;;  %1566 = vrot.lane.b32.xlu1 %v1565_v24, %s2582_s2 }
 0x97c   :  { %v1570_v25 = vpop.permute.xlu0 %1569  ;;  %v1567_v26 = vpop.permute.xlu1 %1566 }
 0x97d   :  { %v1568_v27 = vsel %vm56_vm6, %v1567_v26, -1e+30  ;;  %v1571_v30 = vsel %vm3047_vm8, %v1570_v25, -1e+30  ;;  %v1985_v26 = vadd.s32 4294967294, %v2996_v33  ;;  %v3257_v33 = vld [vmem:[%s3525_s4] sm:$0xff] }
 0x97e   :  { %v1572_v52 = vmax.f32 %v1565_v24, %v1568_v27 }
 0x980   :  { %v1573_v63 = vmax.f32 %v1572_v52, %v1571_v30 }
 0x982   :  { %v1574_v37 = vsub.f32 %v1565_v24, %v1573_v63  ;;  %v1577_v62 = vsub.f32 %v1568_v27, %v1573_v63  ;;  %v1581_v38 = vsub.f32 %v1571_v30, %v1573_v63  ;;  %v3245_v27 = vld [vmem:[%s3525_s4 + $0x8] sm:$0xff]  ;;  %v3252_v30 = vld [vmem:[%s3525_s4 + $0x10] sm:$0xff] }
 0x983   :  { %v1687_v52 = vsel %vm73_vm0, %v3245_v27, -inf  ;;  %v1690_v31 = vsel %vm73_vm0, %v3252_v30, -inf }
 0x984   :  { %v1575_v58 = vmul.f32 1.442695, %v1574_v37  ;;  %v1578_v53 = vmul.f32 1.442695, %v1577_v62  ;;  %v1582_v40 = vmul.f32 1.442695, %v1581_v38 }
 0x985   :  { %v3271_v37 = vld [vmem:[%s3525_s4 + $0x18] sm:$0xff] }
 0x986   :  { %2490 = vpow2.f32 %v1575_v58  ;;  %v1693_v38 = vsel %vm73_vm0, %v3271_v37, -inf  ;;  %v3280_v58 = vld [vmem:[%s3525_s4 + $0x30] sm:$0xff] }
 0x987   :  { %2492 = vpow2.f32 %v1578_v53  ;;  %v3285_v53 = vld [vmem:[%s3525_s4 + $0x28] sm:$0xff] }
 0x988   :  { %2494 = vpow2.f32 %v1582_v40  ;;  %v1702_v40 = vsel %vm73_vm0, %v3280_v58, -inf }
 0x990   :  { %v2491_v7 = vpop.eup %2490 }
 0x991   :  { %v2493_v5 = vpop.eup %2492 }
 0x992   :  { %v1580_v39 = vadd.f32 %v2493_v5, %v2491_v7  ;;  %v2495_v42 = vpop.eup %2494  ;;  %v1699_v7 = vsel %vm73_vm0, %v3285_v53, -inf  ;;  %v3294_v5 = vld [vmem:[%s3525_s4 + $0x40] sm:$0xff] }
 0x994   :  { %v1584_v44 = vadd.f32 %v2495_v42, %v1580_v39  ;;  %v3299_v39 = vld [vmem:[%s3525_s4 + $0x38] sm:$0xff]  ;;  %v1708_v42 = vsel %vm73_vm0, %v3294_v5, -inf }
 0x996   :  { %2496 = vlog2.f32 %v1584_v44  ;;  %v1705_v44 = vsel %vm73_vm0, %v3299_v39, -inf }
 0x9a0   :  { %v2497_v2 = vpop.eup %2496 }
 0x9a1   :  { %v1586_v41 = vmul.f32 0.6931472, %v2497_v2  ;;  %v3331_v2 = vld [vmem:[%s3526_s5 + $0x20] sm:$0xff] }
 0x9a3   :  { %v1587_v49 = vadd.f32 %v1586_v41, %v1573_v63  ;;  %v3266_v63 = vld [vmem:[%s3525_s4 + $0x20] sm:$0xff]  ;;  %v3350_v41 = vld [vmem:[%s3526_s5 + $0x38] sm:$0xff] }
 0x9a4   :  { %v1696_v62 = vsel %vm73_vm0, %v3266_v63, -inf }
 0x9a5   :  { %v1589_v45 = vadd.f32 %v1587_v49, %v1239_v34 }
 0x9a7   :  { %v1590_v13 = vsel %vm3029_vm12, %v1589_v45, -1e+30 }
 0x9a8   :  { %1594 = vrot.lane.b32.xlu0 %v1590_v13, %s2581_s7  ;;  %1591 = vrot.lane.b32.xlu1 %v1590_v13, %s2582_s2 }
 0xa1a   :  { %v1595_v14 = vpop.permute.xlu0 %1594  ;;  %v1592_v47 = vpop.permute.xlu1 %1591 }
 0xa1b   :  { %v1593_v43 = vsel %vm56_vm6, %v1592_v47, -1e+30  ;;  %v1596_v4 = vsel %vm3047_vm8, %v1595_v14, -1e+30 }
 0xa1c   :  { %v1597_v51 = vmax.f32 %v1590_v13, %v1593_v43 }
 0xa1e   :  { %v1598_v8 = vmax.f32 %v1597_v51, %v1596_v4 }
 0xa20   :  { %v1599_v55 = vsub.f32 %v1590_v13, %v1598_v8  ;;  %v1602_v6 = vsub.f32 %v1593_v43, %v1598_v8  ;;  %v1606_v57 = vsub.f32 %v1596_v4, %v1598_v8 }
 0xa22   :  { %v1600_v61 = vmul.f32 1.442695, %v1599_v55  ;;  %v1603_v48 = vmul.f32 1.442695, %v1602_v6  ;;  %v1607_v3 = vmul.f32 1.442695, %v1606_v57 }
 0xa24   :  { %2498 = vpow2.f32 %v1600_v61 }
 0xa25   :  { %2500 = vpow2.f32 %v1603_v48 }
 0xa26   :  { %2502 = vpow2.f32 %v1607_v3 }
 0xa2e   :  { %v2499_v28 = vpop.eup %2498 }
 0xa2f   :  { %v2501_v9 = vpop.eup %2500 }
 0xa30   :  { %v1605_v16 = vadd.f32 %v2501_v9, %v2499_v28  ;;  %v2503_v17 = vpop.eup %2502  ;;  %v1254_v9 = vld [vmem:[#allocation2 + $0xf] ss:$16 sm:$0xc] }
 0xa32   :  { %v1609_v56 = vadd.f32 %v2503_v17, %v1605_v16  ;;  %v1253_v17 = vld [vmem:[#allocation2 + $0xf] ss:$16 sm:$0x3] }
 0xa33   :  { %v1255_v11 = vor.u32 %v1254_v9, %v1253_v17 }
 0xa34   :  { %2504 = vlog2.f32 %v1609_v56  ;;  %v1256_v56 = vld [vmem:[#allocation2 + $0xf] ss:$16 sm:$0x30] }
 0xa35   :  { %v1257_v1 = vor.u32 %v1256_v56, %v1255_v11 }
 0xa37   :  { %v1259_v22 = vor.u32 %v1258_v20, %v1257_v1 }
 0xa3e   :  { %v2505_v21 = vpop.eup %2504 }
 0xa3f   :  { %v1611_v35 = vmul.f32 0.6931472, %v2505_v21 }
 0xa41   :  { %v1612_v23 = vadd.f32 %v1611_v35, %v1598_v8 }
 0xa43   :  { %v1614_v24 = vadd.f32 %v1612_v23, %v1249_v60 }
 0xa45   :  { %v1615_v25 = vsel %vm3029_vm12, %v1614_v24, -1e+30  ;;  %v3369_v24 = vld [vmem:[%s3526_s5 + $0x40] sm:$0xff] }
 0xa46   :  { %1619 = vrot.lane.b32.xlu0 %v1615_v25, %s2581_s7  ;;  %1616 = vrot.lane.b32.xlu1 %v1615_v25, %s2582_s2 }
 0xa4a   :  { %51 = vperm.xlu0 %2328, %v1985_v26   ;;  %46 = vperm.xlu1 %2329, %v28_v32   ;;  %v1684_v32 = vsel %vm73_vm0, %v3257_v33, -inf }
 0xa69   :  { %1688 = vmax.xlane.f32.xlu0 %v1687_v52 }
 0xa6d   :  { %1691 = vmax.xlane.f32.xlu0 %v1690_v31 }
 0xa6e   :  { %1685 = vmax.xlane.f32.xlu1 %v1684_v32 }
 0xa71   :  { %1697 = vmax.xlane.f32.xlu0 %v1696_v62 }
 0xa72   :  { %1694 = vmax.xlane.f32.xlu1 %v1693_v38 }
 0xa75   :  { %1703 = vmax.xlane.f32.xlu0 %v1702_v40 }
 0xa76   :  { %1700 = vmax.xlane.f32.xlu1 %v1699_v7 }
 0xa79   :  { %1709 = vmax.xlane.f32.xlu0 %v1708_v42 }
 0xa7a   :  { %1706 = vmax.xlane.f32.xlu1 %v1705_v44 }
 0xa8b   :  { %1796 = vperm.xlu1 %2329, %v3308_v46  }
 0xa8f   :  { %1793 = vperm.xlu0 %2328, %v3314_v12   ;;  %1799 = vperm.xlu1 %2329, %v3319_v0  }
 0xa93   :  { %1802 = vperm.xlu0 %2328, %v3326_v36   ;;  %1805 = vperm.xlu1 %2329, %v3331_v2  }
 0xa97   :  { %1808 = vperm.xlu0 %2328, %v3338_v54   ;;  %1811 = vperm.xlu1 %2329, %v3343_v59  }
 0xa9b   :  { %1814 = vperm.xlu0 %2328, %v3350_v41  }
 0xab8   :  { %v1620_v34 = vpop.permute.xlu0 %1619  ;;  %v1617_v49 = vpop.permute.xlu1 %1616 }
 0xab9   :  { %v1618_v45 = vsel %vm56_vm6, %v1617_v49, -1e+30  ;;  %v1621_v14 = vsel %vm3047_vm8, %v1620_v34, -1e+30  ;;  %vm1864_vm8 = vcmp.ne.s32.totalorder %v3314_v12, 37 }
 0xaba   :  { %v1622_v13 = vmax.f32 %v1615_v25, %v1618_v45 }
 0xabc   :  { %v1623_v47 = vmax.f32 %v1622_v13, %v1621_v14 }
 0xabe   :  { %v1624_v43 = vsub.f32 %v1615_v25, %v1623_v47  ;;  %v1627_v51 = vsub.f32 %v1618_v45, %v1623_v47  ;;  %v1631_v4 = vsub.f32 %v1621_v14, %v1623_v47 }
 0xac0   :  { %v1625_v8 = vmul.f32 1.442695, %v1624_v43  ;;  %v1628_v55 = vmul.f32 1.442695, %v1627_v51  ;;  %v1632_v6 = vmul.f32 1.442695, %v1631_v4 }
 0xac2   :  { %2506 = vpow2.f32 %v1625_v8 }
 0xac3   :  { %2508 = vpow2.f32 %v1628_v55 }
 0xac4   :  { %2510 = vpow2.f32 %v1632_v6 }
 0xac9   :  { %v52_v16 = vpop.permute.xlu0 %51  ;;  %v47_v19 = vpop.permute.xlu1 %46 }
 0xaca   :  { %vm53_vm9 = vcmp.eq.s32.totalorder %v3026_v50, %v52_v16  ;;  %vm48_vm10 = vcmp.eq.s32.totalorder %v3026_v50, %v47_v19 }
 0xacb   :  { %vm54_vm11 = vmor %vm48_vm10, %vm53_vm9  ;;  %vm1866_vm9 = vcmp.ne.s32.totalorder %v3319_v0, 37  ;;  %vm1867_vm10 = vcmp.ne.s32.totalorder %v3326_v36, 37 }
 0xacc   :  { %v2507_v57 = vpop.eup %2506  ;;  %vm55_vm13 = vmand %vm54_vm11, %vm3029_vm12  ;;  %vm1868_vm11 = vcmp.ne.s32.totalorder %v3331_v2, 37 }
 0xacd   :  { %v2509_v61 = vpop.eup %2508 }
 0xace   :  { %v1630_v48 = vadd.f32 %v2509_v61, %v2507_v57  ;;  %v2511_v3 = vpop.eup %2510 }
 0xad0   :  { %v1634_v28 = vadd.f32 %v2511_v3, %v1630_v48 }
 0xad2   :  { %2512 = vlog2.f32 %v1634_v28 }
 0xadc   :  { %v2513_v18 = vpop.eup %2512 }
 0xadd   :  { %v1636_v21 = vmul.f32 0.6931472, %v2513_v18 }
 0xadf   :  { %v1637_v29 = vadd.f32 %v1636_v21, %v1623_v47 }
 0xae1   :  { %v1639_v35 = vadd.f32 %v1637_v29, %v1259_v22 }
 0xae3   :  { %v1640_v60 = vsel %vm3029_vm12, %v1639_v35, -1e+30 }
 0xae4   :  { %v3363_v23 = vsel %vm55_vm13, %v1640_v60, -1e+30  ;;  %vm1869_vm13 = vcmp.ne.s32.totalorder %v3338_v54, 37 }
 0xae5   :  { %1642 = vmax.xlane.f32.xlu1 %v3363_v23 }
 0xaf6   :  { %1817 = vperm.xlu1 %2329, %v3369_v24   ;;  %v3372_v25 = vpop.xlane.xlu0 %1688 }
 0xaf7   :  { %v1712_v42 = vsub.f32 %v3245_v27, %v3372_v25 }
 0xaf9   :  { %v1722_v45 = vmul.f32 1.442695, %v1712_v42 }
 0xafa   :  { %v3374_v26 = vpop.xlane.xlu0 %1691 }
 0xafb   :  { %v3376_v52 = vpop.xlane.xlu1 %1685  ;;  %v1713_v15 = vsub.f32 %v3252_v30, %v3374_v26 }
 0xafc   :  { %v1711_v31 = vsub.f32 %v3257_v33, %v3376_v52 }
 0xafd   :  { %v1724_v32 = vmul.f32 1.442695, %v1713_v15 }
 0xafe   :  { %v1720_v62 = vmul.f32 1.442695, %v1711_v31  ;;  %v3386_v7 = vpop.xlane.xlu0 %1697 }
 0xaff   :  { %2514 = vpow2.f32 %v1724_v32  ;;  %v3382_v38 = vpop.xlane.xlu1 %1694  ;;  %v1715_v13 = vsub.f32 %v3266_v63, %v3386_v7 }
 0xb00   :  { %2516 = vpow2.f32 %v1720_v62  ;;  %v1714_v40 = vsub.f32 %v3271_v37, %v3382_v38 }
 0xb01   :  { %v1728_v55 = vmul.f32 1.442695, %v1715_v13 }
 0xb02   :  { %v1726_v44 = vmul.f32 1.442695, %v1714_v40  ;;  %v3396_v47 = vpop.xlane.xlu0 %1703 }
 0xb03   :  { %v3390_v34 = vpop.xlane.xlu1 %1700  ;;  %v1717_v6 = vsub.f32 %v3280_v58, %v3396_v47 }
 0xb04   :  { %2518 = vpow2.f32 %v1726_v44  ;;  %v1716_v49 = vsub.f32 %v3285_v53, %v3390_v34 }
 0xb05   :  { %v1732_v9 = vmul.f32 1.442695, %v1717_v6 }
 0xb06   :  { %v1730_v14 = vmul.f32 1.442695, %v1716_v49  ;;  %v3405_v48 = vpop.xlane.xlu0 %1709 }
 0xb07   :  { %v3398_v43 = vpop.xlane.xlu1 %1706  ;;  %v1719_v16 = vsub.f32 %v3294_v5, %v3405_v48 }
 0xb08   :  { %2520 = vpow2.f32 %v1730_v14  ;;  %v1718_v51 = vsub.f32 %v3299_v39, %v3398_v43 }
 0xb09   :  { %v2515_v4 = vpop.eup %2514  ;;  %2522 = vpow2.f32 %v1722_v45  ;;  %v1736_v56 = vmul.f32 1.442695, %v1719_v16 }
 0xb0a   :  { %v2517_v8 = vpop.eup %2516  ;;  %v1734_v57 = vmul.f32 1.442695, %v1718_v51  ;;  %v1744_v3 = vsel %vm73_vm0, %v2515_v4, 0.0 }
 0xb0b   :  { %v1738_v61 = vsel %vm73_vm0, %v2517_v8, 0.0  ;;  %v1797_v35 = vpop.permute.xlu1 %1796 }
 0xb0c   :  { %2524 = vpow2.f32 %v1734_v57  ;;  %1739 = vadd.xlane.f32.xlu0 %v1738_v61  ;;  %vm1820_vm14 = vcmp.eq.s32.totalorder %v1797_v35, %v3026_v50 }
 0xb0d   :  { %2526 = vpow2.f32 %v1728_v55  ;;  %v1829_v49 = vsel %vm1820_vm14, %v3245_v27, 0.0  ;;  %vm1871_vm14 = vcmp.ne.s32.totalorder %v3350_v41, 37 }
 0xb0e   :  { %v2519_v28 = vpop.eup %2518  ;;  %2528 = vpow2.f32 %v1732_v9  ;;  %v1794_v1 = vpop.permute.xlu0 %1793 }
 0xb0f   :  { %v1747_v19 = vsel %vm73_vm0, %v2519_v28, 0.0  ;;  %2530 = vpow2.f32 %v1736_v56  ;;  %vm1819_vm12 = vcmp.eq.s32.totalorder %v1794_v1, %v3026_v50  ;;  %v1800_v42 = vpop.permute.xlu1 %1799 }
 0xb10   :  { %1745 = vadd.xlane.f32.xlu0 %v1744_v3  ;;  %v1828_v31 = vsel %vm1819_vm12, %v3257_v33, 0.0  ;;  %vm1821_vm15 = vcmp.eq.s32.totalorder %v1800_v42, %v3026_v50  ;;  %v1840_v33 = vsel %vm73_vm0, %v1829_v49, 0.0  ;;  %vm1870_vm12 = vcmp.ne.s32.totalorder %v3343_v59, 37 }
 0xb11   :  { %v1837_v32 = vsel %vm73_vm0, %v1828_v31, 0.0  ;;  %v1830_v13 = vsel %vm1821_vm15, %v3252_v30, 0.0  ;;  %vm1872_vm15 = vcmp.ne.s32.totalorder %v3369_v24, 37 }
 0xb12   :  { %v2521_v17 = vpop.eup %2520  ;;  %v1843_v51 = vsel %vm73_vm0, %v1830_v13, 0.0 }
 0xb13   :  { %v2523_v11 = vpop.eup %2522  ;;  %v1753_v18 = vsel %vm73_vm0, %v2521_v17, 0.0  ;;  %v1806_v45 = vpop.permute.xlu1 %1805 }
 0xb14   :  { %1748 = vadd.xlane.f32.xlu0 %v1747_v19  ;;  %v1741_v21 = vsel %vm73_vm0, %v2523_v11, 0.0  ;;  %vm1823_vm1 = vcmp.eq.s32.totalorder %v1806_v45, %v3026_v50 }
 0xb15   :  { %v1832_v4 = vsel %vm1823_vm1, %v3266_v63, 0.0  ;;  %v1803_v63 = vpop.permute.xlu0 %1802  ;;  %vm1963_vm1 = vcmp.eq.s32.totalorder %v2658_v10, 2 }
 0xb16   :  { %v2525_v20 = vpop.eup %2524  ;;  %v1849_v27 = vsel %vm73_vm0, %v1832_v4, 0.0  ;;  %vm1822_vm4 = vcmp.eq.s32.totalorder %v1803_v63, %v3026_v50 }
 0xb17   :  { %v2527_v22 = vpop.eup %2526  ;;  %v1759_v29 = vsel %vm73_vm0, %v2525_v20, 0.0  ;;  %v1812_v14 = vpop.permute.xlu1 %1811  ;;  %v1831_v16 = vsel %vm1822_vm4, %v3271_v37, 0.0 }
 0xb18   :  { %1754 = vadd.xlane.f32.xlu0 %v1753_v18  ;;  %v1750_v60 = vsel %vm73_vm0, %v2527_v22, 0.0  ;;  %v2529_v15 = vpop.eup %2528  ;;  %vm1825_vm2 = vcmp.eq.s32.totalorder %v1812_v14, %v3026_v50  ;;  %v1846_v19 = vsel %vm73_vm0, %v1831_v16, 0.0 }
 0xb19   :  { %v1756_v62 = vsel %vm73_vm0, %v2529_v15, 0.0  ;;  %v2531_v40 = vpop.eup %2530  ;;  %v1834_v8 = vsel %vm1825_vm2, %v3280_v58, 0.0  ;;  %v1809_v58 = vpop.permute.xlu0 %1808  ;;  %vm1962_vm2 = vcmp.eq.s32.totalorder %v2658_v10, 1 }
 0xb1a   :  { %1742 = vadd.xlane.f32.xlu1 %v1741_v21  ;;  %v1762_v44 = vsel %vm73_vm0, %v2531_v40, 0.0  ;;  %v1855_v55 = vsel %vm73_vm0, %v1834_v8, 0.0  ;;  %vm1824_vm5 = vcmp.eq.s32.totalorder %v1809_v58, %v3026_v50 }
 0xb1b   :  { %v1833_v17 = vsel %vm1824_vm5, %v3285_v53, 0.0 }
 0xb1c   :  { %1760 = vadd.xlane.f32.xlu0 %v1759_v29 }
 0xb1e   :  { %1751 = vadd.xlane.f32.xlu1 %v1750_v60 }
 0xb20   :  { %1838 = vadd.xlane.f32.xlu0 %v1837_v32  ;;  %v2583_v32 = vmov 0.0  }
 0xb21   :  { %v2083_v40 = vsel %vm1865_vm7, 1.0, %v2583_v32 }
 0xb22   :  { %1757 = vadd.xlane.f32.xlu1 %v1756_v62  ;;  %v2082_v62 = vsel %vm1864_vm8, 1.0, %v2583_v32 }
 0xb26   :  { %1763 = vadd.xlane.f32.xlu1 %v1762_v44 }
 0xb2a   :  { %1841 = vadd.xlane.f32.xlu1 %v1840_v33  ;;  %v2084_v33 = vsel %vm1866_vm9, 1.0, %v2583_v32 }
 0xb2e   :  { %1844 = vadd.xlane.f32.xlu1 %v1843_v51 }
 0xb32   :  { %1850 = vadd.xlane.f32.xlu1 %v1849_v27 }
 0xb36   :  { %1856 = vadd.xlane.f32.xlu1 %v1855_v55 }
 0xb72   :  { %v3432_v30 = vpop.xlane.xlu1 %1642 }
 0xb73   :  { %v1644_v6 = vsub.f32 %v3363_v23, %v3432_v30  ;;  %v1815_v23 = vpop.permute.xlu0 %1814 }
 0xb74   :  { %vm1826_vm6 = vcmp.eq.s32.totalorder %v1815_v23, %v3026_v50 }
 0xb75   :  { %v1645_v57 = vmul.f32 1.442695, %v1644_v6  ;;  %v1835_v56 = vsel %vm1826_vm6, %v3299_v39, 0.0 }
 0xb76   :  { %v1818_v61 = vpop.permute.xlu1 %1817  ;;  %v1858_v11 = vsel %vm73_vm0, %v1835_v56, 0.0 }
 0xb77   :  { %2532 = vpow2.f32 %v1645_v57  ;;  %vm1827_vm3 = vcmp.eq.s32.totalorder %v1818_v61, %v3026_v50  ;;  %v2085_v57 = vsel %vm1867_vm10, 1.0, %v2583_v32 }
 0xb78   :  { %v1836_v3 = vsel %vm1827_vm3, %v3294_v5, 0.0  ;;  %v1852_v5 = vsel %vm73_vm0, %v1833_v17, 0.0  ;;  %vm1961_vm3 = vcmp.eq.s32.totalorder %v2658_v10, 0 }
 0xb79   :  { %v1861_v28 = vsel %vm73_vm0, %v1836_v3, 0.0  ;;  %vm1655_vm0 = vcmask 7168  }
 0xb7a   :  { %1862 = vadd.xlane.f32.xlu1 %v1861_v28  ;;  %v1935_v42 = vsel %vm1655_vm0, %v2082_v62, 0.0  ;;  %v1936_v46 = vsel %vm1655_vm0, %v2083_v40, 0.0  ;;  %v1938_v0 = vsel %vm1655_vm0, %v2084_v33, 0.0  ;;  %v1940_v36 = vsel %vm1655_vm0, %v2085_v57, 0.0 }
 0xb7b   :  { %v1937_v45 = vadd.f32 %v1936_v46, %v1935_v42 }
 0xb7d   :  { %v1939_v6 = vadd.f32 %v1938_v0, %v1937_v45 }
 0xb81   :  { %v2533_v9 = vpop.eup %2532 }
 0xb82   :  { %1647 = vadd.xlane.f32.xlu0 %v2533_v9 }
 0xb86   :  { %1847 = vadd.xlane.f32.xlu0 %v1846_v19  ;;  %v1941_v19 = vadd.f32 %v1940_v36, %v1939_v6 }
 0xb8a   :  { %1853 = vadd.xlane.f32.xlu0 %v1852_v5 }
 0xb8e   :  { %1859 = vadd.xlane.f32.xlu0 %v1858_v11 }
 0xb99   :  { %v1740_v37 = vpop.xlane.xlu0 %1739 }
 0xb9d   :  { %v1746_v1 = vpop.xlane.xlu0 %1745 }
 0xba1   :  { %v1749_v22 = vpop.xlane.xlu0 %1748 }
 0xba5   :  { %v1755_v29 = vpop.xlane.xlu0 %1754 }
 0xba7   :  { %v1743_v18 = vpop.xlane.xlu1 %1742 }
 0xba8   :  { %2534 = vlog2.f32 %v1743_v18 }
 0xba9   :  { %2536 = vlog2.f32 %v1740_v37  ;;  %v1761_v15 = vpop.xlane.xlu0 %1760 }
 0xbaa   :  { %2538 = vlog2.f32 %v1746_v1 }
 0xbab   :  { %v1752_v20 = vpop.xlane.xlu1 %1751 }
 0xbac   :  { %2540 = vlog2.f32 %v1752_v20 }
 0xbad   :  { %2542 = vlog2.f32 %v1749_v22  ;;  %v1839_v14 = vpop.xlane.xlu0 %1838 }
 0xbaf   :  { %v1758_v21 = vpop.xlane.xlu1 %1757 }
 0xbb0   :  { %2544 = vlog2.f32 %v1758_v21 }
 0xbb1   :  { %2546 = vlog2.f32 %v1755_v29 }
 0xbb2   :  { %v2535_v50 = vpop.eup %2534 }
 0xbb3   :  { %v1764_v53 = vpop.xlane.xlu1 %1763  ;;  %v2537_v35 = vpop.eup %2536  ;;  %v1768_v60 = vmul.f32 0.6931472, %v2535_v50  ;;  %v2087_v50 = vsel %vm1869_vm13, 1.0, %v2583_v32 }
 0xbb4   :  { %v2539_v31 = vpop.eup %2538  ;;  %v1766_v12 = vmul.f32 0.6931472, %v2537_v35  ;;  %2548 = vlog2.f32 %v1764_v53 }
 0xbb5   :  { %v1770_v44 = vmul.f32 0.6931472, %v2539_v31  ;;  %v1784_v49 = vadd.f32 %v1768_v60, %v3372_v25  ;;  %2550 = vlog2.f32 %v1761_v15 }
 0xbb6   :  { %v2541_v51 = vpop.eup %2540  ;;  %v1783_v4 = vadd.f32 %v1766_v12, %v3376_v52  ;;  %v2086_v52 = vsel %vm1868_vm11, 1.0, %v2583_v32 }
 0xbb7   :  { %v1842_v39 = vpop.xlane.xlu1 %1841  ;;  %v1785_v8 = vadd.f32 %v1770_v44, %v3374_v26  ;;  %v2543_v55 = vpop.eup %2542  ;;  %v1774_v61 = vmul.f32 0.6931472, %v2541_v51  ;;  %v1942_v2 = vsel %vm1655_vm0, %v2086_v52, 0.0  ;;  %v2088_v44 = vsel %vm1870_vm12, 1.0, %v2583_v32 }
 0xbb8   :  { %v1892_v27 = vsub.f32 %v1784_v49, %v1842_v39  ;;  %v1891_v25 = vsub.f32 %v1783_v4, %v1839_v14  ;;  %v1772_v58 = vmul.f32 0.6931472, %v2543_v55  ;;  %v1946_v0 = vsel %vm1655_vm0, %v2088_v44, 0.0 }
 0xbb9   :  { %v1787_v56 = vadd.f32 %v1774_v61, %v3386_v7  ;;  %v1943_v7 = vadd.f32 %v1942_v2, %v1941_v19 }
 0xbba   :  { %v2545_v3 = vpop.eup %2544  ;;  %v1901_v9 = vmul.f32 %v2083_v40, %v1892_v27  ;;  %v1900_v26 = vmul.f32 %v2082_v62, %v1891_v25  ;;  %v1786_v21 = vadd.f32 %v1772_v58, %v3382_v38  ;;  %v1944_v38 = vsel %vm1655_vm0, %v2087_v50, 0.0 }
 0xbbb   :  { %v1845_v13 = vpop.xlane.xlu1 %1844  ;;  %v2547_v16 = vpop.eup %2546  ;;  %v1778_v17 = vmul.f32 0.6931472, %v2545_v3  ;;  %v2090_v25 = vsel %vm1872_vm15, 1.0, %v2583_v32 }
 0xbbc   :  { %v1893_v63 = vsub.f32 %v1785_v8, %v1845_v13  ;;  %v1776_v37 = vmul.f32 0.6931472, %v2547_v16  ;;  %v1910_v20 = vsel %vm1655_vm0, %v1901_v9, 0.0  ;;  %v1909_v22 = vsel %vm1655_vm0, %v1900_v26, 0.0  ;;  %v1653_v16 = vld [vmem:[%s3524_s3] sm:$0xff] }
 0xbbd   :  { %v1789_v60 = vadd.f32 %v1778_v17, %v3396_v47  ;;  %v1911_v62 = vadd.f32 %v1910_v20, %v1909_v22  ;;  %v1945_v13 = vadd.f32 %v1944_v38, %v1943_v7 }
 0xbbe   :  { %v1902_v5 = vmul.f32 %v2084_v33, %v1893_v63  ;;  %v2549_v11 = vpop.eup %2548  ;;  %v1788_v12 = vadd.f32 %v1776_v37, %v3390_v34 }
 0xbbf   :  { %v1851_v28 = vpop.xlane.xlu1 %1850  ;;  %v2551_v18 = vpop.eup %2550  ;;  %v1782_v39 = vmul.f32 0.6931472, %v2549_v11 }
 0xbc0   :  { %v1895_v1 = vsub.f32 %v1787_v56, %v1851_v28  ;;  %v1912_v35 = vsel %vm1655_vm0, %v1902_v5, 0.0  ;;  %v1780_v31 = vmul.f32 0.6931472, %v2551_v18 }
 0xbc1   :  { %v1913_v54 = vadd.f32 %v1912_v35, %v1911_v62  ;;  %v1791_v45 = vadd.f32 %v1782_v39, %v3405_v48 }
 0xbc2   :  { %v1904_v40 = vmul.f32 %v2086_v52, %v1895_v1  ;;  %v1790_v51 = vadd.f32 %v1780_v31, %v3398_v43  ;;  %v1947_v43 = vadd.f32 %v1946_v0, %v1945_v13 }
 0xbc3   :  { %v1857_v53 = vpop.xlane.xlu1 %1856 }
 0xbc4   :  { %v1897_v42 = vsub.f32 %v1789_v60, %v1857_v53  ;;  %v1916_v27 = vsel %vm1655_vm0, %v1904_v40, 0.0 }
 0xbc6   :  { %v1906_v8 = vmul.f32 %v2088_v44, %v1897_v42 }
 0xbc8   :  { %v1920_v9 = vsel %vm1655_vm0, %v1906_v8, 0.0 }
 0xc07   :  { %v1863_v47 = vpop.xlane.xlu1 %1862 }
 0xc08   :  { %v1899_v55 = vsub.f32 %v1791_v45, %v1863_v47 }
 0xc0a   :  { %v1908_v24 = vmul.f32 %v2090_v25, %v1899_v55 }
 0xc0c   :  { %v1924_v17 = vsel %vm1655_vm0, %v1908_v24, 0.0 }
 0xc0f   :  { %v1648_v23 = vpop.xlane.xlu0 %1647 }
 0xc10   :  { %2552 = vlog2.f32 %v1648_v23  ;;  %v1950_v23 = vsel %vm1655_vm0, %v2090_v25, 0.0 }
 0xc13   :  { %v1848_v29 = vpop.xlane.xlu0 %1847 }
 0xc14   :  { %v1894_v15 = vsub.f32 %v1786_v21, %v1848_v29 }
 0xc16   :  { %v1903_v46 = vmul.f32 %v2085_v57, %v1894_v15  ;;  %v2089_v57 = vsel %vm1871_vm14, 1.0, %v2583_v32 }
 0xc17   :  { %v1854_v49 = vpop.xlane.xlu0 %1853  ;;  %v1948_v58 = vsel %vm1655_vm0, %v2089_v57, 0.0 }
 0xc18   :  { %v1914_v33 = vsel %vm1655_vm0, %v1903_v46, 0.0  ;;  %v1896_v14 = vsub.f32 %v1788_v12, %v1854_v49  ;;  %v1949_v26 = vadd.f32 %v1948_v58, %v1947_v43 }
 0xc19   :  { %v1915_v34 = vadd.f32 %v1914_v33, %v1913_v54 }
 0xc1a   :  { %v2553_v4 = vpop.eup %2552  ;;  %v1905_v59 = vmul.f32 %v2087_v50, %v1896_v14  ;;  %v1951_v11 = vadd.f32 %v1950_v23, %v1949_v26 }
 0xc1b   :  { %v1650_v48 = vmul.f32 0.6931472, %v2553_v4  ;;  %v1917_v6 = vadd.f32 %v1916_v27, %v1915_v34  ;;  %v1860_v61 = vpop.xlane.xlu0 %1859 }
 0xc1c   :  { %v1918_v63 = vsel %vm1655_vm0, %v1905_v59, 0.0  ;;  %v1898_v36 = vsub.f32 %v1790_v51, %v1860_v61 }
 0xc1d   :  { %v1651_v3 = vadd.f32 %v1650_v48, %v3432_v30  ;;  %v1919_v28 = vadd.f32 %v1918_v63, %v1917_v6 }
 0xc1e   :  { %v1907_v52 = vmul.f32 %v2089_v57, %v1898_v36 }
 0xc1f   :  { %v1921_v41 = vadd.f32 %v1920_v9, %v1919_v28  ;;  %v1652_v32 = vsub.f32 0.0, %v1651_v3 }
 0xc20   :  { %v1922_v2 = vsel %vm1655_vm0, %v1907_v52, 0.0 }
 0xc21   :  { %v1923_v19 = vadd.f32 %v1922_v2, %v1921_v41  ;;  %v1654_v30 = vmul.f32 %v1653_v16, %v1652_v32 }
 0xc23   :  { %v1656_v5 = vsel %vm1655_vm0, %v1654_v30, 0.0  ;;  %v1925_v56 = vadd.f32 %v1924_v17, %v1923_v19 }
 0xc24   :  { %1657 = vadd.xlane.f32.xlu0 %v1656_v5 }
 0xc25   :  { %1926 = vadd.xlane.f32.xlu1 %v1925_v56 }
 0xc28   :  { %1952 = vadd.xlane.f32.xlu0 %v1951_v11 }
 0xcb1   :  { %v1658_v18 = vpop.xlane.xlu0 %1657 }
 0xcb2   :  { %v1659_v37 = vrot.slane %v1658_v18, 4  ;;  %v1927_v20 = vpop.xlane.xlu1 %1926 }
 0xcb3   :  { %v1928_v1 = vrot.slane %v1927_v20, 4 }
 0xcb4   :  { %v1660_v21 = vadd.f32 %v1659_v37, %v1658_v18 }
 0xcb5   :  { %v1929_v22 = vadd.f32 %v1928_v1, %v1927_v20  ;;  %v1953_v53 = vpop.xlane.xlu0 %1952 }
 0xcb6   :  { %v1661_v29 = vrot.slane %v1660_v21, 2  ;;  %v1954_v50 = vrot.slane %v1953_v53, 4 }
 0xcb7   :  { %v1930_v7 = vrot.slane %v1929_v22, 2 }
 0xcb8   :  { %v1955_v39 = vadd.f32 %v1954_v50, %v1953_v53  ;;  %v1662_v35 = vadd.f32 %v1661_v29, %v1660_v21 }
 0xcb9   :  { %v1931_v60 = vadd.f32 %v1930_v7, %v1929_v22 }
 0xcba   :  { %v1956_v15 = vrot.slane %v1955_v39, 2  ;;  %v1663_v31 = vrot.slane %v1662_v35, 1 }
 0xcbb   :  { %v1932_v62 = vrot.slane %v1931_v60, 1 }
 0xcbc   :  { %v1957_v38 = vadd.f32 %v1956_v15, %v1955_v39  ;;  %v1664_v40 = vadd.f32 %v1663_v31, %v1662_v35 }
 0xcbd   :  { %v1933_v42 = vadd.f32 %v1932_v62, %v1931_v60 }
 0xcbe   :  { %2315 = vpush %v1664_v40  ;;  %v1958_v46 = vrot.slane %v1957_v38, 1 }
 0xcbf   :  { %2317 = vpush %v1933_v42 }
 0xcc0   :  { %v1959_v12 = vadd.f32 %v1958_v46, %v1957_v38 }
 0xcc2   :  { %2319 = vpush %v1959_v12 }
 0xcef   :  { %s2316_s3 = spop %2315 }
 0xcf0   :  { %s2318_s16 = spop %2317  ;;  %v1968_v49 = vstv %s2316_s3 }
 0xcf1   :  { %v1966_v44 = vstv %s2318_s16 }
 0xcf3   :  { %s2320_s17 = spop %2319 }
 0xcf4   :  { %v1964_v54 = vstv %s2320_s17 }
 0xcf5   :  { %v1965_v47 = vsel %vm1963_vm1, %v1964_v54, 0.0 }
 0xcf6   :  { %v1967_v45 = vsel %vm1962_vm2, %v1966_v44, %v1965_v47 }
 0xcf7   :  { %v1969_v33 = vsel %vm1961_vm3, %v1968_v49, %v1967_v45 }
 0xcf8   :  { %1970 = vst [vmem:[#allocation4] sm:$0xff] %v1969_v33 }
 0xcf9   :  { %2565 = shalt.err (!%p2562_p4)
}
 0xcfa   :  { %s2566_s23 = scalar_lea.hbm %s3527_s6, 128 }
 0xcfb   :  { %p2567_p5 = scmp.ne.s32.totalorder %s3527_s6, %s2566_s23  ;;  %p2570_p6 = scmp.lt.u32.totalorder %s2566_s23, %s3527_s6 }
 0xcfd   :  { %p2572_p7 = pnand %p2570_p6, %p2567_p5 }
 0xcff   :  { %2575 = shalt.err (!%p2572_p7)
}
 0xd00   :  { %1980 = dma.vmem_to_hbm [thread:$0]  %s1978_s19, 128, %s3527_s6, [#allocation5]  }
 0xd01   :  { %2576 = dma.done.wait [#allocation5], 128  }
 0xd02   :  { %2577 = vsyncadd [#allocation5], 4294967168 }
 0xd03   :  { %1984 = vsyncpa [#allocation5], 1 }

</bundles_post_ra>
